<compile_context>
chip_gen: v6e
topology: v6e:2x2x1
jax: 0.10.0
libtpu: 0.0.40
codegen_flags: <defaults>
</compile_context>

<pallas_src>
import jax
import jax.numpy as jnp
from jax.experimental import pallas as pl
from jax.experimental.pallas import tpu as pltpu

EPS = 1e-5
K = 4        # ConvTranspose2d kernel size
STRIDE = 2
PAD = 1
PH = 4       # 2x2 sub-pixel phases of the stride-2 transposed conv
WPAD = 7     # left margin in the scratch's W axis (interior starts at sublane-aligned 8)


# ---------------------------------------------------------------------------
# Fused kernel: zero-pad -> deconv (one MXU matmul) -> BN(train) -> ReLU
# ---------------------------------------------------------------------------
def upsample2x_kernel(x_ref, w_ref, b_ref, gamma_ref, beta_ref, o_ref, xpad_ref):
    """x_ref    : (N, H, W, Cin)       input activations (NHWC)
       w_ref    : (9*Cin, 4*Cout)      phase-combined deconv weight
       b_ref    : (1, Cout)            deconv bias
       gamma/beta_ref : (1, Cout)      BN affine parameters
       o_ref    : (N*H*W, 4*Cout)      output, column = phase*Cout + cout
       xpad_ref : (N, H+2, W+16, Cin)  VMEM scratch holding the zero-padded input
    """
    N, H, W, C = x_ref.shape
    C_out = b_ref.shape[1]

    # 1) zero-pad the input entirely inside VMEM
    #    (interior stored at column 8 so the store stays sublane-aligned).
    xpad_ref[...] = jnp.zeros(xpad_ref.shape, jnp.float32)
    xpad_ref[:, 1:H + 1, WPAD + 1:WPAD + 1 + W, :] = x_ref[...]

    # 2) im2col over the shared 3x3 window of the padded input (channels innermost).
    taps = [xpad_ref[:, ty:ty + H, WPAD + tx:WPAD + tx + W, :]
            for ty in range(3) for tx in range(3)]
    patches = jnp.concatenate(taps, axis=-1)                  # (N, H, W, 9*Cin)
    p = patches.reshape(N * H * W, 9 * C)                     # pixels on sublanes

    # 3) all 4 sub-pixel phases of the transposed conv in ONE MXU matmul.
    y = jnp.dot(p, w_ref[...], preferred_element_type=jnp.float32)   # (N*H*W, 4*Cout)
    y = y + jnp.concatenate([b_ref[...]] * PH, axis=1)

    # 4) BatchNorm2d, training mode: biased batch statistics per output channel,
    #    gathered in a single pass (sum & sum-of-squares).
    cnt = jnp.float32(N * H * W * PH)                         # = N * (2H) * (2W)
    col_sum = jnp.sum(y, axis=0, keepdims=True)               # (1, 4*Cout)
    col_sq = jnp.sum(y * y, axis=0, keepdims=True)
    ch_sum = col_sum[:, 0:C_out]
    ch_sq = col_sq[:, 0:C_out]
    for ph in range(1, PH):                                   # aggregate the 4 phases
        ch_sum = ch_sum + col_sum[:, ph * C_out:(ph + 1) * C_out]
        ch_sq = ch_sq + col_sq[:, ph * C_out:(ph + 1) * C_out]
    mean = ch_sum / cnt
    var = ch_sq / cnt - mean * mean                           # biased variance
    inv = gamma_ref[...] * jax.lax.rsqrt(var + EPS)           # (1, Cout)
    sft = beta_ref[...] - mean * inv

    # 5) fused BN affine + ReLU.
    scale = jnp.concatenate([inv] * PH, axis=1)               # (1, 4*Cout)
    shift = jnp.concatenate([sft] * PH, axis=1)
    o_ref[...] = jnp.maximum(y * scale + shift, 0.0)


# ---------------------------------------------------------------------------
# Parameter preprocessing: phase-combined deconv weight (wrapper-side, tiny).
# ---------------------------------------------------------------------------
def _combined_weight(w_t):
    """(Cin, Cout, 4, 4) ConvTranspose2d weight -> (9*Cin, 4*Cout).

    Sub-pixel decomposition of ConvTranspose2d(k=4, s=2, p=1): output pixel
    (2p+r, 2q+s) is a 2x2 conv of the 1-padded input; all four phases fit in a
    shared 3x3 window, with tap (ty, tx) of phase (r, s) reading kernel entry
    (ky, kx) = (3 + r - 2*ty, 3 + s - 2*tx) when in range (zero otherwise).
    Column order: phase*Cout + cout, phase = r*2 + s.
    """
    C_in, C_out = w_t.shape[0], w_t.shape[1]
    wbig = jnp.zeros((9 * C_in, PH * C_out), jnp.float32)
    for ty in range(3):
        for tx in range(3):
            for r in range(2):
                for s in range(2):
                    ky = 3 + r - 2 * ty
                    kx = 3 + s - 2 * tx
                    if 0 <= ky < K and 0 <= kx < K:
                        tap = ty * 3 + tx
                        ph = r * 2 + s
                        wbig = wbig.at[tap * C_in:(tap + 1) * C_in,
                                       ph * C_out:(ph + 1) * C_out].set(
                                           w_t[:, :, ky, kx].astype(jnp.float32))
    return wbig


# ---------------------------------------------------------------------------
# Wrapper: layout glue (NCHW<->NHWC, sub-pixel un-shuffle) is plain JAX.
# ---------------------------------------------------------------------------
def upsample2x_block(x_nchw, w_t, b, gamma, beta):
    N, C_in, H, W = x_nchw.shape
    C_out = w_t.shape[1]

    x = jnp.transpose(x_nchw, (0, 2, 3, 1)).astype(jnp.float32)     # NHWC
    wbig = _combined_weight(w_t)
    b2 = b.astype(jnp.float32).reshape(1, C_out)
    g2 = gamma.astype(jnp.float32).reshape(1, C_out)
    be2 = beta.astype(jnp.float32).reshape(1, C_out)

    vmem = pl.BlockSpec(memory_space=pltpu.MemorySpace.VMEM)

    y = pl.pallas_call(
        upsample2x_kernel,
        out_shape=jax.ShapeDtypeStruct((N * H * W, PH * C_out), jnp.float32),
        in_specs=[vmem, vmem, vmem, vmem, vmem],
        out_specs=vmem,
        scratch_shapes=[pltpu.VMEM((N, H + 2, W + 16, C_in), jnp.float32)],
    )(x, wbig, b2, g2, be2)

    # sub-pixel un-shuffle: (n, p, q, r, s, co) -> (n, co, 2p+r, 2q+s)
    out = y.reshape(N, H, W, 2, 2, C_out)
    out = jnp.transpose(out, (0, 5, 1, 3, 2, 4))
    return out.reshape(N, C_out, 2 * H, 2 * W)


# ---------------------------------------------------------------------------
# Pure-JAX reference (independent path, for the correctness check only).
# ---------------------------------------------------------------------------
def reference(x_nchw, w_t, b, gamma, beta):
    # ConvTranspose2d(k,s,p) == conv with lhs_dilation=s, padding=k-1-p and the
    # kernel spatially flipped with in/out channels swapped.
    w_conv = jnp.flip(w_t, axis=(2, 3))
    w_conv = jnp.transpose(w_conv, (1, 0, 2, 3))                    # (Cout, Cin, 4, 4)
    y = jax.lax.conv_general_dilated(
        x_nchw.astype(jnp.float32), w_conv.astype(jnp.float32),
        window_strides=(1, 1),
        padding=((K - 1 - PAD, K - 1 - PAD), (K - 1 - PAD, K - 1 - PAD)),
        lhs_dilation=(STRIDE, STRIDE),
        dimension_numbers=("NCHW", "OIHW", "NCHW"))
    y = y + b[None, :, None, None]
    mean = y.mean(axis=(0, 2, 3), keepdims=True)
    var = ((y - mean) ** 2).mean(axis=(0, 2, 3), keepdims=True)     # biased
    y = (y - mean) * jax.lax.rsqrt(var + EPS)
    y = y * gamma[None, :, None, None] + beta[None, :, None, None]
    return jnp.maximum(y, 0.0)


if __name__ == "__main__":
    # Small shapes: Upsample2xBlock(input_size=4, output_size=4), batch 2, 16x16.
    N, C_in, H, W = 2, 4, 16, 16
    C_out = 4
    key = jax.random.PRNGKey(0)
    kx, kw, kb, kg, kbe = jax.random.split(key, 5)

    x = jax.random.normal(kx, (N, C_in, H, W), jnp.float32)

    bound = 1.0 / ((C_in * K * K) ** 0.5)
    w_t = jax.random.uniform(kw, (C_in, C_out, K, K), jnp.float32, -bound, bound)
    b = jax.random.uniform(kb, (C_out,), jnp.float32, -bound, bound)
    gamma = jax.random.uniform(kg, (C_out,), jnp.float32, 0.8, 1.2)
    beta = jax.random.uniform(kbe, (C_out,), jnp.float32, -0.1, 0.1)

    run = jax.jit(upsample2x_block)
    out = jax.block_until_ready(run(x, w_t, b, gamma, beta))

    ref = reference(x, w_t, b, gamma, beta)
    assert out.shape == (N, C_out, 2 * H, 2 * W)
    max_err = float(jnp.max(jnp.abs(out - ref)))
    assert jnp.allclose(out, ref, atol=1e-4, rtol=1e-4), max_err

    print("KERNEL_OK")
</pallas_src>

<mosaic_0001>
module attributes {stable_mosaic.version = 11 : i64} {
  func.func @upsample2x_kernel(%arg0: memref<2x16x16x4xf32, #tpu.memory_space<vmem>>, %arg1: memref<36x16xf32, #tpu.memory_space<vmem>>, %arg2: memref<1x4xf32, #tpu.memory_space<vmem>>, %arg3: memref<1x4xf32, #tpu.memory_space<vmem>>, %arg4: memref<1x4xf32, #tpu.memory_space<vmem>>, %arg5: memref<512x16xf32, #tpu.memory_space<vmem>>, %arg6: memref<2x18x32x4xf32, #tpu.memory_space<vmem>>) attributes {dimension_semantics = [], scalar_prefetch = 0 : i64, scratch_operands = 1 : i64, tpu.core_type = #tpu.core_type<tc>} {
    %cst = arith.constant 0.000000e+00 : f32
    %0 = vector.broadcast %cst : f32 to vector<2x18x32x4xf32>
    %c0 = arith.constant 0 : index
    %c0_0 = arith.constant 0 : index
    %c0_1 = arith.constant 0 : index
    %c0_2 = arith.constant 0 : index
    %1 = vector.load %arg6[%c0, %c0_0, %c0_1, %c0_2] : memref<2x18x32x4xf32, #tpu.memory_space<vmem>>, vector<2x18x32x4xf32>
    tpu.vector_store %arg6[%c0, %c0_0, %c0_1, %c0_2], %0 {strides = array<i32>} : memref<2x18x32x4xf32, #tpu.memory_space<vmem>>, vector<2x18x32x4xf32>,
    %c0_3 = arith.constant 0 : index
    %c0_4 = arith.constant 0 : index
    %c0_5 = arith.constant 0 : index
    %c0_6 = arith.constant 0 : index
    %2 = vector.load %arg0[%c0_3, %c0_4, %c0_5, %c0_6] : memref<2x16x16x4xf32, #tpu.memory_space<vmem>>, vector<2x16x16x4xf32>
    %c0_7 = arith.constant 0 : index
    %c1 = arith.constant 1 : index
    %c8 = arith.constant 8 : index
    %c0_8 = arith.constant 0 : index
    %3 = vector.load %arg6[%c0_7, %c1, %c8, %c0_8] : memref<2x18x32x4xf32, #tpu.memory_space<vmem>>, vector<2x16x16x4xf32>
    tpu.vector_store %arg6[%c0_7, %c1, %c8, %c0_8], %2 {strides = array<i32>} : memref<2x18x32x4xf32, #tpu.memory_space<vmem>>, vector<2x16x16x4xf32>,
    %c0_9 = arith.constant 0 : index
    %c0_10 = arith.constant 0 : index
    %c7 = arith.constant 7 : index
    %c0_11 = arith.constant 0 : index
    %4 = vector.load %arg6[%c0_9, %c0_10, %c7, %c0_11] : memref<2x18x32x4xf32, #tpu.memory_space<vmem>>, vector<2x16x16x4xf32>
    %c0_12 = arith.constant 0 : index
    %c0_13 = arith.constant 0 : index
    %c8_14 = arith.constant 8 : index
    %c0_15 = arith.constant 0 : index
    %5 = vector.load %arg6[%c0_12, %c0_13, %c8_14, %c0_15] : memref<2x18x32x4xf32, #tpu.memory_space<vmem>>, vector<2x16x16x4xf32>
    %c0_16 = arith.constant 0 : index
    %c0_17 = arith.constant 0 : index
    %c9 = arith.constant 9 : index
    %c0_18 = arith.constant 0 : index
    %6 = vector.load %arg6[%c0_16, %c0_17, %c9, %c0_18] : memref<2x18x32x4xf32, #tpu.memory_space<vmem>>, vector<2x16x16x4xf32>
    %c0_19 = arith.constant 0 : index
    %c1_20 = arith.constant 1 : index
    %c7_21 = arith.constant 7 : index
    %c0_22 = arith.constant 0 : index
    %7 = vector.load %arg6[%c0_19, %c1_20, %c7_21, %c0_22] : memref<2x18x32x4xf32, #tpu.memory_space<vmem>>, vector<2x16x16x4xf32>
    %c0_23 = arith.constant 0 : index
    %c1_24 = arith.constant 1 : index
    %c8_25 = arith.constant 8 : index
    %c0_26 = arith.constant 0 : index
    %8 = vector.load %arg6[%c0_23, %c1_24, %c8_25, %c0_26] : memref<2x18x32x4xf32, #tpu.memory_space<vmem>>, vector<2x16x16x4xf32>
    %c0_27 = arith.constant 0 : index
    %c1_28 = arith.constant 1 : index
    %c9_29 = arith.constant 9 : index
    %c0_30 = arith.constant 0 : index
    %9 = vector.load %arg6[%c0_27, %c1_28, %c9_29, %c0_30] : memref<2x18x32x4xf32, #tpu.memory_space<vmem>>, vector<2x16x16x4xf32>
    %c0_31 = arith.constant 0 : index
    %c2 = arith.constant 2 : index
    %c7_32 = arith.constant 7 : index
    %c0_33 = arith.constant 0 : index
    %10 = vector.load %arg6[%c0_31, %c2, %c7_32, %c0_33] : memref<2x18x32x4xf32, #tpu.memory_space<vmem>>, vector<2x16x16x4xf32>
    %c0_34 = arith.constant 0 : index
    %c2_35 = arith.constant 2 : index
    %c8_36 = arith.constant 8 : index
    %c0_37 = arith.constant 0 : index
    %11 = vector.load %arg6[%c0_34, %c2_35, %c8_36, %c0_37] : memref<2x18x32x4xf32, #tpu.memory_space<vmem>>, vector<2x16x16x4xf32>
    %c0_38 = arith.constant 0 : index
    %c2_39 = arith.constant 2 : index
    %c9_40 = arith.constant 9 : index
    %c0_41 = arith.constant 0 : index
    %12 = vector.load %arg6[%c0_38, %c2_39, %c9_40, %c0_41] : memref<2x18x32x4xf32, #tpu.memory_space<vmem>>, vector<2x16x16x4xf32>
    %13 = tpu.concatenate %4, %5, %6, %7, %8, %9, %10, %11, %12 in 3 : vector<2x16x16x4xf32>, vector<2x16x16x4xf32>, vector<2x16x16x4xf32>, vector<2x16x16x4xf32>, vector<2x16x16x4xf32>, vector<2x16x16x4xf32>, vector<2x16x16x4xf32>, vector<2x16x16x4xf32>, vector<2x16x16x4xf32> -> vector<2x16x16x36xf32>
    %14 = vector.shape_cast %13 : vector<2x16x16x36xf32> to vector<512x36xf32>
    %c0_42 = arith.constant 0 : index
    %c0_43 = arith.constant 0 : index
    %15 = vector.load %arg1[%c0_42, %c0_43] : memref<36x16xf32, #tpu.memory_space<vmem>>, vector<36x16xf32>
    %cst_44 = arith.constant dense<0.000000e+00> : vector<512x16xf32>
    %16 = tpu.matmul %14, %15, %cst_44 {dimension_numbers = #tpu.dot_dimension_numbers<[1], [0], [0], [1], [0, 0, 1, 1], [], []>} : vector<512x36xf32>, vector<36x16xf32>, vector<512x16xf32> -> vector<512x16xf32>
    %c0_45 = arith.constant 0 : index
    %c0_46 = arith.constant 0 : index
    %17 = vector.load %arg2[%c0_45, %c0_46] : memref<1x4xf32, #tpu.memory_space<vmem>>, vector<1x4xf32>
    %18 = tpu.concatenate %17, %17, %17, %17 in 1 : vector<1x4xf32>, vector<1x4xf32>, vector<1x4xf32>, vector<1x4xf32> -> vector<1x16xf32>
    %19 = vector.broadcast %18 : vector<1x16xf32> to vector<512x16xf32>
    %20 = arith.addf %16, %19 : vector<512x16xf32>
    %cst_47 = arith.constant dense<0.000000e+00> : vector<16xf32>
    %21 = vector.multi_reduction <add>, %20, %cst_47 [0] : vector<512x16xf32> to vector<16xf32>
    %22 = vector.shape_cast %21 : vector<16xf32> to vector<1x16xf32>
    %23 = arith.mulf %20, %20 : vector<512x16xf32>
    %cst_48 = arith.constant dense<0.000000e+00> : vector<16xf32>
    %24 = vector.multi_reduction <add>, %23, %cst_48 [0] : vector<512x16xf32> to vector<16xf32>
    %25 = vector.shape_cast %24 : vector<16xf32> to vector<1x16xf32>
    %26 = vector.extract_strided_slice %22 {offsets = [0, 0], sizes = [1, 4], strides = [1, 1]} : vector<1x16xf32> to vector<1x4xf32>
    %27 = vector.extract_strided_slice %25 {offsets = [0, 0], sizes = [1, 4], strides = [1, 1]} : vector<1x16xf32> to vector<1x4xf32>
    %28 = vector.extract_strided_slice %22 {offsets = [0, 4], sizes = [1, 4], strides = [1, 1]} : vector<1x16xf32> to vector<1x4xf32>
    %29 = arith.addf %26, %28 : vector<1x4xf32>
    %30 = vector.extract_strided_slice %25 {offsets = [0, 4], sizes = [1, 4], strides = [1, 1]} : vector<1x16xf32> to vector<1x4xf32>
    %31 = arith.addf %27, %30 : vector<1x4xf32>
    %32 = vector.extract_strided_slice %22 {offsets = [0, 8], sizes = [1, 4], strides = [1, 1]} : vector<1x16xf32> to vector<1x4xf32>
    %33 = arith.addf %29, %32 : vector<1x4xf32>
    %34 = vector.extract_strided_slice %25 {offsets = [0, 8], sizes = [1, 4], strides = [1, 1]} : vector<1x16xf32> to vector<1x4xf32>
    %35 = arith.addf %31, %34 : vector<1x4xf32>
    %36 = vector.extract_strided_slice %22 {offsets = [0, 12], sizes = [1, 4], strides = [1, 1]} : vector<1x16xf32> to vector<1x4xf32>
    %37 = arith.addf %33, %36 : vector<1x4xf32>
    %38 = vector.extract_strided_slice %25 {offsets = [0, 12], sizes = [1, 4], strides = [1, 1]} : vector<1x16xf32> to vector<1x4xf32>
    %39 = arith.addf %35, %38 : vector<1x4xf32>
    %cst_49 = arith.constant 2.048000e+03 : f32
    %40 = vector.broadcast %cst_49 : f32 to vector<1x4xf32>
    %41 = arith.divf %37, %40 : vector<1x4xf32>
    %cst_50 = arith.constant 2.048000e+03 : f32
    %42 = vector.broadcast %cst_50 : f32 to vector<1x4xf32>
    %43 = arith.divf %39, %42 : vector<1x4xf32>
    %44 = arith.mulf %41, %41 : vector<1x4xf32>
    %45 = arith.subf %43, %44 : vector<1x4xf32>
    %c0_51 = arith.constant 0 : index
    %c0_52 = arith.constant 0 : index
    %46 = vector.load %arg3[%c0_51, %c0_52] : memref<1x4xf32, #tpu.memory_space<vmem>>, vector<1x4xf32>
    %cst_53 = arith.constant 9.99999974E-6 : f32
    %47 = vector.broadcast %cst_53 : f32 to vector<1x4xf32>
    %48 = arith.addf %45, %47 : vector<1x4xf32>
    %49 = math.rsqrt %48 : vector<1x4xf32>
    %50 = arith.mulf %46, %49 : vector<1x4xf32>
    %c0_54 = arith.constant 0 : index
    %c0_55 = arith.constant 0 : index
    %51 = vector.load %arg4[%c0_54, %c0_55] : memref<1x4xf32, #tpu.memory_space<vmem>>, vector<1x4xf32>
    %52 = arith.mulf %41, %50 : vector<1x4xf32>
    %53 = arith.subf %51, %52 : vector<1x4xf32>
    %54 = tpu.concatenate %50, %50, %50, %50 in 1 : vector<1x4xf32>, vector<1x4xf32>, vector<1x4xf32>, vector<1x4xf32> -> vector<1x16xf32>
    %55 = tpu.concatenate %53, %53, %53, %53 in 1 : vector<1x4xf32>, vector<1x4xf32>, vector<1x4xf32>, vector<1x4xf32> -> vector<1x16xf32>
    %56 = vector.broadcast %54 : vector<1x16xf32> to vector<512x16xf32>
    %57 = arith.mulf %20, %56 : vector<512x16xf32>
    %58 = vector.broadcast %55 : vector<1x16xf32> to vector<512x16xf32>
    %59 = arith.addf %57, %58 : vector<512x16xf32>
    %cst_56 = arith.constant 0.000000e+00 : f32
    %60 = vector.broadcast %cst_56 : f32 to vector<512x16xf32>
    %61 = arith.maximumf %59, %60 : vector<512x16xf32>
    %c0_57 = arith.constant 0 : index
    %c0_58 = arith.constant 0 : index
    %62 = vector.load %arg5[%c0_57, %c0_58] : memref<512x16xf32, #tpu.memory_space<vmem>>, vector<512x16xf32>
    tpu.vector_store %arg5[%c0_57, %c0_58], %61 {strides = array<i32>} : memref<512x16xf32, #tpu.memory_space<vmem>>, vector<512x16xf32>,
    return
  }
}

</mosaic_0001>

<bundles_post_ra>
// kernel: upsample2x_block.1
= control target key start
LH: loop header
LB: loop body
LE: loop exit
PB: predicated region body
PF: predicated region fallthrough
CT: control target
= control target key end

     0   :  { %vm20_vm0 = vcmask 31744   ;;  %v5041_v0 = vmov 0.0   ;;  %s5042_s12 = smov 4   ;;  %s5043_s17 = smov 8   ;;  %vm3658_vm1 = vcmask 1043456   ;;  %vm2983_vm2 = vcmask 64512   ;;  %s8957_s0 = inlined_call_operand.vmem [shape: f32[2,16,16,4], index: 0, kind: input, shape index: {}]   ;;  %s8958_s1 = inlined_call_operand.vmem [shape: f32[36,16], index: 1, kind: input, shape index: {}]   ;;  %s8959_s2 = inlined_call_operand.vmem [shape: f32[1,4], index: 2, kind: input, shape index: {}]   ;;  %s8960_s3 = inlined_call_operand.vmem [shape: f32[1,4], index: 3, kind: input, shape index: {}]   ;;  %s8961_s4 = inlined_call_operand.vmem [shape: f32[1,4], index: 4, kind: input, shape index: {}]   ;;  %s8962_s5 = inlined_call_operand.vmem [shape: f32[512,16], index: 5, kind: output, shape index: {}]  }
   0x1   :  { %22 = vst.msk [vmem:[#allocation2 + $0x8] sm:$0xff] %vm20_vm0, %v5041_v0  ;;  %21 = vst.msk [vmem:[#allocation2] sm:$0xff] %vm20_vm0, %v5041_v0  ;;  %v165_v1 = vld [vmem:[%s8957_s0] sm:$0xff]  ;;  %v166_v2 = vld [vmem:[%s8957_s0 + $0x8] sm:$0xff]  ;;  %s5045_s26 = smov 16   ;;  %s5046_s10 = smov 20  }
   0x2   :  { %23 = vst.msk [vmem:[#allocation2 + $0x10] sm:$0xff] %vm20_vm0, %v5041_v0  ;;  %24 = vst.msk [vmem:[#allocation2 + $0x18] sm:$0xff] %vm20_vm0, %v5041_v0  ;;  %v167_v3 = vld [vmem:[%s8957_s0 + $0x10] sm:$0xff]  ;;  %v168_v4 = vld [vmem:[%s8957_s0 + $0x18] sm:$0xff]  ;;  %s5047_s14 = smov 24   ;;  %s5049_s15 = smov 32  }
   0x3   :  { %25 = vst.msk [vmem:[#allocation2 + $0x20] sm:$0xff] %vm20_vm0, %v5041_v0  ;;  %26 = vst.msk [vmem:[#allocation2 + $0x28] sm:$0xff] %vm20_vm0, %v5041_v0  ;;  %v169_v5 = vld [vmem:[%s8957_s0 + $0x20] sm:$0xff]  ;;  %v170_v6 = vld [vmem:[%s8957_s0 + $0x28] sm:$0xff]  ;;  %vm3048_vm3 = vcmask 97280   ;;  %vm3113_vm4 = vcmask 130048  }
   0x4   :  { %27 = vst.msk [vmem:[#allocation2 + $0x30] sm:$0xff] %vm20_vm0, %v5041_v0  ;;  %28 = vst.msk [vmem:[#allocation2 + $0x38] sm:$0xff] %vm20_vm0, %v5041_v0  ;;  %v171_v7 = vld [vmem:[%s8957_s0 + $0x30] sm:$0xff]  ;;  %v172_v8 = vld [vmem:[%s8957_s0 + $0x38] sm:$0xff]  ;;  %vm3178_vm5 = vcmask 162816   ;;  %vm3243_vm6 = vcmask 195584  }
   0x5   :  { %29 = vst.msk [vmem:[#allocation2 + $0x40] sm:$0xff] %vm20_vm0, %v5041_v0  ;;  %30 = vst.msk [vmem:[#allocation2 + $0x48] sm:$0xff] %vm20_vm0, %v5041_v0  ;;  %v173_v9 = vld [vmem:[%s8957_s0 + $0x40] sm:$0xff]  ;;  %v174_v10 = vld [vmem:[%s8957_s0 + $0x48] sm:$0xff]  ;;  %vm3308_vm7 = vcmask 228352   ;;  %vm3373_vm8 = vcmask 261120  }
   0x6   :  { %31 = vst.msk [vmem:[#allocation2 + $0x50] sm:$0xff] %vm20_vm0, %v5041_v0  ;;  %32 = vst.msk [vmem:[#allocation2 + $0x58] sm:$0xff] %vm20_vm0, %v5041_v0  ;;  %v175_v11 = vld [vmem:[%s8957_s0 + $0x50] sm:$0xff]  ;;  %v176_v12 = vld [vmem:[%s8957_s0 + $0x58] sm:$0xff]  ;;  %vm3465_vm9 = vcmask 293888   ;;  %s5051_s19 = smov 120  }
   0x7   :  { %33 = vst.msk [vmem:[#allocation2 + $0x60] sm:$0xff] %vm20_vm0, %v5041_v0  ;;  %34 = vst.msk [vmem:[#allocation2 + $0x68] sm:$0xff] %vm20_vm0, %v5041_v0  ;;  %v177_v13 = vld [vmem:[%s8957_s0 + $0x60] sm:$0xff]  ;;  %v178_v14 = vld [vmem:[%s8957_s0 + $0x68] sm:$0xff]  ;;  %s5052_s20 = smov 116  }
   0x8   :  { %35 = vst.msk [vmem:[#allocation2 + $0x70] sm:$0xff] %vm20_vm0, %v5041_v0  ;;  %36 = vst.msk [vmem:[#allocation2 + $0x78] sm:$0xff] %vm20_vm0, %v5041_v0  ;;  %v179_v15 = vld [vmem:[%s8957_s0 + $0x70] sm:$0xff]  ;;  %v180_v16 = vld [vmem:[%s8957_s0 + $0x78] sm:$0xff] }
   0x9   :  { %37 = vst.msk [vmem:[#allocation2 + $0x80] sm:$0xff] %vm20_vm0, %v5041_v0  ;;  %38 = vst.msk [vmem:[#allocation2 + $0x88] sm:$0xff] %vm20_vm0, %v5041_v0  ;;  %v181_v17 = vld [vmem:[%s8957_s0 + $0x80] sm:$0xff]  ;;  %v182_v18 = vld [vmem:[%s8957_s0 + $0x88] sm:$0xff] }
   0xa   :  { %39 = vst.msk [vmem:[#allocation2 + $0x90] sm:$0xff] %vm20_vm0, %v5041_v0  ;;  %40 = vst.msk [vmem:[#allocation2 + $0x98] sm:$0xff] %vm20_vm0, %v5041_v0  ;;  %v183_v19 = vld [vmem:[%s8957_s0 + $0x90] sm:$0xff]  ;;  %v184_v20 = vld [vmem:[%s8957_s0 + $0x98] sm:$0xff] }
   0xb   :  { %41 = vst.msk [vmem:[#allocation2 + $0xa0] sm:$0xff] %vm20_vm0, %v5041_v0  ;;  %42 = vst.msk [vmem:[#allocation2 + $0xa8] sm:$0xff] %vm20_vm0, %v5041_v0  ;;  %v185_v21 = vld [vmem:[%s8957_s0 + $0xa0] sm:$0xff]  ;;  %v358_v22 = vld [vmem:[#allocation2 + $0x8] sm:$0xff] }
   0xc   :  { %43 = vst.msk [vmem:[#allocation2 + $0xb0] sm:$0xff] %vm20_vm0, %v5041_v0  ;;  %44 = vst.msk [vmem:[#allocation2 + $0xb8] sm:$0xff] %vm20_vm0, %v5041_v0  ;;  %v186_v23 = vld [vmem:[%s8957_s0 + $0xa8] sm:$0xff]  ;;  %935 = vrot.lane.b32.xlu0 %v358_v22, %s5042_s12  ;;  %v359_v25 = vld [vmem:[#allocation2 + $0x10] sm:$0xff] }
   0xd   :  { %45 = vst.msk [vmem:[#allocation2 + $0xc0] sm:$0xff] %vm20_vm0, %v5041_v0  ;;  %46 = vst.msk [vmem:[#allocation2 + $0xc8] sm:$0xff] %vm20_vm0, %v5041_v0  ;;  %v187_v30 = vld [vmem:[%s8957_s0 + $0xb0] sm:$0xff]  ;;  %v188_v31 = vld [vmem:[%s8957_s0 + $0xb8] sm:$0xff] }
   0xe   :  { %47 = vst.msk [vmem:[#allocation2 + $0xd0] sm:$0xff] %vm20_vm0, %v5041_v0  ;;  %48 = vst.msk [vmem:[#allocation2 + $0xd8] sm:$0xff] %vm20_vm0, %v5041_v0  ;;  %v189_v32 = vld [vmem:[%s8957_s0 + $0xc0] sm:$0xff]  ;;  %v190_v33 = vld [vmem:[%s8957_s0 + $0xc8] sm:$0xff] }
   0xf   :  { %49 = vst.msk [vmem:[#allocation2 + $0xe0] sm:$0xff] %vm20_vm0, %v5041_v0  ;;  %50 = vst.msk [vmem:[#allocation2 + $0xe8] sm:$0xff] %vm20_vm0, %v5041_v0  ;;  %v191_v34 = vld [vmem:[%s8957_s0 + $0xd0] sm:$0xff]  ;;  %v192_v35 = vld [vmem:[%s8957_s0 + $0xd8] sm:$0xff] }
  0x10   :  { %51 = vst.msk [vmem:[#allocation2 + $0xf0] sm:$0xff] %vm20_vm0, %v5041_v0  ;;  %52 = vst.msk [vmem:[#allocation2 + $0xf8] sm:$0xff] %vm20_vm0, %v5041_v0  ;;  %937 = vrot.lane.b32.xlu0 %v359_v25, %s5042_s12  ;;  %v193_v36 = vld [vmem:[%s8957_s0 + $0xe0] sm:$0xff]  ;;  %v194_v37 = vld [vmem:[%s8957_s0 + $0xe8] sm:$0xff] }
  0x11   :  { %53 = vst.msk [vmem:[#allocation2 + $0x100] sm:$0xff] %vm20_vm0, %v5041_v0  ;;  %54 = vst.msk [vmem:[#allocation2 + $0x108] sm:$0xff] %vm20_vm0, %v5041_v0  ;;  %v197_v39 = vld [vmem:[%s8957_s0 + $0x100] sm:$0xff]  ;;  %v198_v41 = vld [vmem:[%s8957_s0 + $0x108] sm:$0xff] }
  0x12   :  { %55 = vst.msk [vmem:[#allocation2 + $0x110] sm:$0xff] %vm20_vm0, %v5041_v0  ;;  %56 = vst.msk [vmem:[#allocation2 + $0x118] sm:$0xff] %vm20_vm0, %v5041_v0  ;;  %v199_v42 = vld [vmem:[%s8957_s0 + $0x110] sm:$0xff]  ;;  %v200_v43 = vld [vmem:[%s8957_s0 + $0x118] sm:$0xff] }
  0x13   :  { %57 = vst.msk [vmem:[#allocation2 + $0x120] sm:$0xff] %vm20_vm0, %v5041_v0  ;;  %58 = vst.msk [vmem:[#allocation2 + $0x128] sm:$0xff] %vm20_vm0, %v5041_v0  ;;  %v201_v45 = vld [vmem:[%s8957_s0 + $0x120] sm:$0xff]  ;;  %v202_v46 = vld [vmem:[%s8957_s0 + $0x128] sm:$0xff] }
  0x14   :  { %59 = vst.msk [vmem:[#allocation2 + $0x130] sm:$0xff] %vm20_vm0, %v5041_v0  ;;  %60 = vst.msk [vmem:[#allocation2 + $0x138] sm:$0xff] %vm20_vm0, %v5041_v0  ;;  %v203_v47 = vld [vmem:[%s8957_s0 + $0x130] sm:$0xff]  ;;  %v204_v48 = vld [vmem:[%s8957_s0 + $0x138] sm:$0xff] }
  0x15   :  { %61 = vst.msk [vmem:[#allocation2 + $0x140] sm:$0xff] %vm20_vm0, %v5041_v0  ;;  %62 = vst.msk [vmem:[#allocation2 + $0x148] sm:$0xff] %vm20_vm0, %v5041_v0  ;;  %v205_v49 = vld [vmem:[%s8957_s0 + $0x140] sm:$0xff]  ;;  %v206_v50 = vld [vmem:[%s8957_s0 + $0x148] sm:$0xff] }
  0x16   :  { %63 = vst.msk [vmem:[#allocation2 + $0x150] sm:$0xff] %vm20_vm0, %v5041_v0  ;;  %64 = vst.msk [vmem:[#allocation2 + $0x158] sm:$0xff] %vm20_vm0, %v5041_v0  ;;  %v207_v51 = vld [vmem:[%s8957_s0 + $0x150] sm:$0xff]  ;;  %v208_v52 = vld [vmem:[%s8957_s0 + $0x158] sm:$0xff] }
  0x17   :  { %65 = vst.msk [vmem:[#allocation2 + $0x160] sm:$0xff] %vm20_vm0, %v5041_v0  ;;  %66 = vst.msk [vmem:[#allocation2 + $0x168] sm:$0xff] %vm20_vm0, %v5041_v0  ;;  %v209_v53 = vld [vmem:[%s8957_s0 + $0x160] sm:$0xff]  ;;  %v210_v54 = vld [vmem:[%s8957_s0 + $0x168] sm:$0xff] }
  0x18   :  { %67 = vst.msk [vmem:[#allocation2 + $0x170] sm:$0xff] %vm20_vm0, %v5041_v0  ;;  %68 = vst.msk [vmem:[#allocation2 + $0x178] sm:$0xff] %vm20_vm0, %v5041_v0  ;;  %v211_v57 = vld [vmem:[%s8957_s0 + $0x170] sm:$0xff]  ;;  %v212_v58 = vld [vmem:[%s8957_s0 + $0x178] sm:$0xff] }
  0x19   :  { %69 = vst.msk [vmem:[#allocation2 + $0x180] sm:$0xff] %vm20_vm0, %v5041_v0  ;;  %70 = vst.msk [vmem:[#allocation2 + $0x188] sm:$0xff] %vm20_vm0, %v5041_v0  ;;  %v213_v62 = vld [vmem:[%s8957_s0 + $0x180] sm:$0xff]  ;;  %v214_v63 = vld [vmem:[%s8957_s0 + $0x188] sm:$0xff] }
  0x1a   :  { %71 = vst.msk [vmem:[#allocation2 + $0x190] sm:$0xff] %vm20_vm0, %v5041_v0  ;;  %72 = vst.msk [vmem:[#allocation2 + $0x198] sm:$0xff] %vm20_vm0, %v5041_v0 }
  0x1b   :  { %73 = vst.msk [vmem:[#allocation2 + $0x1a0] sm:$0xff] %vm20_vm0, %v5041_v0  ;;  %74 = vst.msk [vmem:[#allocation2 + $0x1a8] sm:$0xff] %vm20_vm0, %v5041_v0 }
  0x1c   :  { %75 = vst.msk [vmem:[#allocation2 + $0x1b0] sm:$0xff] %vm20_vm0, %v5041_v0  ;;  %76 = vst.msk [vmem:[#allocation2 + $0x1b8] sm:$0xff] %vm20_vm0, %v5041_v0 }
  0x1d   :  { %77 = vst.msk [vmem:[#allocation2 + $0x1c0] sm:$0xff] %vm20_vm0, %v5041_v0  ;;  %78 = vst.msk [vmem:[#allocation2 + $0x1c8] sm:$0xff] %vm20_vm0, %v5041_v0 }
  0x1e   :  { %79 = vst.msk [vmem:[#allocation2 + $0x1d0] sm:$0xff] %vm20_vm0, %v5041_v0  ;;  %80 = vst.msk [vmem:[#allocation2 + $0x1d8] sm:$0xff] %vm20_vm0, %v5041_v0 }
  0x1f   :  { %81 = vst.msk [vmem:[#allocation2 + $0x1e0] sm:$0xff] %vm20_vm0, %v5041_v0  ;;  %82 = vst.msk [vmem:[#allocation2 + $0x1e8] sm:$0xff] %vm20_vm0, %v5041_v0 }
  0x20   :  { %83 = vst.msk [vmem:[#allocation2 + $0x1f0] sm:$0xff] %vm20_vm0, %v5041_v0  ;;  %84 = vst.msk [vmem:[#allocation2 + $0x1f8] sm:$0xff] %vm20_vm0, %v5041_v0 }
  0x21   :  { %85 = vst.msk [vmem:[#allocation2 + $0x200] sm:$0xff] %vm20_vm0, %v5041_v0  ;;  %86 = vst.msk [vmem:[#allocation2 + $0x208] sm:$0xff] %vm20_vm0, %v5041_v0 }
  0x22   :  { %87 = vst.msk [vmem:[#allocation2 + $0x210] sm:$0xff] %vm20_vm0, %v5041_v0  ;;  %88 = vst.msk [vmem:[#allocation2 + $0x218] sm:$0xff] %vm20_vm0, %v5041_v0 }
  0x23   :  { %89 = vst.msk [vmem:[#allocation2 + $0x220] sm:$0xff] %vm20_vm0, %v5041_v0  ;;  %90 = vst.msk [vmem:[#allocation2 + $0x228] sm:$0xff] %vm20_vm0, %v5041_v0 }
  0x24   :  { %91 = vst.msk [vmem:[#allocation2 + $0x230] sm:$0xff] %vm20_vm0, %v5041_v0  ;;  %92 = vst.msk [vmem:[#allocation2 + $0x238] sm:$0xff] %vm20_vm0, %v5041_v0 }
  0x25   :  { %93 = vst.msk [vmem:[#allocation2 + $0x240] sm:$0xff] %vm20_vm0, %v5041_v0  ;;  %94 = vst.msk [vmem:[#allocation2 + $0x248] sm:$0xff] %vm20_vm0, %v5041_v0 }
  0x26   :  { %95 = vst.msk [vmem:[#allocation2 + $0x250] sm:$0xff] %vm20_vm0, %v5041_v0  ;;  %96 = vst.msk [vmem:[#allocation2 + $0x258] sm:$0xff] %vm20_vm0, %v5041_v0 }
  0x27   :  { %97 = vst.msk [vmem:[#allocation2 + $0x260] sm:$0xff] %vm20_vm0, %v5041_v0  ;;  %98 = vst.msk [vmem:[#allocation2 + $0x268] sm:$0xff] %vm20_vm0, %v5041_v0 }
  0x28   :  { %99 = vst.msk [vmem:[#allocation2 + $0x270] sm:$0xff] %vm20_vm0, %v5041_v0  ;;  %100 = vst.msk [vmem:[#allocation2 + $0x278] sm:$0xff] %vm20_vm0, %v5041_v0 }
  0x29   :  { %101 = vst.msk [vmem:[#allocation2 + $0x280] sm:$0xff] %vm20_vm0, %v5041_v0  ;;  %102 = vst.msk [vmem:[#allocation2 + $0x288] sm:$0xff] %vm20_vm0, %v5041_v0 }
  0x2a   :  { %103 = vst.msk [vmem:[#allocation2 + $0x290] sm:$0xff] %vm20_vm0, %v5041_v0  ;;  %104 = vst.msk [vmem:[#allocation2 + $0x298] sm:$0xff] %vm20_vm0, %v5041_v0 }
  0x2b   :  { %105 = vst.msk [vmem:[#allocation2 + $0x2a0] sm:$0xff] %vm20_vm0, %v5041_v0  ;;  %106 = vst.msk [vmem:[#allocation2 + $0x2a8] sm:$0xff] %vm20_vm0, %v5041_v0 }
  0x2c   :  { %107 = vst.msk [vmem:[#allocation2 + $0x2b0] sm:$0xff] %vm20_vm0, %v5041_v0  ;;  %108 = vst.msk [vmem:[#allocation2 + $0x2b8] sm:$0xff] %vm20_vm0, %v5041_v0 }
  0x2d   :  { %109 = vst.msk [vmem:[#allocation2 + $0x2c0] sm:$0xff] %vm20_vm0, %v5041_v0  ;;  %110 = vst.msk [vmem:[#allocation2 + $0x2c8] sm:$0xff] %vm20_vm0, %v5041_v0 }
  0x2e   :  { %111 = vst.msk [vmem:[#allocation2 + $0x2d0] sm:$0xff] %vm20_vm0, %v5041_v0  ;;  %112 = vst.msk [vmem:[#allocation2 + $0x2d8] sm:$0xff] %vm20_vm0, %v5041_v0 }
  0x2f   :  { %113 = vst.msk [vmem:[#allocation2 + $0x2e0] sm:$0xff] %vm20_vm0, %v5041_v0  ;;  %114 = vst.msk [vmem:[#allocation2 + $0x2e8] sm:$0xff] %vm20_vm0, %v5041_v0 }
  0x30   :  { %115 = vst.msk [vmem:[#allocation2 + $0x2f0] sm:$0xff] %vm20_vm0, %v5041_v0  ;;  %116 = vst.msk [vmem:[#allocation2 + $0x2f8] sm:$0xff] %vm20_vm0, %v5041_v0 }
  0x31   :  { %117 = vst.msk [vmem:[#allocation2 + $0x300] sm:$0xff] %vm20_vm0, %v5041_v0  ;;  %118 = vst.msk [vmem:[#allocation2 + $0x308] sm:$0xff] %vm20_vm0, %v5041_v0 }
  0x32   :  { %119 = vst.msk [vmem:[#allocation2 + $0x310] sm:$0xff] %vm20_vm0, %v5041_v0  ;;  %120 = vst.msk [vmem:[#allocation2 + $0x318] sm:$0xff] %vm20_vm0, %v5041_v0 }
  0x33   :  { %121 = vst.msk [vmem:[#allocation2 + $0x320] sm:$0xff] %vm20_vm0, %v5041_v0  ;;  %122 = vst.msk [vmem:[#allocation2 + $0x328] sm:$0xff] %vm20_vm0, %v5041_v0 }
  0x34   :  { %123 = vst.msk [vmem:[#allocation2 + $0x330] sm:$0xff] %vm20_vm0, %v5041_v0  ;;  %124 = vst.msk [vmem:[#allocation2 + $0x338] sm:$0xff] %vm20_vm0, %v5041_v0 }
  0x35   :  { %125 = vst.msk [vmem:[#allocation2 + $0x340] sm:$0xff] %vm20_vm0, %v5041_v0  ;;  %126 = vst.msk [vmem:[#allocation2 + $0x348] sm:$0xff] %vm20_vm0, %v5041_v0 }
  0x36   :  { %127 = vst.msk [vmem:[#allocation2 + $0x350] sm:$0xff] %vm20_vm0, %v5041_v0  ;;  %128 = vst.msk [vmem:[#allocation2 + $0x358] sm:$0xff] %vm20_vm0, %v5041_v0 }
  0x37   :  { %129 = vst.msk [vmem:[#allocation2 + $0x360] sm:$0xff] %vm20_vm0, %v5041_v0  ;;  %130 = vst.msk [vmem:[#allocation2 + $0x368] sm:$0xff] %vm20_vm0, %v5041_v0 }
  0x38   :  { %131 = vst.msk [vmem:[#allocation2 + $0x370] sm:$0xff] %vm20_vm0, %v5041_v0  ;;  %132 = vst.msk [vmem:[#allocation2 + $0x378] sm:$0xff] %vm20_vm0, %v5041_v0 }
  0x39   :  { %133 = vst.msk [vmem:[#allocation2 + $0x380] sm:$0xff] %vm20_vm0, %v5041_v0  ;;  %134 = vst.msk [vmem:[#allocation2 + $0x388] sm:$0xff] %vm20_vm0, %v5041_v0 }
  0x3a   :  { %135 = vst.msk [vmem:[#allocation2 + $0x390] sm:$0xff] %vm20_vm0, %v5041_v0  ;;  %136 = vst.msk [vmem:[#allocation2 + $0x398] sm:$0xff] %vm20_vm0, %v5041_v0 }
  0x3b   :  { %137 = vst.msk [vmem:[#allocation2 + $0x3a0] sm:$0xff] %vm20_vm0, %v5041_v0  ;;  %138 = vst.msk [vmem:[#allocation2 + $0x3a8] sm:$0xff] %vm20_vm0, %v5041_v0 }
  0x3c   :  { %139 = vst.msk [vmem:[#allocation2 + $0x3b0] sm:$0xff] %vm20_vm0, %v5041_v0  ;;  %140 = vst.msk [vmem:[#allocation2 + $0x3b8] sm:$0xff] %vm20_vm0, %v5041_v0 }
  0x3d   :  { %141 = vst.msk [vmem:[#allocation2 + $0x3c0] sm:$0xff] %vm20_vm0, %v5041_v0  ;;  %142 = vst.msk [vmem:[#allocation2 + $0x3c8] sm:$0xff] %vm20_vm0, %v5041_v0 }
  0x3e   :  { %143 = vst.msk [vmem:[#allocation2 + $0x3d0] sm:$0xff] %vm20_vm0, %v5041_v0  ;;  %144 = vst.msk [vmem:[#allocation2 + $0x3d8] sm:$0xff] %vm20_vm0, %v5041_v0 }
  0x3f   :  { %145 = vst.msk [vmem:[#allocation2 + $0x3e0] sm:$0xff] %vm20_vm0, %v5041_v0  ;;  %146 = vst.msk [vmem:[#allocation2 + $0x3e8] sm:$0xff] %vm20_vm0, %v5041_v0 }
  0x40   :  { %147 = vst.msk [vmem:[#allocation2 + $0x3f0] sm:$0xff] %vm20_vm0, %v5041_v0  ;;  %148 = vst.msk [vmem:[#allocation2 + $0x3f8] sm:$0xff] %vm20_vm0, %v5041_v0 }
  0x41   :  { %149 = vst.msk [vmem:[#allocation2 + $0x400] sm:$0xff] %vm20_vm0, %v5041_v0  ;;  %150 = vst.msk [vmem:[#allocation2 + $0x408] sm:$0xff] %vm20_vm0, %v5041_v0 }
  0x42   :  { %151 = vst.msk [vmem:[#allocation2 + $0x410] sm:$0xff] %vm20_vm0, %v5041_v0  ;;  %152 = vst.msk [vmem:[#allocation2 + $0x418] sm:$0xff] %vm20_vm0, %v5041_v0 }
  0x43   :  { %153 = vst.msk [vmem:[#allocation2 + $0x420] sm:$0xff] %vm20_vm0, %v5041_v0  ;;  %154 = vst.msk [vmem:[#allocation2 + $0x428] sm:$0xff] %vm20_vm0, %v5041_v0 }
  0x44   :  { %155 = vst.msk [vmem:[#allocation2 + $0x430] sm:$0xff] %vm20_vm0, %v5041_v0  ;;  %156 = vst.msk [vmem:[#allocation2 + $0x438] sm:$0xff] %vm20_vm0, %v5041_v0 }
  0x45   :  { %157 = vst.msk [vmem:[#allocation2 + $0x440] sm:$0xff] %vm20_vm0, %v5041_v0  ;;  %158 = vst.msk [vmem:[#allocation2 + $0x448] sm:$0xff] %vm20_vm0, %v5041_v0 }
  0x46   :  { %159 = vst.msk [vmem:[#allocation2 + $0x450] sm:$0xff] %vm20_vm0, %v5041_v0  ;;  %160 = vst.msk [vmem:[#allocation2 + $0x458] sm:$0xff] %vm20_vm0, %v5041_v0 }
  0x47   :  { %161 = vst.msk [vmem:[#allocation2 + $0x460] sm:$0xff] %vm20_vm0, %v5041_v0  ;;  %162 = vst.msk [vmem:[#allocation2 + $0x468] sm:$0xff] %vm20_vm0, %v5041_v0 }
  0x48   :  { %163 = vst.msk [vmem:[#allocation2 + $0x470] sm:$0xff] %vm20_vm0, %v5041_v0  ;;  %164 = vst.msk [vmem:[#allocation2 + $0x478] sm:$0xff] %vm20_vm0, %v5041_v0  ;;  %v215_v0 = vld [vmem:[%s8957_s0 + $0x190] sm:$0xff] }
  0x49   :  { %230 = vst.msk [vmem:[#allocation2 + $0x28] sm:$0xff] %vm20_vm0, %v165_v1  ;;  %231 = vst.msk [vmem:[#allocation2 + $0x30] sm:$0xff] %vm20_vm0, %v166_v2  ;;  %v216_v1 = vld [vmem:[%s8957_s0 + $0x198] sm:$0xff]  ;;  %v217_v2 = vld [vmem:[%s8957_s0 + $0x1a0] sm:$0xff] }
  0x4a   :  { %232 = vst.msk [vmem:[#allocation2 + $0x48] sm:$0xff] %vm20_vm0, %v167_v3  ;;  %233 = vst.msk [vmem:[#allocation2 + $0x50] sm:$0xff] %vm20_vm0, %v168_v4  ;;  %v218_v3 = vld [vmem:[%s8957_s0 + $0x1a8] sm:$0xff]  ;;  %v219_v4 = vld [vmem:[%s8957_s0 + $0x1b0] sm:$0xff] }
  0x4b   :  { %234 = vst.msk [vmem:[#allocation2 + $0x68] sm:$0xff] %vm20_vm0, %v169_v5  ;;  %235 = vst.msk [vmem:[#allocation2 + $0x70] sm:$0xff] %vm20_vm0, %v170_v6  ;;  %v220_v5 = vld [vmem:[%s8957_s0 + $0x1b8] sm:$0xff] }
  0x4c   :  { %236 = vst.msk [vmem:[#allocation2 + $0x88] sm:$0xff] %vm20_vm0, %v171_v7  ;;  %237 = vst.msk [vmem:[#allocation2 + $0x90] sm:$0xff] %vm20_vm0, %v172_v8  ;;  %v221_v7 = vld [vmem:[%s8957_s0 + $0x1c0] sm:$0xff]  ;;  %v222_v8 = vld [vmem:[%s8957_s0 + $0x1c8] sm:$0xff] }
  0x4d   :  { %238 = vst.msk [vmem:[#allocation2 + $0xa8] sm:$0xff] %vm20_vm0, %v173_v9  ;;  %239 = vst.msk [vmem:[#allocation2 + $0xb0] sm:$0xff] %vm20_vm0, %v174_v10  ;;  %v223_v9 = vld [vmem:[%s8957_s0 + $0x1d0] sm:$0xff] }
  0x4e   :  { %240 = vst.msk [vmem:[#allocation2 + $0xc8] sm:$0xff] %vm20_vm0, %v175_v11  ;;  %241 = vst.msk [vmem:[#allocation2 + $0xd0] sm:$0xff] %vm20_vm0, %v176_v12  ;;  %v224_v11 = vld [vmem:[%s8957_s0 + $0x1d8] sm:$0xff] }
  0x4f   :  { %242 = vst.msk [vmem:[#allocation2 + $0xe8] sm:$0xff] %vm20_vm0, %v177_v13  ;;  %243 = vst.msk [vmem:[#allocation2 + $0xf0] sm:$0xff] %vm20_vm0, %v178_v14  ;;  %v225_v13 = vld [vmem:[%s8957_s0 + $0x1e0] sm:$0xff]  ;;  %v226_v14 = vld [vmem:[%s8957_s0 + $0x1e8] sm:$0xff] }
  0x50   :  { %244 = vst.msk [vmem:[#allocation2 + $0x108] sm:$0xff] %vm20_vm0, %v179_v15  ;;  %245 = vst.msk [vmem:[#allocation2 + $0x110] sm:$0xff] %vm20_vm0, %v180_v16  ;;  %v360_v24 = vld [vmem:[#allocation2 + $0x28] sm:$0xff]  ;;  %v361_v26 = vld [vmem:[#allocation2 + $0x30] sm:$0xff] }
  0x51   :  { %246 = vst.msk [vmem:[#allocation2 + $0x128] sm:$0xff] %vm20_vm0, %v181_v17  ;;  %247 = vst.msk [vmem:[#allocation2 + $0x130] sm:$0xff] %vm20_vm0, %v182_v18  ;;  %939 = vrot.lane.b32.xlu1 %v360_v24, %s5042_s12  ;;  %v362_v27 = vld [vmem:[#allocation2 + $0x48] sm:$0xff]  ;;  %v363_v28 = vld [vmem:[#allocation2 + $0x50] sm:$0xff] }
  0x52   :  { %248 = vst.msk [vmem:[#allocation2 + $0x148] sm:$0xff] %vm20_vm0, %v183_v19  ;;  %249 = vst.msk [vmem:[#allocation2 + $0x150] sm:$0xff] %vm20_vm0, %v184_v20  ;;  %v364_v29 = vld [vmem:[#allocation2 + $0x68] sm:$0xff]  ;;  %943 = vrot.lane.b32.xlu0 %v362_v27, %s5042_s12  ;;  %v365_v38 = vld [vmem:[#allocation2 + $0x70] sm:$0xff] }
  0x53   :  { %250 = vst.msk [vmem:[#allocation2 + $0x168] sm:$0xff] %vm20_vm0, %v185_v21  ;;  %251 = vst.msk [vmem:[#allocation2 + $0x170] sm:$0xff] %vm20_vm0, %v186_v23  ;;  %v366_v40 = vld [vmem:[#allocation2 + $0x88] sm:$0xff]  ;;  %v367_v44 = vld [vmem:[#allocation2 + $0x90] sm:$0xff] }
  0x54   :  { %252 = vst.msk [vmem:[#allocation2 + $0x188] sm:$0xff] %vm20_vm0, %v187_v30  ;;  %253 = vst.msk [vmem:[#allocation2 + $0x190] sm:$0xff] %vm20_vm0, %v188_v31  ;;  %v368_v55 = vld [vmem:[#allocation2 + $0xa8] sm:$0xff]  ;;  %v369_v56 = vld [vmem:[#allocation2 + $0xb0] sm:$0xff] }
  0x55   :  { %941 = vrot.lane.b32.xlu1 %v361_v26, %s5042_s12  ;;  %254 = vst.msk [vmem:[#allocation2 + $0x1a8] sm:$0xff] %vm20_vm0, %v189_v32  ;;  %255 = vst.msk [vmem:[#allocation2 + $0x1b0] sm:$0xff] %vm20_vm0, %v190_v33  ;;  %v370_v59 = vld [vmem:[#allocation2 + $0xc8] sm:$0xff]  ;;  %v371_v60 = vld [vmem:[#allocation2 + $0xd0] sm:$0xff] }
  0x56   :  { %256 = vst.msk [vmem:[#allocation2 + $0x1c8] sm:$0xff] %vm20_vm0, %v191_v34  ;;  %257 = vst.msk [vmem:[#allocation2 + $0x1d0] sm:$0xff] %vm20_vm0, %v192_v35  ;;  %947 = vrot.lane.b32.xlu0 %v364_v29, %s5042_s12  ;;  %v372_v61 = vld [vmem:[#allocation2 + $0xe8] sm:$0xff]  ;;  %v373_v6 = vld [vmem:[#allocation2 + $0xf0] sm:$0xff] }
  0x57   :  { %258 = vst.msk [vmem:[#allocation2 + $0x1e8] sm:$0xff] %vm20_vm0, %v193_v36  ;;  %259 = vst.msk [vmem:[#allocation2 + $0x1f0] sm:$0xff] %vm20_vm0, %v194_v37  ;;  %v374_v10 = vld [vmem:[#allocation2 + $0x108] sm:$0xff]  ;;  %v375_v12 = vld [vmem:[#allocation2 + $0x110] sm:$0xff] }
  0x58   :  { %262 = vst.msk [vmem:[#allocation2 + $0x268] sm:$0xff] %vm20_vm0, %v197_v39  ;;  %263 = vst.msk [vmem:[#allocation2 + $0x270] sm:$0xff] %vm20_vm0, %v198_v41  ;;  %v376_v15 = vld [vmem:[#allocation2 + $0x128] sm:$0xff]  ;;  %v377_v16 = vld [vmem:[#allocation2 + $0x130] sm:$0xff] }
  0x59   :  { %945 = vrot.lane.b32.xlu1 %v363_v28, %s5042_s12  ;;  %264 = vst.msk [vmem:[#allocation2 + $0x288] sm:$0xff] %vm20_vm0, %v199_v42  ;;  %265 = vst.msk [vmem:[#allocation2 + $0x290] sm:$0xff] %vm20_vm0, %v200_v43  ;;  %v378_v17 = vld [vmem:[#allocation2 + $0x148] sm:$0xff]  ;;  %v379_v18 = vld [vmem:[#allocation2 + $0x150] sm:$0xff] }
  0x5a   :  { %266 = vst.msk [vmem:[#allocation2 + $0x2a8] sm:$0xff] %vm20_vm0, %v201_v45  ;;  %267 = vst.msk [vmem:[#allocation2 + $0x2b0] sm:$0xff] %vm20_vm0, %v202_v46  ;;  %951 = vrot.lane.b32.xlu0 %v366_v40, %s5042_s12  ;;  %v380_v19 = vld [vmem:[#allocation2 + $0x168] sm:$0xff]  ;;  %v381_v20 = vld [vmem:[#allocation2 + $0x170] sm:$0xff] }
  0x5b   :  { %268 = vst.msk [vmem:[#allocation2 + $0x2c8] sm:$0xff] %vm20_vm0, %v203_v47  ;;  %269 = vst.msk [vmem:[#allocation2 + $0x2d0] sm:$0xff] %vm20_vm0, %v204_v48  ;;  %v382_v21 = vld [vmem:[#allocation2 + $0x188] sm:$0xff]  ;;  %v383_v22 = vld [vmem:[#allocation2 + $0x190] sm:$0xff] }
  0x5c   :  { %270 = vst.msk [vmem:[#allocation2 + $0x2e8] sm:$0xff] %vm20_vm0, %v205_v49  ;;  %271 = vst.msk [vmem:[#allocation2 + $0x2f0] sm:$0xff] %vm20_vm0, %v206_v50  ;;  %v384_v23 = vld [vmem:[#allocation2 + $0x1a8] sm:$0xff]  ;;  %v385_v24 = vld [vmem:[#allocation2 + $0x1b0] sm:$0xff] }
  0x5d   :  { %949 = vrot.lane.b32.xlu1 %v365_v38, %s5042_s12  ;;  %272 = vst.msk [vmem:[#allocation2 + $0x308] sm:$0xff] %vm20_vm0, %v207_v51  ;;  %273 = vst.msk [vmem:[#allocation2 + $0x310] sm:$0xff] %vm20_vm0, %v208_v52  ;;  %v386_v25 = vld [vmem:[#allocation2 + $0x1c8] sm:$0xff]  ;;  %v387_v26 = vld [vmem:[#allocation2 + $0x1d0] sm:$0xff] }
  0x5e   :  { %274 = vst.msk [vmem:[#allocation2 + $0x328] sm:$0xff] %vm20_vm0, %v209_v53  ;;  %275 = vst.msk [vmem:[#allocation2 + $0x330] sm:$0xff] %vm20_vm0, %v210_v54  ;;  %955 = vrot.lane.b32.xlu0 %v368_v55, %s5042_s12  ;;  %v388_v27 = vld [vmem:[#allocation2 + $0x1e8] sm:$0xff]  ;;  %v389_v28 = vld [vmem:[#allocation2 + $0x1f0] sm:$0xff] }
  0x5f   :  { %276 = vst.msk [vmem:[#allocation2 + $0x348] sm:$0xff] %vm20_vm0, %v211_v57  ;;  %277 = vst.msk [vmem:[#allocation2 + $0x350] sm:$0xff] %vm20_vm0, %v212_v58  ;;  %v390_v29 = vld [vmem:[#allocation2 + $0x248] sm:$0xff]  ;;  %v391_v30 = vld [vmem:[#allocation2 + $0x250] sm:$0xff] }
  0x60   :  { %278 = vst.msk [vmem:[#allocation2 + $0x368] sm:$0xff] %vm20_vm0, %v213_v62  ;;  %279 = vst.msk [vmem:[#allocation2 + $0x370] sm:$0xff] %vm20_vm0, %v214_v63  ;;  %v392_v31 = vld [vmem:[#allocation2 + $0x268] sm:$0xff]  ;;  %v393_v32 = vld [vmem:[#allocation2 + $0x270] sm:$0xff] }
  0x61   :  { %953 = vrot.lane.b32.xlu1 %v367_v44, %s5042_s12  ;;  %280 = vst.msk [vmem:[#allocation2 + $0x388] sm:$0xff] %vm20_vm0, %v215_v0  ;;  %281 = vst.msk [vmem:[#allocation2 + $0x390] sm:$0xff] %vm20_vm0, %v216_v1  ;;  %v394_v33 = vld [vmem:[#allocation2 + $0x288] sm:$0xff]  ;;  %v395_v34 = vld [vmem:[#allocation2 + $0x290] sm:$0xff] }
  0x62   :  { %959 = vrot.lane.b32.xlu0 %v370_v59, %s5042_s12  ;;  %282 = vst.msk [vmem:[#allocation2 + $0x3a8] sm:$0xff] %vm20_vm0, %v217_v2  ;;  %283 = vst.msk [vmem:[#allocation2 + $0x3b0] sm:$0xff] %vm20_vm0, %v218_v3  ;;  %v396_v35 = vld [vmem:[#allocation2 + $0x2a8] sm:$0xff]  ;;  %v397_v36 = vld [vmem:[#allocation2 + $0x2b0] sm:$0xff] }
  0x63   :  { %284 = vst.msk [vmem:[#allocation2 + $0x3c8] sm:$0xff] %vm20_vm0, %v219_v4  ;;  %285 = vst.msk [vmem:[#allocation2 + $0x3d0] sm:$0xff] %vm20_vm0, %v220_v5  ;;  %v398_v37 = vld [vmem:[#allocation2 + $0x2c8] sm:$0xff]  ;;  %v399_v38 = vld [vmem:[#allocation2 + $0x2d0] sm:$0xff] }
  0x64   :  { %286 = vst.msk [vmem:[#allocation2 + $0x3e8] sm:$0xff] %vm20_vm0, %v221_v7  ;;  %287 = vst.msk [vmem:[#allocation2 + $0x3f0] sm:$0xff] %vm20_vm0, %v222_v8  ;;  %v400_v39 = vld [vmem:[#allocation2 + $0x2e8] sm:$0xff]  ;;  %v401_v40 = vld [vmem:[#allocation2 + $0x2f0] sm:$0xff] }
  0x65   :  { %957 = vrot.lane.b32.xlu1 %v369_v56, %s5042_s12  ;;  %288 = vst.msk [vmem:[#allocation2 + $0x408] sm:$0xff] %vm20_vm0, %v223_v9  ;;  %289 = vst.msk [vmem:[#allocation2 + $0x410] sm:$0xff] %vm20_vm0, %v224_v11  ;;  %v402_v41 = vld [vmem:[#allocation2 + $0x308] sm:$0xff]  ;;  %v403_v42 = vld [vmem:[#allocation2 + $0x310] sm:$0xff] }
  0x66   :  { %963 = vrot.lane.b32.xlu0 %v372_v61, %s5042_s12  ;;  %290 = vst.msk [vmem:[#allocation2 + $0x428] sm:$0xff] %vm20_vm0, %v225_v13  ;;  %291 = vst.msk [vmem:[#allocation2 + $0x430] sm:$0xff] %vm20_vm0, %v226_v14  ;;  %v404_v43 = vld [vmem:[#allocation2 + $0x328] sm:$0xff]  ;;  %v405_v44 = vld [vmem:[#allocation2 + $0x330] sm:$0xff] }
  0x67   :  { %v406_v45 = vld [vmem:[#allocation2 + $0x348] sm:$0xff]  ;;  %v407_v46 = vld [vmem:[#allocation2 + $0x350] sm:$0xff] }
  0x68   :  { %v408_v47 = vld [vmem:[#allocation2 + $0x368] sm:$0xff]  ;;  %v409_v48 = vld [vmem:[#allocation2 + $0x370] sm:$0xff] }
  0x69   :  { %961 = vrot.lane.b32.xlu1 %v371_v60, %s5042_s12  ;;  %v410_v49 = vld [vmem:[#allocation2 + $0x388] sm:$0xff]  ;;  %v411_v50 = vld [vmem:[#allocation2 + $0x390] sm:$0xff] }
  0x6a   :  { %967 = vrot.lane.b32.xlu0 %v374_v10, %s5042_s12  ;;  %v412_v51 = vld [vmem:[#allocation2 + $0x3a8] sm:$0xff]  ;;  %v413_v52 = vld [vmem:[#allocation2 + $0x3b0] sm:$0xff] }
  0x6b   :  { %v414_v53 = vld [vmem:[#allocation2 + $0x3c8] sm:$0xff]  ;;  %v415_v54 = vld [vmem:[#allocation2 + $0x3d0] sm:$0xff] }
  0x6c   :  { %v416_v55 = vld [vmem:[#allocation2 + $0x3e8] sm:$0xff]  ;;  %v417_v57 = vld [vmem:[#allocation2 + $0x3f0] sm:$0xff] }
  0x6d   :  { %965 = vrot.lane.b32.xlu1 %v373_v6, %s5042_s12  ;;  %v418_v59 = vld [vmem:[#allocation2 + $0x408] sm:$0xff]  ;;  %v419_v61 = vld [vmem:[#allocation2 + $0x410] sm:$0xff] }
  0x6e   :  { %971 = vrot.lane.b32.xlu0 %v376_v15, %s5042_s12  ;;  %v420_v63 = vld [vmem:[#allocation2 + $0x428] sm:$0xff]  ;;  %v421_v1 = vld [vmem:[#allocation2 + $0x430] sm:$0xff] }
  0x6f   :  { %v422_v3 = vld [vmem:[#allocation2 + $0x9] sm:$0xff]  ;;  %v423_v5 = vld [vmem:[#allocation2 + $0x11] sm:$0xff] }
  0x70   :  { %v424_v7 = vld [vmem:[#allocation2 + $0x29] sm:$0xff]  ;;  %v425_v9 = vld [vmem:[#allocation2 + $0x31] sm:$0xff] }
  0x71   :  { %969 = vrot.lane.b32.xlu1 %v375_v12, %s5042_s12  ;;  %v426_v11 = vld [vmem:[#allocation2 + $0x49] sm:$0xff]  ;;  %v427_v13 = vld [vmem:[#allocation2 + $0x51] sm:$0xff] }
  0x72   :  { %975 = vrot.lane.b32.xlu0 %v378_v17, %s5042_s12  ;;  %v428_v15 = vld [vmem:[#allocation2 + $0x69] sm:$0xff]  ;;  %v429_v17 = vld [vmem:[#allocation2 + $0x71] sm:$0xff] }
  0x75   :  { %973 = vrot.lane.b32.xlu1 %v377_v16, %s5042_s12 }
  0x76   :  { %979 = vrot.lane.b32.xlu0 %v380_v19, %s5042_s12  ;;  %v430_v19 = vld [vmem:[#allocation2 + $0x89] sm:$0xff] }
  0x79   :  { %977 = vrot.lane.b32.xlu1 %v379_v18, %s5042_s12 }
  0x7a   :  { %983 = vrot.lane.b32.xlu0 %v382_v21, %s5042_s12  ;;  %v431_v21 = vld [vmem:[#allocation2 + $0x91] sm:$0xff] }
  0x7d   :  { %981 = vrot.lane.b32.xlu1 %v381_v20, %s5042_s12 }
  0x7e   :  { %987 = vrot.lane.b32.xlu0 %v384_v23, %s5042_s12  ;;  %v5669_v56 = vpop.permute.xlu0 %935  ;;  %v432_v23 = vld [vmem:[#allocation2 + $0xa9] sm:$0xff] }
  0x81   :  { %985 = vrot.lane.b32.xlu1 %v383_v22, %s5042_s12 }
  0x82   :  { %991 = vrot.lane.b32.xlu0 %v386_v25, %s5042_s12  ;;  %v5675_v60 = vpop.permute.xlu0 %937  ;;  %v433_v25 = vld [vmem:[#allocation2 + $0xb1] sm:$0xff] }
  0x85   :  { %989 = vrot.lane.b32.xlu1 %v385_v24, %s5042_s12 }
  0x86   :  { %995 = vrot.lane.b32.xlu0 %v388_v27, %s5042_s12  ;;  %v434_v27 = vld [vmem:[#allocation2 + $0xc9] sm:$0xff] }
  0x89   :  { %993 = vrot.lane.b32.xlu1 %v387_v26, %s5042_s12 }
  0x8a   :  { %999 = vrot.lane.b32.xlu0 %v390_v29, %s5042_s12  ;;  %v435_v29 = vld [vmem:[#allocation2 + $0xd1] sm:$0xff] }
  0x8d   :  { %997 = vrot.lane.b32.xlu1 %v389_v28, %s5042_s12 }
  0x8e   :  { %1003 = vrot.lane.b32.xlu0 %v392_v31, %s5042_s12  ;;  %v436_v31 = vld [vmem:[#allocation2 + $0xe9] sm:$0xff] }
  0x91   :  { %1001 = vrot.lane.b32.xlu1 %v391_v30, %s5042_s12 }
  0x92   :  { %1007 = vrot.lane.b32.xlu0 %v394_v33, %s5042_s12  ;;  %v437_v33 = vld [vmem:[#allocation2 + $0xf1] sm:$0xff] }
  0x95   :  { %1005 = vrot.lane.b32.xlu1 %v393_v32, %s5042_s12 }
  0x96   :  { %1011 = vrot.lane.b32.xlu0 %v396_v35, %s5042_s12  ;;  %v438_v35 = vld [vmem:[#allocation2 + $0x109] sm:$0xff] }
  0x99   :  { %1009 = vrot.lane.b32.xlu1 %v395_v34, %s5042_s12 }
  0x9a   :  { %1015 = vrot.lane.b32.xlu0 %v398_v37, %s5042_s12  ;;  %v439_v37 = vld [vmem:[#allocation2 + $0x111] sm:$0xff] }
  0x9d   :  { %1013 = vrot.lane.b32.xlu1 %v397_v36, %s5042_s12 }
  0x9e   :  { %1019 = vrot.lane.b32.xlu0 %v400_v39, %s5042_s12  ;;  %v440_v39 = vld [vmem:[#allocation2 + $0x129] sm:$0xff] }
  0xa1   :  { %1017 = vrot.lane.b32.xlu1 %v399_v38, %s5042_s12 }
  0xa2   :  { %1023 = vrot.lane.b32.xlu0 %v402_v41, %s5042_s12  ;;  %v441_v41 = vld [vmem:[#allocation2 + $0x131] sm:$0xff] }
  0xa5   :  { %1021 = vrot.lane.b32.xlu1 %v401_v40, %s5042_s12 }
  0xa6   :  { %1027 = vrot.lane.b32.xlu0 %v404_v43, %s5042_s12  ;;  %v442_v43 = vld [vmem:[#allocation2 + $0x149] sm:$0xff] }
  0xa9   :  { %1025 = vrot.lane.b32.xlu1 %v403_v42, %s5042_s12 }
  0xaa   :  { %1031 = vrot.lane.b32.xlu0 %v406_v45, %s5042_s12  ;;  %v443_v45 = vld [vmem:[#allocation2 + $0x151] sm:$0xff] }
  0xad   :  { %1029 = vrot.lane.b32.xlu1 %v405_v44, %s5042_s12 }
  0xae   :  { %1035 = vrot.lane.b32.xlu0 %v408_v47, %s5042_s12  ;;  %v444_v47 = vld [vmem:[#allocation2 + $0x169] sm:$0xff] }
  0xb1   :  { %1033 = vrot.lane.b32.xlu1 %v407_v46, %s5042_s12 }
  0xb2   :  { %1039 = vrot.lane.b32.xlu0 %v410_v49, %s5042_s12  ;;  %v445_v49 = vld [vmem:[#allocation2 + $0x171] sm:$0xff] }
  0xb5   :  { %1037 = vrot.lane.b32.xlu1 %v409_v48, %s5042_s12 }
  0xb6   :  { %1043 = vrot.lane.b32.xlu0 %v412_v51, %s5042_s12  ;;  %v446_v51 = vld [vmem:[#allocation2 + $0x189] sm:$0xff] }
  0xb9   :  { %1041 = vrot.lane.b32.xlu1 %v411_v50, %s5042_s12 }
  0xba   :  { %1047 = vrot.lane.b32.xlu0 %v414_v53, %s5042_s12  ;;  %v447_v53 = vld [vmem:[#allocation2 + $0x191] sm:$0xff] }
  0xbd   :  { %1045 = vrot.lane.b32.xlu1 %v413_v52, %s5042_s12 }
  0xbe   :  { %1051 = vrot.lane.b32.xlu0 %v416_v55, %s5042_s12  ;;  %v448_v55 = vld [vmem:[#allocation2 + $0x1a9] sm:$0xff] }
  0xc1   :  { %1049 = vrot.lane.b32.xlu1 %v415_v54, %s5042_s12 }
  0xc2   :  { %1055 = vrot.lane.b32.xlu0 %v418_v59, %s5042_s12  ;;  %v449_v59 = vld [vmem:[#allocation2 + $0x1b1] sm:$0xff] }
  0xc3   :  { %v5671_v58 = vpop.permute.xlu1 %939 }
  0xc4   :  { %v5681_v0 = vpop.permute.xlu0 %943 }
  0xc5   :  { %1053 = vrot.lane.b32.xlu1 %v417_v57, %s5042_s12 }
  0xc6   :  { %1059 = vrot.lane.b32.xlu0 %v420_v63, %s5042_s12  ;;  %v195_v63 = vld [vmem:[%s8957_s0 + $0xf0] sm:$0xff] }
  0xc7   :  { %v5677_v62 = vpop.permute.xlu1 %941  ;;  %260 = vst.msk [vmem:[#allocation2 + $0x208] sm:$0xff] %vm20_vm0, %v195_v63  ;;  %v464_v63 = vld [vmem:[#allocation2 + $0x2e9] sm:$0xff] }
  0xc8   :  { %v5687_v4 = vpop.permute.xlu0 %947 }
  0xc9   :  { %1057 = vrot.lane.b32.xlu1 %v419_v61, %s5042_s12 }
  0xca   :  { %1191 = vrot.lane.b32.xlu0 %v422_v3, %s5043_s17  ;;  %v450_v3 = vld [vmem:[#allocation2 + $0x1c9] sm:$0xff] }
  0xcb   :  { %v5683_v2 = vpop.permute.xlu1 %945 }
  0xcc   :  { %v5693_v8 = vpop.permute.xlu0 %951 }
  0xcd   :  { %1061 = vrot.lane.b32.xlu1 %v421_v1, %s5042_s12  ;;  %v196_v1 = vld [vmem:[%s8957_s0 + $0xf8] sm:$0xff] }
  0xce   :  { %1195 = vrot.lane.b32.xlu0 %v424_v7, %s5043_s17  ;;  %261 = vst.msk [vmem:[#allocation2 + $0x210] sm:$0xff] %vm20_vm0, %v196_v1  ;;  %v451_v7 = vld [vmem:[#allocation2 + $0x1d1] sm:$0xff] }
  0xcf   :  { %v5689_v6 = vpop.permute.xlu1 %949 }
  0xd0   :  { %v5699_v12 = vpop.permute.xlu0 %955 }
  0xd1   :  { %1193 = vrot.lane.b32.xlu1 %v423_v5, %s5043_s17  ;;  %8986 = vst [vmem:[#allocation3_spill] sm:$0xff] %v5699_v12 }
  0xd2   :  { %1199 = vrot.lane.b32.xlu0 %v426_v11, %s5043_s17  ;;  %v452_v11 = vld [vmem:[#allocation2 + $0x1e9] sm:$0xff] }
  0xd3   :  { %v5695_v10 = vpop.permute.xlu1 %953 }
  0xd4   :  { %v5705_v16 = vpop.permute.xlu0 %959 }
  0xd5   :  { %1197 = vrot.lane.b32.xlu1 %v425_v9, %s5043_s17  ;;  %8988 = vst [vmem:[#allocation5_spill] sm:$0xff] %v5705_v16 }
  0xd6   :  { %1203 = vrot.lane.b32.xlu0 %v428_v15, %s5043_s17  ;;  %v453_v15 = vld [vmem:[#allocation2 + $0x1f1] sm:$0xff] }
  0xd7   :  { %v5701_v14 = vpop.permute.xlu1 %957 }
  0xd8   :  { %8987 = vst [vmem:[#allocation4_spill] sm:$0xff] %v5701_v14  ;;  %v5711_v20 = vpop.permute.xlu0 %963  ;;  %v578_v14 = vld [vmem:[#allocation2 + $0x1e8] sm:$0xff] }
  0xd9   :  { %1201 = vrot.lane.b32.xlu1 %v427_v13, %s5043_s17  ;;  %8990 = vst [vmem:[#allocation7_spill] sm:$0xff] %v5711_v20 }
  0xda   :  { %1207 = vrot.lane.b32.xlu0 %v430_v19, %s5043_s17  ;;  %v454_v19 = vld [vmem:[#allocation2 + $0x249] sm:$0xff] }
  0xdb   :  { %v5707_v18 = vpop.permute.xlu1 %961 }
  0xdc   :  { %8989 = vst [vmem:[#allocation6_spill] sm:$0xff] %v5707_v18  ;;  %v5717_v24 = vpop.permute.xlu0 %967  ;;  %v6217_v18 = vld [vmem:[#allocation2 + $0x190] sm:$0xff] }
  0xdd   :  { %1205 = vrot.lane.b32.xlu1 %v429_v17, %s5043_s17  ;;  %8992 = vst [vmem:[#allocation9_spill] sm:$0xff] %v5717_v24 }
  0xde   :  { %1211 = vrot.lane.b32.xlu0 %v432_v23, %s5043_s17  ;;  %v455_v23 = vld [vmem:[#allocation2 + $0x251] sm:$0xff] }
  0xdf   :  { %v5713_v22 = vpop.permute.xlu1 %965 }
  0xe0   :  { %8991 = vst [vmem:[#allocation8_spill] sm:$0xff] %v5713_v22  ;;  %v5723_v28 = vpop.permute.xlu0 %971  ;;  %v6181_v22 = vld [vmem:[#allocation2 + $0x130] sm:$0xff] }
  0xe1   :  { %1209 = vrot.lane.b32.xlu1 %v431_v21, %s5043_s17  ;;  %8994 = vst [vmem:[#allocation11_spill] sm:$0xff] %v5723_v28 }
  0xe2   :  { %1215 = vrot.lane.b32.xlu0 %v434_v27, %s5043_s17  ;;  %v456_v27 = vld [vmem:[#allocation2 + $0x269] sm:$0xff] }
  0xe3   :  { %v5719_v26 = vpop.permute.xlu1 %969 }
  0xe4   :  { %8993 = vst [vmem:[#allocation10_spill] sm:$0xff] %v5719_v26  ;;  %v5729_v32 = vpop.permute.xlu0 %975 }
  0xe5   :  { %1213 = vrot.lane.b32.xlu1 %v433_v25, %s5043_s17  ;;  %8996 = vst [vmem:[#allocation13_spill] sm:$0xff] %v5729_v32 }
  0xe6   :  { %1219 = vrot.lane.b32.xlu0 %v436_v31, %s5043_s17  ;;  %v457_v31 = vld [vmem:[#allocation2 + $0x271] sm:$0xff] }
  0xe7   :  { %v5725_v30 = vpop.permute.xlu1 %973 }
  0xe8   :  { %8995 = vst [vmem:[#allocation12_spill] sm:$0xff] %v5725_v30  ;;  %v5735_v36 = vpop.permute.xlu0 %979 }
  0xe9   :  { %1217 = vrot.lane.b32.xlu1 %v435_v29, %s5043_s17  ;;  %8998 = vst [vmem:[#allocation15_spill] sm:$0xff] %v5735_v36 }
  0xea   :  { %1223 = vrot.lane.b32.xlu0 %v438_v35, %s5043_s17  ;;  %v458_v35 = vld [vmem:[#allocation2 + $0x289] sm:$0xff] }
  0xeb   :  { %v5731_v34 = vpop.permute.xlu1 %977 }
  0xec   :  { %8997 = vst [vmem:[#allocation14_spill] sm:$0xff] %v5731_v34  ;;  %v5741_v40 = vpop.permute.xlu0 %983 }
  0xed   :  { %1221 = vrot.lane.b32.xlu1 %v437_v33, %s5043_s17  ;;  %9000 = vst [vmem:[#allocation17_spill] sm:$0xff] %v5741_v40 }
  0xee   :  { %1227 = vrot.lane.b32.xlu0 %v440_v39, %s5043_s17  ;;  %v459_v39 = vld [vmem:[#allocation2 + $0x291] sm:$0xff] }
  0xef   :  { %v5737_v38 = vpop.permute.xlu1 %981 }
  0xf0   :  { %8999 = vst [vmem:[#allocation16_spill] sm:$0xff] %v5737_v38  ;;  %v5747_v44 = vpop.permute.xlu0 %987 }
  0xf1   :  { %1225 = vrot.lane.b32.xlu1 %v439_v37, %s5043_s17  ;;  %9002 = vst [vmem:[#allocation19_spill] sm:$0xff] %v5747_v44 }
  0xf2   :  { %1231 = vrot.lane.b32.xlu0 %v442_v43, %s5043_s17  ;;  %v460_v43 = vld [vmem:[#allocation2 + $0x2a9] sm:$0xff] }
  0xf3   :  { %v5743_v42 = vpop.permute.xlu1 %985 }
  0xf4   :  { %9001 = vst [vmem:[#allocation18_spill] sm:$0xff] %v5743_v42  ;;  %v5753_v48 = vpop.permute.xlu0 %991 }
  0xf5   :  { %1229 = vrot.lane.b32.xlu1 %v441_v41, %s5043_s17  ;;  %9004 = vst [vmem:[#allocation21_spill] sm:$0xff] %v5753_v48  ;;  %v319_v48 = vld [vmem:[#allocation2 + $0x18f] sm:$0xff] }
  0xf6   :  { %1235 = vrot.lane.b32.xlu0 %v444_v47, %s5043_s17  ;;  %v461_v47 = vld [vmem:[#allocation2 + $0x2b1] sm:$0xff] }
  0xf7   :  { %v5749_v46 = vpop.permute.xlu1 %989 }
  0xf8   :  { %9003 = vst [vmem:[#allocation20_spill] sm:$0xff] %v5749_v46  ;;  %v5759_v52 = vpop.permute.xlu0 %995 }
  0xf9   :  { %1233 = vrot.lane.b32.xlu1 %v443_v45, %s5043_s17  ;;  %9006 = vst [vmem:[#allocation23_spill] sm:$0xff] %v5759_v52  ;;  %v317_v52 = vld [vmem:[#allocation2 + $0x16f] sm:$0xff] }
  0xfa   :  { %1239 = vrot.lane.b32.xlu0 %v446_v51, %s5043_s17  ;;  %v462_v51 = vld [vmem:[#allocation2 + $0x2c9] sm:$0xff] }
  0xfb   :  { %v5755_v50 = vpop.permute.xlu1 %993 }
  0xfc   :  { %9005 = vst [vmem:[#allocation22_spill] sm:$0xff] %v5755_v50  ;;  %v5765_v57 = vpop.permute.xlu0 %999 }
  0xfd   :  { %1237 = vrot.lane.b32.xlu1 %v445_v49, %s5043_s17  ;;  %9008 = vst [vmem:[#allocation25_spill] sm:$0xff] %v5765_v57  ;;  %v315_v57 = vld [vmem:[#allocation2 + $0x14f] sm:$0xff] }
  0xfe   :  { %1243 = vrot.lane.b32.xlu0 %v448_v55, %s5043_s17  ;;  %v463_v55 = vld [vmem:[#allocation2 + $0x2d1] sm:$0xff] }
  0xff   :  { %v5761_v54 = vpop.permute.xlu1 %997 }
 0x100   :  { %9007 = vst [vmem:[#allocation24_spill] sm:$0xff] %v5761_v54  ;;  %v5779_v5 = vpop.permute.xlu0 %1003 }
 0x101   :  { %1241 = vrot.lane.b32.xlu1 %v447_v53, %s5043_s17  ;;  %9010 = vst [vmem:[#allocation27_spill] sm:$0xff] %v5779_v5  ;;  %v313_v5 = vld [vmem:[#allocation2 + $0x12f] sm:$0xff] }
 0x102   :  { %1247 = vrot.lane.b32.xlu0 %v450_v3, %s5043_s17  ;;  %v465_v3 = vld [vmem:[#allocation2 + $0x2f1] sm:$0xff] }
 0x103   :  { %v5767_v61 = vpop.permute.xlu1 %1001 }
 0x104   :  { %9009 = vst [vmem:[#allocation26_spill] sm:$0xff] %v5767_v61  ;;  %v5785_v13 = vpop.permute.xlu0 %1007 }
 0x105   :  { %1245 = vrot.lane.b32.xlu1 %v449_v59, %s5043_s17  ;;  %9012 = vst [vmem:[#allocation29_spill] sm:$0xff] %v5785_v13  ;;  %v311_v13 = vld [vmem:[#allocation2 + $0x10f] sm:$0xff] }
 0x106   :  { %1251 = vrot.lane.b32.xlu0 %v452_v11, %s5043_s17  ;;  %v466_v11 = vld [vmem:[#allocation2 + $0x309] sm:$0xff] }
 0x107   :  { %v5781_v9 = vpop.permute.xlu1 %1005 }
 0x108   :  { %9011 = vst [vmem:[#allocation28_spill] sm:$0xff] %v5781_v9  ;;  %v5791_v21 = vpop.permute.xlu0 %1011 }
 0x109   :  { %1249 = vrot.lane.b32.xlu1 %v451_v7, %s5043_s17  ;;  %9014 = vst [vmem:[#allocation31_spill] sm:$0xff] %v5791_v21  ;;  %v309_v21 = vld [vmem:[#allocation2 + $0xef] sm:$0xff] }
 0x10a   :  { %1255 = vrot.lane.b32.xlu0 %v454_v19, %s5043_s17  ;;  %v467_v19 = vld [vmem:[#allocation2 + $0x311] sm:$0xff] }
 0x10b   :  { %v5787_v17 = vpop.permute.xlu1 %1009 }
 0x10c   :  { %9013 = vst [vmem:[#allocation30_spill] sm:$0xff] %v5787_v17  ;;  %v5797_v29 = vpop.permute.xlu0 %1015 }
 0x10d   :  { %1253 = vrot.lane.b32.xlu1 %v453_v15, %s5043_s17  ;;  %9016 = vst [vmem:[#allocation33_spill] sm:$0xff] %v5797_v29  ;;  %v307_v29 = vld [vmem:[#allocation2 + $0xcf] sm:$0xff] }
 0x10e   :  { %1259 = vrot.lane.b32.xlu0 %v456_v27, %s5043_s17  ;;  %v468_v27 = vld [vmem:[#allocation2 + $0x329] sm:$0xff] }
 0x10f   :  { %v5793_v25 = vpop.permute.xlu1 %1013 }
 0x110   :  { %9015 = vst [vmem:[#allocation32_spill] sm:$0xff] %v5793_v25  ;;  %v5803_v37 = vpop.permute.xlu0 %1019 }
 0x111   :  { %1257 = vrot.lane.b32.xlu1 %v455_v23, %s5043_s17  ;;  %9018 = vst [vmem:[#allocation35_spill] sm:$0xff] %v5803_v37  ;;  %v305_v37 = vld [vmem:[#allocation2 + $0xaf] sm:$0xff] }
 0x112   :  { %1263 = vrot.lane.b32.xlu0 %v458_v35, %s5043_s17  ;;  %v469_v35 = vld [vmem:[#allocation2 + $0x331] sm:$0xff] }
 0x113   :  { %v5799_v33 = vpop.permute.xlu1 %1017 }
 0x114   :  { %9017 = vst [vmem:[#allocation34_spill] sm:$0xff] %v5799_v33  ;;  %v5809_v45 = vpop.permute.xlu0 %1023 }
 0x115   :  { %1261 = vrot.lane.b32.xlu1 %v457_v31, %s5043_s17  ;;  %9020 = vst [vmem:[#allocation37_spill] sm:$0xff] %v5809_v45  ;;  %v303_v45 = vld [vmem:[#allocation2 + $0x8f] sm:$0xff] }
 0x116   :  { %1267 = vrot.lane.b32.xlu0 %v460_v43, %s5043_s17  ;;  %v470_v43 = vld [vmem:[#allocation2 + $0x349] sm:$0xff] }
 0x117   :  { %v5805_v41 = vpop.permute.xlu1 %1021 }
 0x118   :  { %9019 = vst [vmem:[#allocation36_spill] sm:$0xff] %v5805_v41  ;;  %v5815_v53 = vpop.permute.xlu0 %1027 }
 0x119   :  { %1265 = vrot.lane.b32.xlu1 %v459_v39, %s5043_s17  ;;  %9022 = vst [vmem:[#allocation39_spill] sm:$0xff] %v5815_v53  ;;  %v301_v53 = vld [vmem:[#allocation2 + $0x6f] sm:$0xff] }
 0x11a   :  { %1271 = vrot.lane.b32.xlu0 %v462_v51, %s5043_s17  ;;  %v471_v51 = vld [vmem:[#allocation2 + $0x351] sm:$0xff] }
 0x11b   :  { %v5811_v49 = vpop.permute.xlu1 %1025 }
 0x11c   :  { %9021 = vst [vmem:[#allocation38_spill] sm:$0xff] %v5811_v49  ;;  %v5821_v1 = vpop.permute.xlu0 %1031 }
 0x11d   :  { %1269 = vrot.lane.b32.xlu1 %v461_v47, %s5043_s17  ;;  %9024 = vst [vmem:[#allocation41_spill] sm:$0xff] %v5821_v1  ;;  %v299_v1 = vld [vmem:[#allocation2 + $0x4f] sm:$0xff] }
 0x11e   :  { %1275 = vrot.lane.b32.xlu0 %v464_v63, %s5043_s17  ;;  %v472_v63 = vld [vmem:[#allocation2 + $0x369] sm:$0xff] }
 0x11f   :  { %v5817_v59 = vpop.permute.xlu1 %1029 }
 0x120   :  { %9023 = vst [vmem:[#allocation40_spill] sm:$0xff] %v5817_v59  ;;  %v5827_v15 = vpop.permute.xlu0 %1035 }
 0x121   :  { %1273 = vrot.lane.b32.xlu1 %v463_v55, %s5043_s17  ;;  %9026 = vst [vmem:[#allocation43_spill] sm:$0xff] %v5827_v15  ;;  %v297_v15 = vld [vmem:[#allocation2 + $0x2f] sm:$0xff] }
 0x122   :  { %1279 = vrot.lane.b32.xlu0 %v466_v11, %s5043_s17  ;;  %v473_v11 = vld [vmem:[#allocation2 + $0x371] sm:$0xff] }
 0x123   :  { %v5823_v7 = vpop.permute.xlu1 %1033 }
 0x124   :  { %9025 = vst [vmem:[#allocation42_spill] sm:$0xff] %v5823_v7  ;;  %v5833_v31 = vpop.permute.xlu0 %1039 }
 0x125   :  { %1277 = vrot.lane.b32.xlu1 %v465_v3, %s5043_s17  ;;  %9028 = vst [vmem:[#allocation45_spill] sm:$0xff] %v5833_v31 }
 0x126   :  { %1283 = vrot.lane.b32.xlu0 %v468_v27, %s5043_s17  ;;  %v474_v27 = vld [vmem:[#allocation2 + $0x389] sm:$0xff] }
 0x127   :  { %v5829_v23 = vpop.permute.xlu1 %1037 }
 0x128   :  { %9027 = vst [vmem:[#allocation44_spill] sm:$0xff] %v5829_v23  ;;  %v5839_v47 = vpop.permute.xlu0 %1043 }
 0x129   :  { %1281 = vrot.lane.b32.xlu1 %v467_v19, %s5043_s17  ;;  %9030 = vst [vmem:[#allocation47_spill] sm:$0xff] %v5839_v47  ;;  %v475_v47 = vld [vmem:[#allocation2 + $0x391] sm:$0xff] }
 0x12a   :  { %1287 = vrot.lane.b32.xlu0 %v470_v43, %s5043_s17  ;;  %v476_v43 = vld [vmem:[#allocation2 + $0x3a9] sm:$0xff] }
 0x12b   :  { %v5835_v39 = vpop.permute.xlu1 %1041 }
 0x12c   :  { %9029 = vst [vmem:[#allocation46_spill] sm:$0xff] %v5835_v39  ;;  %v5845_v3 = vpop.permute.xlu0 %1047 }
 0x12d   :  { %1285 = vrot.lane.b32.xlu1 %v469_v35, %s5043_s17  ;;  %9032 = vst [vmem:[#allocation49_spill] sm:$0xff] %v5845_v3  ;;  %v477_v3 = vld [vmem:[#allocation2 + $0x3b1] sm:$0xff] }
 0x12e   :  { %1291 = vrot.lane.b32.xlu0 %v472_v63, %s5043_s17  ;;  %v478_v63 = vld [vmem:[#allocation2 + $0x3c9] sm:$0xff] }
 0x12f   :  { %v5841_v55 = vpop.permute.xlu1 %1045 }
 0x130   :  { %9031 = vst [vmem:[#allocation48_spill] sm:$0xff] %v5841_v55  ;;  %v5851_v35 = vpop.permute.xlu0 %1051 }
 0x131   :  { %1289 = vrot.lane.b32.xlu1 %v471_v51, %s5043_s17  ;;  %9034 = vst [vmem:[#allocation51_spill] sm:$0xff] %v5851_v35  ;;  %v479_v35 = vld [vmem:[#allocation2 + $0x3d1] sm:$0xff] }
 0x132   :  { %1295 = vrot.lane.b32.xlu0 %v474_v27, %s5043_s17 }
 0x133   :  { %v5847_v19 = vpop.permute.xlu1 %1049 }
 0x134   :  { %9033 = vst [vmem:[#allocation50_spill] sm:$0xff] %v5847_v19  ;;  %v5857_v51 = vpop.permute.xlu0 %1055 }
 0x135   :  { %1293 = vrot.lane.b32.xlu1 %v473_v11, %s5043_s17  ;;  %9036 = vst [vmem:[#allocation53_spill] sm:$0xff] %v5857_v51  ;;  %v481_v51 = vld [vmem:[#allocation2 + $0x3f1] sm:$0xff] }
 0x136   :  { %1299 = vrot.lane.b32.xlu0 %v476_v43, %s5043_s17  ;;  %v228_v43 = vld [vmem:[%s8957_s0 + $0x1f8] sm:$0xff] }
 0x137   :  { %v5853_v39 = vpop.permute.xlu1 %1053  ;;  %293 = vst.msk [vmem:[#allocation2 + $0x450] sm:$0xff] %vm20_vm0, %v228_v43  ;;  %v296_v43 = vld [vmem:[#allocation2 + $0x27] sm:$0xff] }
 0x138   :  { %9035 = vst [vmem:[#allocation52_spill] sm:$0xff] %v5853_v39  ;;  %v5863_v11 = vpop.permute.xlu0 %1059 }
 0x139   :  { %1297 = vrot.lane.b32.xlu1 %v475_v47, %s5043_s17  ;;  %9038 = vst [vmem:[#allocation55_spill] sm:$0xff] %v5863_v11  ;;  %v480_v47 = vld [vmem:[#allocation2 + $0x3e9] sm:$0xff] }
 0x13a   :  { %1303 = vrot.lane.b32.xlu0 %v478_v63, %s5043_s17 }
 0x13b   :  { %v5859_v55 = vpop.permute.xlu1 %1057 }
 0x13c   :  { %9037 = vst [vmem:[#allocation54_spill] sm:$0xff] %v5859_v55  ;;  %v5869_v27 = vpop.permute.xlu0 %1191  ;;  %v485_v55 = vld [vmem:[#allocation2 + $0x431] sm:$0xff] }
 0x13d   :  { %1301 = vrot.lane.b32.xlu1 %v477_v3, %s5043_s17  ;;  %v227_v3 = vld [vmem:[%s8957_s0 + $0x1f0] sm:$0xff]  ;;  %s5044_s0 = smov 12  }
 0x13e   :  { %1307 = vrot.lane.b32.xlu0 %v480_v47, %s5043_s17  ;;  %292 = vst.msk [vmem:[#allocation2 + $0x448] sm:$0xff] %vm20_vm0, %v227_v3  ;;  %v484_v47 = vld [vmem:[#allocation2 + $0x429] sm:$0xff] }
 0x13f   :  { %v5865_v19 = vpop.permute.xlu1 %1061 }
 0x140   :  { %9039 = vst [vmem:[#allocation56_spill] sm:$0xff] %v5865_v19  ;;  %v5883_v63 = vpop.permute.xlu0 %1195  ;;  %v483_v19 = vld [vmem:[#allocation2 + $0x411] sm:$0xff] }
 0x141   :  { %1305 = vrot.lane.b32.xlu1 %v479_v35, %s5043_s17  ;;  %v482_v35 = vld [vmem:[#allocation2 + $0x409] sm:$0xff] }
 0x142   :  { %1311 = vrot.lane.b32.xlu0 %v482_v35, %s5043_s17  ;;  %v298_v35 = vld [vmem:[#allocation2 + $0x47] sm:$0xff] }
 0x143   :  { %v5871_v39 = vpop.permute.xlu1 %1193 }
 0x144   :  { %v5889_v3 = vpop.permute.xlu0 %1199 }
 0x145   :  { %1309 = vrot.lane.b32.xlu1 %v481_v51, %s5043_s17 }
 0x146   :  { %1315 = vrot.lane.b32.xlu0 %v484_v47, %s5043_s17  ;;  %v300_v47 = vld [vmem:[#allocation2 + $0x67] sm:$0xff] }
 0x147   :  { %v5885_v11 = vpop.permute.xlu1 %1197 }
 0x148   :  { %v5895_v51 = vpop.permute.xlu0 %1203 }
 0x149   :  { %1313 = vrot.lane.b32.xlu1 %v483_v19, %s5043_s17 }
 0x14a   :  { %1447 = vrot.lane.b32.xlu0 %v296_v43, %s5044_s0  ;;  %v302_v43 = vld [vmem:[#allocation2 + $0x87] sm:$0xff] }
 0x14b   :  { %v5891_v31 = vpop.permute.xlu1 %1201 }
 0x14c   :  { %v5901_v19 = vpop.permute.xlu0 %1207 }
 0x14d   :  { %1317 = vrot.lane.b32.xlu1 %v485_v55, %s5043_s17 }
 0x14e   :  { %1451 = vrot.lane.b32.xlu0 %v298_v35, %s5044_s0  ;;  %v304_v35 = vld [vmem:[#allocation2 + $0xa7] sm:$0xff] }
 0x14f   :  { %v5897_v23 = vpop.permute.xlu1 %1205 }
 0x150   :  { %v5907_v55 = vpop.permute.xlu0 %1211 }
 0x151   :  { %1449 = vrot.lane.b32.xlu1 %v297_v15, %s5044_s0  ;;  %9041 = vst [vmem:[#allocation58_spill] sm:$0xff] %v5907_v55 }
 0x152   :  { %1455 = vrot.lane.b32.xlu0 %v300_v47, %s5044_s0  ;;  %v306_v47 = vld [vmem:[#allocation2 + $0xc7] sm:$0xff] }
 0x153   :  { %v5903_v7 = vpop.permute.xlu1 %1209 }
 0x154   :  { %9040 = vst [vmem:[#allocation57_spill] sm:$0xff] %v5903_v7  ;;  %v5913_v15 = vpop.permute.xlu0 %1215 }
 0x155   :  { %1453 = vrot.lane.b32.xlu1 %v299_v1, %s5044_s0  ;;  %9043 = vst [vmem:[#allocation60_spill] sm:$0xff] %v5913_v15  ;;  %v575_v15 = vld [vmem:[#allocation2 + $0x1b0] sm:$0xff] }
 0x156   :  { %1459 = vrot.lane.b32.xlu0 %v302_v43, %s5044_s0  ;;  %v308_v43 = vld [vmem:[#allocation2 + $0xe7] sm:$0xff] }
 0x157   :  { %v5909_v59 = vpop.permute.xlu1 %1213 }
 0x158   :  { %9042 = vst [vmem:[#allocation59_spill] sm:$0xff] %v5909_v59  ;;  %v5919_v1 = vpop.permute.xlu0 %1219 }
 0x159   :  { %1457 = vrot.lane.b32.xlu1 %v301_v53, %s5044_s0  ;;  %9045 = vst [vmem:[#allocation62_spill] sm:$0xff] %v5919_v1  ;;  %v6193_v1 = vld [vmem:[#allocation2 + $0x150] sm:$0xff] }
 0x15a   :  { %1463 = vrot.lane.b32.xlu0 %v304_v35, %s5044_s0  ;;  %v310_v35 = vld [vmem:[#allocation2 + $0x107] sm:$0xff] }
 0x15b   :  { %v5915_v49 = vpop.permute.xlu1 %1217 }
 0x15c   :  { %9044 = vst [vmem:[#allocation61_spill] sm:$0xff] %v5915_v49  ;;  %v5925_v53 = vpop.permute.xlu0 %1223 }
 0x15d   :  { %1461 = vrot.lane.b32.xlu1 %v303_v45, %s5044_s0  ;;  %9047 = vst [vmem:[#allocation64_spill] sm:$0xff] %v5925_v53  ;;  %v6157_v53 = vld [vmem:[#allocation2 + $0xf0] sm:$0xff] }
 0x15e   :  { %1467 = vrot.lane.b32.xlu0 %v306_v47, %s5044_s0  ;;  %v312_v47 = vld [vmem:[#allocation2 + $0x127] sm:$0xff] }
 0x15f   :  { %v5921_v41 = vpop.permute.xlu1 %1221 }
 0x160   :  { %9046 = vst [vmem:[#allocation63_spill] sm:$0xff] %v5921_v41  ;;  %v5931_v45 = vpop.permute.xlu0 %1227 }
 0x161   :  { %1465 = vrot.lane.b32.xlu1 %v305_v37, %s5044_s0  ;;  %9049 = vst [vmem:[#allocation66_spill] sm:$0xff] %v5931_v45  ;;  %v6145_v45 = vld [vmem:[#allocation2 + $0xd0] sm:$0xff] }
 0x162   :  { %1471 = vrot.lane.b32.xlu0 %v308_v43, %s5044_s0  ;;  %v314_v43 = vld [vmem:[#allocation2 + $0x147] sm:$0xff] }
 0x163   :  { %v5927_v33 = vpop.permute.xlu1 %1225 }
 0x164   :  { %9048 = vst [vmem:[#allocation65_spill] sm:$0xff] %v5927_v33  ;;  %v5937_v37 = vpop.permute.xlu0 %1231  ;;  %v6153_v33 = vld [vmem:[#allocation2 + $0xe8] sm:$0xff] }
 0x165   :  { %1469 = vrot.lane.b32.xlu1 %v307_v29, %s5044_s0  ;;  %9051 = vst [vmem:[#allocation68_spill] sm:$0xff] %v5937_v37  ;;  %v6133_v37 = vld [vmem:[#allocation2 + $0xb0] sm:$0xff] }
 0x166   :  { %1475 = vrot.lane.b32.xlu0 %v310_v35, %s5044_s0  ;;  %v316_v35 = vld [vmem:[#allocation2 + $0x167] sm:$0xff] }
 0x167   :  { %v5933_v25 = vpop.permute.xlu1 %1229 }
 0x168   :  { %9050 = vst [vmem:[#allocation67_spill] sm:$0xff] %v5933_v25  ;;  %v5943_v29 = vpop.permute.xlu0 %1235  ;;  %v6141_v25 = vld [vmem:[#allocation2 + $0xc8] sm:$0xff] }
 0x169   :  { %1473 = vrot.lane.b32.xlu1 %v309_v21, %s5044_s0  ;;  %9053 = vst [vmem:[#allocation70_spill] sm:$0xff] %v5943_v29  ;;  %v6121_v29 = vld [vmem:[#allocation2 + $0x90] sm:$0xff] }
 0x16a   :  { %1479 = vrot.lane.b32.xlu0 %v312_v47, %s5044_s0  ;;  %v318_v47 = vld [vmem:[#allocation2 + $0x187] sm:$0xff] }
 0x16b   :  { %v5939_v17 = vpop.permute.xlu1 %1233 }
 0x16c   :  { %9052 = vst [vmem:[#allocation69_spill] sm:$0xff] %v5939_v17  ;;  %v5949_v21 = vpop.permute.xlu0 %1239  ;;  %v6129_v17 = vld [vmem:[#allocation2 + $0xa8] sm:$0xff] }
 0x16d   :  { %1477 = vrot.lane.b32.xlu1 %v311_v13, %s5044_s0  ;;  %9055 = vst [vmem:[#allocation72_spill] sm:$0xff] %v5949_v21  ;;  %v6097_v21 = vld [vmem:[#allocation2 + $0x50] sm:$0xff] }
 0x16e   :  { %1483 = vrot.lane.b32.xlu0 %v314_v43, %s5044_s0  ;;  %v320_v43 = vld [vmem:[#allocation2 + $0x1a7] sm:$0xff] }
 0x16f   :  { %v5945_v9 = vpop.permute.xlu1 %1237 }
 0x170   :  { %9054 = vst [vmem:[#allocation71_spill] sm:$0xff] %v5945_v9  ;;  %v5955_v13 = vpop.permute.xlu0 %1243  ;;  %v6117_v9 = vld [vmem:[#allocation2 + $0x88] sm:$0xff] }
 0x171   :  { %1481 = vrot.lane.b32.xlu1 %v313_v5, %s5044_s0  ;;  %9057 = vst [vmem:[#allocation74_spill] sm:$0xff] %v5955_v13  ;;  %v549_v13 = vld [vmem:[#allocation2 + $0x44f] sm:$0xff] }
 0x172   :  { %1487 = vrot.lane.b32.xlu0 %v316_v35, %s5044_s0  ;;  %v322_v35 = vld [vmem:[#allocation2 + $0x1c7] sm:$0xff] }
 0x173   :  { %v5951_v61 = vpop.permute.xlu1 %1241 }
 0x174   :  { %9056 = vst [vmem:[#allocation73_spill] sm:$0xff] %v5951_v61  ;;  %v5961_v5 = vpop.permute.xlu0 %1247  ;;  %v551_v61 = vld [vmem:[#allocation2 + $0x30] sm:$0xff] }
 0x175   :  { %1485 = vrot.lane.b32.xlu1 %v315_v57, %s5044_s0  ;;  %9059 = vst [vmem:[#allocation76_spill] sm:$0xff] %v5961_v5 }
 0x176   :  { %1491 = vrot.lane.b32.xlu0 %v318_v47, %s5044_s0  ;;  %v324_v47 = vld [vmem:[#allocation2 + $0x1e7] sm:$0xff] }
 0x177   :  { %v5957_v54 = vpop.permute.xlu1 %1245 }
 0x178   :  { %9058 = vst [vmem:[#allocation75_spill] sm:$0xff] %v5957_v54  ;;  %v5967_v57 = vpop.permute.xlu0 %1251  ;;  %v321_v54 = vld [vmem:[#allocation2 + $0x1af] sm:$0xff] }
 0x179   :  { %1489 = vrot.lane.b32.xlu1 %v317_v52, %s5044_s0  ;;  %9061 = vst [vmem:[#allocation78_spill] sm:$0xff] %v5967_v57 }
 0x17a   :  { %1495 = vrot.lane.b32.xlu0 %v320_v43, %s5044_s0 }
 0x17b   :  { %v5963_v50 = vpop.permute.xlu1 %1249 }
 0x17c   :  { %9060 = vst [vmem:[#allocation77_spill] sm:$0xff] %v5963_v50  ;;  %v5973_v52 = vpop.permute.xlu0 %1255  ;;  %v323_v50 = vld [vmem:[#allocation2 + $0x1cf] sm:$0xff] }
 0x17d   :  { %1493 = vrot.lane.b32.xlu1 %v319_v48, %s5044_s0  ;;  %9063 = vst [vmem:[#allocation80_spill] sm:$0xff] %v5973_v52  ;;  %v517_v52 = vld [vmem:[#allocation2 + $0x20f] sm:$0xff] }
 0x17e   :  { %1499 = vrot.lane.b32.xlu0 %v322_v35, %s5044_s0  ;;  %v328_v35 = vld [vmem:[#allocation2 + $0x267] sm:$0xff] }
 0x17f   :  { %v5969_v46 = vpop.permute.xlu1 %1253 }
 0x180   :  { %9062 = vst [vmem:[#allocation79_spill] sm:$0xff] %v5969_v46  ;;  %v5979_v48 = vpop.permute.xlu0 %1259  ;;  %v325_v46 = vld [vmem:[#allocation2 + $0x1ef] sm:$0xff] }
 0x181   :  { %1497 = vrot.lane.b32.xlu1 %v321_v54, %s5044_s0  ;;  %9065 = vst [vmem:[#allocation82_spill] sm:$0xff] %v5979_v48  ;;  %v516_v54 = vld [vmem:[#allocation2 + $0x207] sm:$0xff] }
 0x182   :  { %1503 = vrot.lane.b32.xlu0 %v324_v47, %s5044_s0  ;;  %v330_v47 = vld [vmem:[#allocation2 + $0x287] sm:$0xff] }
 0x183   :  { %v5975_v5 = vpop.permute.xlu1 %1257 }
 0x184   :  { %9064 = vst [vmem:[#allocation81_spill] sm:$0xff] %v5975_v5  ;;  %v5985_v43 = vpop.permute.xlu0 %1263 }
 0x185   :  { %1501 = vrot.lane.b32.xlu1 %v323_v50, %s5044_s0  ;;  %9067 = vst [vmem:[#allocation84_spill] sm:$0xff] %v5985_v43 }
 0x186   :  { %1507 = vrot.lane.b32.xlu0 %v516_v54, %s5044_s0  ;;  %v332_v54 = vld [vmem:[#allocation2 + $0x2a7] sm:$0xff] }
 0x187   :  { %v5981_v57 = vpop.permute.xlu1 %1261 }
 0x188   :  { %9066 = vst [vmem:[#allocation83_spill] sm:$0xff] %v5981_v57  ;;  %v5991_v50 = vpop.permute.xlu0 %1267  ;;  %v329_v57 = vld [vmem:[#allocation2 + $0x26f] sm:$0xff] }
 0x189   :  { %1505 = vrot.lane.b32.xlu1 %v325_v46, %s5044_s0  ;;  %9069 = vst [vmem:[#allocation86_spill] sm:$0xff] %v5991_v50 }
 0x18a   :  { %1511 = vrot.lane.b32.xlu0 %v328_v35, %s5044_s0  ;;  %v334_v35 = vld [vmem:[#allocation2 + $0x2c7] sm:$0xff] }
 0x18b   :  { %v5987_v5 = vpop.permute.xlu1 %1265 }
 0x18c   :  { %9068 = vst [vmem:[#allocation85_spill] sm:$0xff] %v5987_v5  ;;  %v5997_v46 = vpop.permute.xlu0 %1271  ;;  %v331_v5 = vld [vmem:[#allocation2 + $0x28f] sm:$0xff] }
 0x18d   :  { %1509 = vrot.lane.b32.xlu1 %v517_v52, %s5044_s0  ;;  %9071 = vst [vmem:[#allocation88_spill] sm:$0xff] %v5997_v46 }
 0x18e   :  { %1515 = vrot.lane.b32.xlu0 %v330_v47, %s5044_s0  ;;  %v336_v47 = vld [vmem:[#allocation2 + $0x2e7] sm:$0xff] }
 0x18f   :  { %v5993_v48 = vpop.permute.xlu1 %1269 }
 0x190   :  { %9070 = vst [vmem:[#allocation87_spill] sm:$0xff] %v5993_v48  ;;  %v6003_v52 = vpop.permute.xlu0 %1275  ;;  %v333_v48 = vld [vmem:[#allocation2 + $0x2af] sm:$0xff] }
 0x191   :  { %1513 = vrot.lane.b32.xlu1 %v329_v57, %s5044_s0  ;;  %9073 = vst [vmem:[#allocation90_spill] sm:$0xff] %v6003_v52 }
 0x192   :  { %1519 = vrot.lane.b32.xlu0 %v332_v54, %s5044_s0  ;;  %v338_v54 = vld [vmem:[#allocation2 + $0x307] sm:$0xff] }
 0x193   :  { %v5999_v43 = vpop.permute.xlu1 %1273 }
 0x194   :  { %9072 = vst [vmem:[#allocation89_spill] sm:$0xff] %v5999_v43  ;;  %v6009_v57 = vpop.permute.xlu0 %1279  ;;  %v335_v43 = vld [vmem:[#allocation2 + $0x2cf] sm:$0xff] }
 0x195   :  { %1517 = vrot.lane.b32.xlu1 %v331_v5, %s5044_s0  ;;  %9075 = vst [vmem:[#allocation92_spill] sm:$0xff] %v6009_v57 }
 0x196   :  { %1523 = vrot.lane.b32.xlu0 %v334_v35, %s5044_s0  ;;  %v340_v35 = vld [vmem:[#allocation2 + $0x327] sm:$0xff] }
 0x197   :  { %v6005_v50 = vpop.permute.xlu1 %1277 }
 0x198   :  { %9074 = vst [vmem:[#allocation91_spill] sm:$0xff] %v6005_v50  ;;  %v6015_v5 = vpop.permute.xlu0 %1283  ;;  %v337_v50 = vld [vmem:[#allocation2 + $0x2ef] sm:$0xff] }
 0x199   :  { %1521 = vrot.lane.b32.xlu1 %v333_v48, %s5044_s0  ;;  %9077 = vst [vmem:[#allocation94_spill] sm:$0xff] %v6015_v5 }
 0x19a   :  { %1527 = vrot.lane.b32.xlu0 %v336_v47, %s5044_s0  ;;  %v342_v47 = vld [vmem:[#allocation2 + $0x347] sm:$0xff] }
 0x19b   :  { %v6011_v46 = vpop.permute.xlu1 %1281 }
 0x19c   :  { %9076 = vst [vmem:[#allocation93_spill] sm:$0xff] %v6011_v46  ;;  %v6021_v48 = vpop.permute.xlu0 %1287  ;;  %v339_v46 = vld [vmem:[#allocation2 + $0x30f] sm:$0xff] }
 0x19d   :  { %1525 = vrot.lane.b32.xlu1 %v335_v43, %s5044_s0  ;;  %9079 = vst [vmem:[#allocation96_spill] sm:$0xff] %v6021_v48 }
 0x19e   :  { %1531 = vrot.lane.b32.xlu0 %v338_v54, %s5044_s0  ;;  %v344_v54 = vld [vmem:[#allocation2 + $0x367] sm:$0xff] }
 0x19f   :  { %v6017_v52 = vpop.permute.xlu1 %1285 }
 0x1a0   :  { %9078 = vst [vmem:[#allocation95_spill] sm:$0xff] %v6017_v52  ;;  %v6027_v43 = vpop.permute.xlu0 %1291  ;;  %v341_v52 = vld [vmem:[#allocation2 + $0x32f] sm:$0xff] }
 0x1a1   :  { %1529 = vrot.lane.b32.xlu1 %v337_v50, %s5044_s0  ;;  %9081 = vst [vmem:[#allocation98_spill] sm:$0xff] %v6027_v43 }
 0x1a2   :  { %1535 = vrot.lane.b32.xlu0 %v340_v35, %s5044_s0  ;;  %v346_v35 = vld [vmem:[#allocation2 + $0x387] sm:$0xff] }
 0x1a3   :  { %v6023_v57 = vpop.permute.xlu1 %1289 }
 0x1a4   :  { %9080 = vst [vmem:[#allocation97_spill] sm:$0xff] %v6023_v57  ;;  %v6033_v50 = vpop.permute.xlu0 %1295  ;;  %v343_v57 = vld [vmem:[#allocation2 + $0x34f] sm:$0xff] }
 0x1a5   :  { %1533 = vrot.lane.b32.xlu1 %v339_v46, %s5044_s0  ;;  %9083 = vst [vmem:[#allocation100_spill] sm:$0xff] %v6033_v50 }
 0x1a6   :  { %1539 = vrot.lane.b32.xlu0 %v342_v47, %s5044_s0  ;;  %v348_v47 = vld [vmem:[#allocation2 + $0x3a7] sm:$0xff] }
 0x1a7   :  { %v6029_v5 = vpop.permute.xlu1 %1293 }
 0x1a8   :  { %9082 = vst [vmem:[#allocation99_spill] sm:$0xff] %v6029_v5  ;;  %v6039_v46 = vpop.permute.xlu0 %1299  ;;  %v345_v5 = vld [vmem:[#allocation2 + $0x36f] sm:$0xff] }
 0x1a9   :  { %1537 = vrot.lane.b32.xlu1 %v341_v52, %s5044_s0  ;;  %9085 = vst [vmem:[#allocation102_spill] sm:$0xff] %v6039_v46 }
 0x1aa   :  { %1543 = vrot.lane.b32.xlu0 %v344_v54, %s5044_s0  ;;  %v350_v54 = vld [vmem:[#allocation2 + $0x3c7] sm:$0xff] }
 0x1ab   :  { %v6035_v48 = vpop.permute.xlu1 %1297 }
 0x1ac   :  { %9084 = vst [vmem:[#allocation101_spill] sm:$0xff] %v6035_v48  ;;  %v6045_v52 = vpop.permute.xlu0 %1303  ;;  %v347_v48 = vld [vmem:[#allocation2 + $0x38f] sm:$0xff] }
 0x1ad   :  { %1541 = vrot.lane.b32.xlu1 %v343_v57, %s5044_s0  ;;  %9087 = vst [vmem:[#allocation104_spill] sm:$0xff] %v6045_v52 }
 0x1ae   :  { %1547 = vrot.lane.b32.xlu0 %v346_v35, %s5044_s0  ;;  %v352_v35 = vld [vmem:[#allocation2 + $0x3e7] sm:$0xff] }
 0x1af   :  { %v6041_v43 = vpop.permute.xlu1 %1301 }
 0x1b0   :  { %9086 = vst [vmem:[#allocation103_spill] sm:$0xff] %v6041_v43  ;;  %v6051_v57 = vpop.permute.xlu0 %1307  ;;  %v349_v43 = vld [vmem:[#allocation2 + $0x3af] sm:$0xff] }
 0x1b1   :  { %1545 = vrot.lane.b32.xlu1 %v345_v5, %s5044_s0  ;;  %9089 = vst [vmem:[#allocation106_spill] sm:$0xff] %v6051_v57 }
 0x1b2   :  { %1551 = vrot.lane.b32.xlu0 %v348_v47, %s5044_s0  ;;  %v354_v47 = vld [vmem:[#allocation2 + $0x407] sm:$0xff] }
 0x1b3   :  { %v6047_v50 = vpop.permute.xlu1 %1305 }
 0x1b4   :  { %9088 = vst [vmem:[#allocation105_spill] sm:$0xff] %v6047_v50  ;;  %v6057_v5 = vpop.permute.xlu0 %1311  ;;  %v351_v50 = vld [vmem:[#allocation2 + $0x3cf] sm:$0xff] }
 0x1b5   :  { %1549 = vrot.lane.b32.xlu1 %v347_v48, %s5044_s0  ;;  %9091 = vst [vmem:[#allocation108_spill] sm:$0xff] %v6057_v5 }
 0x1b6   :  { %1555 = vrot.lane.b32.xlu0 %v350_v54, %s5044_s0  ;;  %v356_v54 = vld [vmem:[#allocation2 + $0x427] sm:$0xff] }
 0x1b7   :  { %v6053_v46 = vpop.permute.xlu1 %1309 }
 0x1b8   :  { %9090 = vst [vmem:[#allocation107_spill] sm:$0xff] %v6053_v46  ;;  %v6063_v48 = vpop.permute.xlu0 %1315  ;;  %v353_v46 = vld [vmem:[#allocation2 + $0x3ef] sm:$0xff] }
 0x1b9   :  { %1553 = vrot.lane.b32.xlu1 %v349_v43, %s5044_s0  ;;  %9093 = vst [vmem:[#allocation110_spill] sm:$0xff] %v6063_v48 }
 0x1ba   :  { %1559 = vrot.lane.b32.xlu0 %v352_v35, %s5044_s0 }
 0x1bb   :  { %v6059_v52 = vpop.permute.xlu1 %1313 }
 0x1bc   :  { %9092 = vst [vmem:[#allocation109_spill] sm:$0xff] %v6059_v52  ;;  %v6069_v43 = vpop.permute.xlu0 %1447  ;;  %v355_v52 = vld [vmem:[#allocation2 + $0x40f] sm:$0xff] }
 0x1bd   :  { %1557 = vrot.lane.b32.xlu1 %v351_v50, %s5044_s0 }
 0x1be   :  { %1563 = vrot.lane.b32.xlu0 %v354_v47, %s5044_s0 }
 0x1bf   :  { %v6065_v57 = vpop.permute.xlu1 %1317 }
 0x1c0   :  { %9094 = vst [vmem:[#allocation111_spill] sm:$0xff] %v6065_v57  ;;  %v6075_v50 = vpop.permute.xlu0 %1451  ;;  %v357_v57 = vld [vmem:[#allocation2 + $0x42f] sm:$0xff] }
 0x1c1   :  { %1561 = vrot.lane.b32.xlu1 %v353_v46, %s5044_s0  ;;  %v548_v46 = vld [vmem:[#allocation2 + $0x447] sm:$0xff] }
 0x1c2   :  { %1567 = vrot.lane.b32.xlu0 %v356_v54, %s5044_s0 }
 0x1c3   :  { %v6071_v5 = vpop.permute.xlu1 %1449 }
 0x1c4   :  { %v6081_v35 = vpop.permute.xlu0 %1455 }
 0x1c5   :  { %1565 = vrot.lane.b32.xlu1 %v355_v52, %s5044_s0  ;;  %v550_v52 = vld [vmem:[#allocation2 + $0x28] sm:$0xff] }
 0x1c6   :  { %1571 = vrot.lane.b32.xlu0 %v548_v46, %s5044_s0 }
 0x1c7   :  { %v6077_v48 = vpop.permute.xlu1 %1453 }
 0x1c8   :  { %v6087_v47 = vpop.permute.xlu0 %1459 }
 0x1c9   :  { %1569 = vrot.lane.b32.xlu1 %v357_v57, %s5044_s0  ;;  %v6093_v57 = vld [vmem:[#allocation2 + $0x48] sm:$0xff] }
 0x1ca   :  { %1703 = vrot.lane.b32.xlu0 %v550_v52, %s5045_s26  ;;  %v6109_v52 = vld [vmem:[#allocation2 + $0x70] sm:$0xff] }
 0x1cb   :  { %v6083_v44 = vpop.permute.xlu1 %1457 }
 0x1cc   :  { %v6095_v54 = vpop.permute.xlu0 %1463 }
 0x1cd   :  { %1573 = vrot.lane.b32.xlu1 %v549_v13, %s5044_s0  ;;  %v6105_v13 = vld [vmem:[#allocation2 + $0x68] sm:$0xff] }
 0x1ce   :  { %1707 = vrot.lane.b32.xlu0 %v6093_v57, %s5045_s26 }
 0x1cf   :  { %v6089_v42 = vpop.permute.xlu1 %1461 }
 0x1d0   :  { %v6107_v40 = vpop.permute.xlu0 %1467 }
 0x1d1   :  { %1705 = vrot.lane.b32.xlu1 %v551_v61, %s5045_s26  ;;  %9096 = vst [vmem:[#allocation113_spill] sm:$0xff] %v6107_v40 }
 0x1d2   :  { %1711 = vrot.lane.b32.xlu0 %v6105_v13, %s5045_s26 }
 0x1d3   :  { %v6099_v46 = vpop.permute.xlu1 %1465 }
 0x1d4   :  { %9095 = vst [vmem:[#allocation112_spill] sm:$0xff] %v6099_v46  ;;  %v6119_v38 = vpop.permute.xlu0 %1471 }
 0x1d5   :  { %1709 = vrot.lane.b32.xlu1 %v6097_v21, %s5045_s26  ;;  %9098 = vst [vmem:[#allocation115_spill] sm:$0xff] %v6119_v38 }
 0x1d6   :  { %1715 = vrot.lane.b32.xlu0 %v6117_v9, %s5045_s26 }
 0x1d7   :  { %v6111_v61 = vpop.permute.xlu1 %1469 }
 0x1d8   :  { %9097 = vst [vmem:[#allocation114_spill] sm:$0xff] %v6111_v61  ;;  %v6131_v34 = vpop.permute.xlu0 %1475 }
 0x1d9   :  { %1713 = vrot.lane.b32.xlu1 %v6109_v52, %s5045_s26  ;;  %9100 = vst [vmem:[#allocation117_spill] sm:$0xff] %v6131_v34 }
 0x1da   :  { %1719 = vrot.lane.b32.xlu0 %v6129_v17, %s5045_s26 }
 0x1db   :  { %v6123_v36 = vpop.permute.xlu1 %1473 }
 0x1dc   :  { %9099 = vst [vmem:[#allocation116_spill] sm:$0xff] %v6123_v36  ;;  %v6143_v30 = vpop.permute.xlu0 %1479  ;;  %v6205_v36 = vld [vmem:[#allocation2 + $0x170] sm:$0xff] }
 0x1dd   :  { %1717 = vrot.lane.b32.xlu1 %v6121_v29, %s5045_s26  ;;  %9102 = vst [vmem:[#allocation119_spill] sm:$0xff] %v6143_v30 }
 0x1de   :  { %1723 = vrot.lane.b32.xlu0 %v6141_v25, %s5045_s26 }
 0x1df   :  { %v6135_v32 = vpop.permute.xlu1 %1477 }
 0x1e0   :  { %9101 = vst [vmem:[#allocation118_spill] sm:$0xff] %v6135_v32  ;;  %v6155_v26 = vpop.permute.xlu0 %1483  ;;  %v6169_v32 = vld [vmem:[#allocation2 + $0x110] sm:$0xff] }
 0x1e1   :  { %1721 = vrot.lane.b32.xlu1 %v6133_v37, %s5045_s26  ;;  %9104 = vst [vmem:[#allocation121_spill] sm:$0xff] %v6155_v26 }
 0x1e2   :  { %1727 = vrot.lane.b32.xlu0 %v6153_v33, %s5045_s26 }
 0x1e3   :  { %v6147_v28 = vpop.permute.xlu1 %1481 }
 0x1e4   :  { %9103 = vst [vmem:[#allocation120_spill] sm:$0xff] %v6147_v28  ;;  %v6165_v28 = vld [vmem:[#allocation2 + $0x108] sm:$0xff]  ;;  %v6167_v30 = vpop.permute.xlu0 %1487 }
 0x1e5   :  { %1725 = vrot.lane.b32.xlu1 %v6145_v45, %s5045_s26  ;;  %9106 = vst [vmem:[#allocation123_spill] sm:$0xff] %v6167_v30 }
 0x1e6   :  { %1731 = vrot.lane.b32.xlu0 %v6165_v28, %s5045_s26 }
 0x1e7   :  { %v6159_v24 = vpop.permute.xlu1 %1485 }
 0x1e8   :  { %9105 = vst [vmem:[#allocation122_spill] sm:$0xff] %v6159_v24  ;;  %v6177_v24 = vld [vmem:[#allocation2 + $0x128] sm:$0xff]  ;;  %v6179_v26 = vpop.permute.xlu0 %1491 }
 0x1e9   :  { %1729 = vrot.lane.b32.xlu1 %v6157_v53, %s5045_s26  ;;  %9108 = vst [vmem:[#allocation125_spill] sm:$0xff] %v6179_v26 }
 0x1ea   :  { %1735 = vrot.lane.b32.xlu0 %v6177_v24, %s5045_s26 }
 0x1eb   :  { %v6171_v41 = vpop.permute.xlu1 %1489 }
 0x1ec   :  { %9107 = vst [vmem:[#allocation124_spill] sm:$0xff] %v6171_v41  ;;  %v6189_v41 = vld [vmem:[#allocation2 + $0x148] sm:$0xff]  ;;  %v6191_v30 = vpop.permute.xlu0 %1495 }
 0x1ed   :  { %1733 = vrot.lane.b32.xlu1 %v6169_v32, %s5045_s26  ;;  %9110 = vst [vmem:[#allocation127_spill] sm:$0xff] %v6191_v30 }
 0x1ee   :  { %1739 = vrot.lane.b32.xlu0 %v6189_v41, %s5045_s26 }
 0x1ef   :  { %v6183_v34 = vpop.permute.xlu1 %1493 }
 0x1f0   :  { %9109 = vst [vmem:[#allocation126_spill] sm:$0xff] %v6183_v34  ;;  %v6201_v34 = vld [vmem:[#allocation2 + $0x168] sm:$0xff]  ;;  %v6203_v26 = vpop.permute.xlu0 %1499 }
 0x1f1   :  { %1737 = vrot.lane.b32.xlu1 %v6181_v22, %s5045_s26  ;;  %9112 = vst [vmem:[#allocation129_spill] sm:$0xff] %v6203_v26 }
 0x1f2   :  { %1743 = vrot.lane.b32.xlu0 %v6201_v34, %s5045_s26 }
 0x1f3   :  { %v6195_v20 = vpop.permute.xlu1 %1497 }
 0x1f4   :  { %9111 = vst [vmem:[#allocation128_spill] sm:$0xff] %v6195_v20  ;;  %v6213_v20 = vld [vmem:[#allocation2 + $0x188] sm:$0xff]  ;;  %v6215_v30 = vpop.permute.xlu0 %1503 }
 0x1f5   :  { %1741 = vrot.lane.b32.xlu1 %v6193_v1, %s5045_s26  ;;  %9114 = vst [vmem:[#allocation131_spill] sm:$0xff] %v6215_v30  ;;  %v576_v30 = vld [vmem:[#allocation2 + $0x1c8] sm:$0xff] }
 0x1f6   :  { %1747 = vrot.lane.b32.xlu0 %v6213_v20, %s5045_s26 }
 0x1f7   :  { %v6207_v49 = vpop.permute.xlu1 %1501 }
 0x1f8   :  { %9113 = vst [vmem:[#allocation130_spill] sm:$0xff] %v6207_v49  ;;  %v574_v49 = vld [vmem:[#allocation2 + $0x1a8] sm:$0xff]  ;;  %v6225_v26 = vpop.permute.xlu0 %1507 }
 0x1f9   :  { %1745 = vrot.lane.b32.xlu1 %v6205_v36, %s5045_s26  ;;  %9116 = vst [vmem:[#allocation133_spill] sm:$0xff] %v6225_v26  ;;  %v579_v26 = vld [vmem:[#allocation2 + $0x1f0] sm:$0xff] }
 0x1fa   :  { %1751 = vrot.lane.b32.xlu0 %v574_v49, %s5045_s26  ;;  %v580_v49 = vld [vmem:[#allocation2 + $0x208] sm:$0xff] }
 0x1fb   :  { %v6219_v38 = vpop.permute.xlu1 %1505 }
 0x1fc   :  { %9115 = vst [vmem:[#allocation132_spill] sm:$0xff] %v6219_v38  ;;  %v6231_v61 = vpop.permute.xlu0 %1511  ;;  %v577_v38 = vld [vmem:[#allocation2 + $0x1d0] sm:$0xff] }
 0x1fd   :  { %1749 = vrot.lane.b32.xlu1 %v6217_v18, %s5045_s26  ;;  %9118 = vst [vmem:[#allocation135_spill] sm:$0xff] %v6231_v61  ;;  %v581_v61 = vld [vmem:[#allocation2 + $0x210] sm:$0xff] }
 0x1fe   :  { %1755 = vrot.lane.b32.xlu0 %v576_v30, %s5045_s26  ;;  %v582_v30 = vld [vmem:[#allocation2 + $0x268] sm:$0xff] }
 0x1ff   :  { %v6227_v16 = vpop.permute.xlu1 %1509 }
 0x200   :  { %9117 = vst [vmem:[#allocation134_spill] sm:$0xff] %v6227_v16  ;;  %v6237_v40 = vpop.permute.xlu0 %1515 }
 0x201   :  { %1753 = vrot.lane.b32.xlu1 %v575_v15, %s5045_s26  ;;  %9120 = vst [vmem:[#allocation137_spill] sm:$0xff] %v6237_v40  ;;  %v583_v40 = vld [vmem:[#allocation2 + $0x270] sm:$0xff] }
 0x202   :  { %1759 = vrot.lane.b32.xlu0 %v578_v14, %s5045_s26  ;;  %v584_v14 = vld [vmem:[#allocation2 + $0x288] sm:$0xff] }
 0x203   :  { %v6233_v59 = vpop.permute.xlu1 %1513 }
 0x204   :  { %9119 = vst [vmem:[#allocation136_spill] sm:$0xff] %v6233_v59  ;;  %v6243_v15 = vpop.permute.xlu0 %1519 }
 0x205   :  { %1757 = vrot.lane.b32.xlu1 %v577_v38, %s5045_s26  ;;  %9122 = vst [vmem:[#allocation139_spill] sm:$0xff] %v6243_v15  ;;  %v585_v15 = vld [vmem:[#allocation2 + $0x290] sm:$0xff] }
 0x206   :  { %1763 = vrot.lane.b32.xlu0 %v580_v49, %s5045_s26 }
 0x207   :  { %v6239_v55 = vpop.permute.xlu1 %1517 }
 0x208   :  { %9121 = vst [vmem:[#allocation138_spill] sm:$0xff] %v6239_v55  ;;  %v6249_v38 = vpop.permute.xlu0 %1523 }
 0x209   :  { %1761 = vrot.lane.b32.xlu1 %v579_v26, %s5045_s26  ;;  %9124 = vst [vmem:[#allocation141_spill] sm:$0xff] %v6249_v38  ;;  %v587_v38 = vld [vmem:[#allocation2 + $0x2b0] sm:$0xff] }
 0x20a   :  { %1767 = vrot.lane.b32.xlu0 %v582_v30, %s5045_s26 }
 0x20b   :  { %v6245_v16 = vpop.permute.xlu1 %1521 }
 0x20c   :  { %9123 = vst [vmem:[#allocation140_spill] sm:$0xff] %v6245_v16  ;;  %v6255_v26 = vpop.permute.xlu0 %1527 }
 0x20d   :  { %1765 = vrot.lane.b32.xlu1 %v581_v61, %s5045_s26  ;;  %9126 = vst [vmem:[#allocation143_spill] sm:$0xff] %v6255_v26  ;;  %v586_v61 = vld [vmem:[#allocation2 + $0x2a8] sm:$0xff]  ;;  %v589_v26 = vld [vmem:[#allocation2 + $0x2d0] sm:$0xff] }
 0x20e   :  { %1771 = vrot.lane.b32.xlu0 %v584_v14, %s5045_s26 }
 0x20f   :  { %v6251_v59 = vpop.permute.xlu1 %1525 }
 0x210   :  { %9125 = vst [vmem:[#allocation142_spill] sm:$0xff] %v6251_v59  ;;  %v6261_v49 = vpop.permute.xlu0 %1531 }
 0x211   :  { %1769 = vrot.lane.b32.xlu1 %v583_v40, %s5045_s26  ;;  %9128 = vst [vmem:[#allocation145_spill] sm:$0xff] %v6261_v49  ;;  %v588_v40 = vld [vmem:[#allocation2 + $0x2c8] sm:$0xff]  ;;  %v591_v49 = vld [vmem:[#allocation2 + $0x2f0] sm:$0xff] }
 0x212   :  { %1775 = vrot.lane.b32.xlu0 %v586_v61, %s5045_s26 }
 0x213   :  { %v6257_v55 = vpop.permute.xlu1 %1529 }
 0x214   :  { %9127 = vst [vmem:[#allocation144_spill] sm:$0xff] %v6257_v55  ;;  %v6267_v30 = vpop.permute.xlu0 %1535 }
 0x215   :  { %1773 = vrot.lane.b32.xlu1 %v585_v15, %s5045_s26  ;;  %9130 = vst [vmem:[#allocation147_spill] sm:$0xff] %v6267_v30  ;;  %v590_v15 = vld [vmem:[#allocation2 + $0x2e8] sm:$0xff]  ;;  %v593_v30 = vld [vmem:[#allocation2 + $0x310] sm:$0xff] }
 0x216   :  { %1779 = vrot.lane.b32.xlu0 %v588_v40, %s5045_s26 }
 0x217   :  { %v6263_v16 = vpop.permute.xlu1 %1533 }
 0x218   :  { %9129 = vst [vmem:[#allocation146_spill] sm:$0xff] %v6263_v16  ;;  %v6273_v14 = vpop.permute.xlu0 %1539 }
 0x219   :  { %1777 = vrot.lane.b32.xlu1 %v587_v38, %s5045_s26  ;;  %9132 = vst [vmem:[#allocation149_spill] sm:$0xff] %v6273_v14  ;;  %v592_v38 = vld [vmem:[#allocation2 + $0x308] sm:$0xff]  ;;  %v595_v14 = vld [vmem:[#allocation2 + $0x330] sm:$0xff] }
 0x21a   :  { %1783 = vrot.lane.b32.xlu0 %v590_v15, %s5045_s26 }
 0x21b   :  { %v6269_v59 = vpop.permute.xlu1 %1537 }
 0x21c   :  { %9131 = vst [vmem:[#allocation148_spill] sm:$0xff] %v6269_v59  ;;  %v6279_v61 = vpop.permute.xlu0 %1543 }
 0x21d   :  { %1781 = vrot.lane.b32.xlu1 %v589_v26, %s5045_s26  ;;  %9134 = vst [vmem:[#allocation151_spill] sm:$0xff] %v6279_v61  ;;  %v594_v26 = vld [vmem:[#allocation2 + $0x328] sm:$0xff]  ;;  %v597_v61 = vld [vmem:[#allocation2 + $0x350] sm:$0xff] }
 0x21e   :  { %1787 = vrot.lane.b32.xlu0 %v592_v38, %s5045_s26 }
 0x21f   :  { %v6275_v55 = vpop.permute.xlu1 %1541 }
 0x220   :  { %9133 = vst [vmem:[#allocation150_spill] sm:$0xff] %v6275_v55  ;;  %v6285_v40 = vpop.permute.xlu0 %1547 }
 0x221   :  { %1785 = vrot.lane.b32.xlu1 %v591_v49, %s5045_s26  ;;  %9136 = vst [vmem:[#allocation153_spill] sm:$0xff] %v6285_v40  ;;  %v596_v49 = vld [vmem:[#allocation2 + $0x348] sm:$0xff]  ;;  %v599_v40 = vld [vmem:[#allocation2 + $0x370] sm:$0xff] }
 0x222   :  { %1791 = vrot.lane.b32.xlu0 %v594_v26, %s5045_s26 }
 0x223   :  { %v6281_v16 = vpop.permute.xlu1 %1545 }
 0x224   :  { %9135 = vst [vmem:[#allocation152_spill] sm:$0xff] %v6281_v16  ;;  %v6291_v15 = vpop.permute.xlu0 %1551 }
 0x225   :  { %1789 = vrot.lane.b32.xlu1 %v593_v30, %s5045_s26  ;;  %9138 = vst [vmem:[#allocation155_spill] sm:$0xff] %v6291_v15  ;;  %v598_v30 = vld [vmem:[#allocation2 + $0x368] sm:$0xff]  ;;  %v601_v15 = vld [vmem:[#allocation2 + $0x390] sm:$0xff] }
 0x226   :  { %1795 = vrot.lane.b32.xlu0 %v596_v49, %s5045_s26  ;;  %v3442_v49 = vld [vmem:[%s8958_s1 + $0x20] sm:$0xf] }
 0x227   :  { %v6287_v59 = vpop.permute.xlu1 %1549  ;;  %4851 = vmatprep.subr.msk.mxu0 %vm3658_vm1, %v3442_v49  ;;  %4957 = vmatprep.subr.msk.mxu1 %vm3658_vm1, %v3442_v49 }
 0x228   :  { %9137 = vst [vmem:[#allocation154_spill] sm:$0xff] %v6287_v59  ;;  %v6297_v38 = vpop.permute.xlu0 %1555  ;;  %4852 = vmatpush3.msk.msra.mxu0 %vm3658_vm1, %v3442_v49  ;;  %4962 = vmatpush3.msk.msra.mxu1 %vm3658_vm1, %v3442_v49  ;;  %v679_v49 = vld [vmem:[#allocation2 + $0x47] sm:$0xff] }
 0x229   :  { %1793 = vrot.lane.b32.xlu1 %v595_v14, %s5045_s26  ;;  %9140 = vst [vmem:[#allocation157_spill] sm:$0xff] %v6297_v38  ;;  %v600_v14 = vld [vmem:[#allocation2 + $0x388] sm:$0xff] }
 0x22a   :  { %1799 = vrot.lane.b32.xlu0 %v598_v30, %s5045_s26  ;;  %v603_v30 = vld [vmem:[#allocation2 + $0x3b0] sm:$0xff] }
 0x22b   :  { %v6293_v55 = vpop.permute.xlu1 %1553 }
 0x22c   :  { %9139 = vst [vmem:[#allocation156_spill] sm:$0xff] %v6293_v55  ;;  %v6303_v26 = vpop.permute.xlu0 %1559 }
 0x22d   :  { %1797 = vrot.lane.b32.xlu1 %v597_v61, %s5045_s26  ;;  %9142 = vst [vmem:[#allocation159_spill] sm:$0xff] %v6303_v26  ;;  %v602_v61 = vld [vmem:[#allocation2 + $0x3a8] sm:$0xff] }
 0x22e   :  { %1803 = vrot.lane.b32.xlu0 %v600_v14, %s5045_s26  ;;  %v3441_v14 = vld [vmem:[%s8958_s1 + $0x18] sm:$0xff] }
 0x22f   :  { %v6299_v16 = vpop.permute.xlu1 %1557  ;;  %4853 = vmatprep.subr.mxu0 %v3441_v14  ;;  %4958 = vmatprep.subr.mxu1 %v3441_v14 }
 0x230   :  { %9141 = vst [vmem:[#allocation158_spill] sm:$0xff] %v6299_v16  ;;  %v6312_v16 = vpop.permute.xlu0 %1563  ;;  %4854 = vmatpush3.msra.mxu0 %v3441_v14  ;;  %4963 = vmatpush3.msra.mxu1 %v3441_v14 }
 0x231   :  { %1801 = vrot.lane.b32.xlu1 %v599_v40, %s5045_s26  ;;  %9144 = vst [vmem:[#allocation161_spill] sm:$0xff] %v6312_v16  ;;  %v3440_v16 = vld [vmem:[%s8958_s1 + $0x10] sm:$0xff] }
 0x232   :  { %1807 = vrot.lane.b32.xlu0 %v602_v61, %s5045_s26  ;;  %4855 = vmatprep.subr.mxu0 %v3440_v16  ;;  %v3439_v61 = vld [vmem:[%s8958_s1 + $0x8] sm:$0xff] }
 0x233   :  { %v6305_v59 = vpop.permute.xlu1 %1561  ;;  %4856 = vmatpush3.msra.mxu0 %v3440_v16  ;;  %4959 = vmatprep.subr.mxu1 %v3440_v16 }
 0x234   :  { %9143 = vst [vmem:[#allocation160_spill] sm:$0xff] %v6305_v59  ;;  %v6324_v59 = vpop.permute.xlu0 %1567  ;;  %4857 = vmatprep.subr.mxu0 %v3439_v61  ;;  %4964 = vmatpush3.msra.mxu1 %v3440_v16  ;;  %v807_v16 = vld [vmem:[#allocation2 + $0x49] sm:$0xff] }
 0x235   :  { %1805 = vrot.lane.b32.xlu1 %v601_v15, %s5045_s26  ;;  %v614_v15 = vld [vmem:[#allocation2 + $0x29] sm:$0xff]  ;;  %9146 = vst [vmem:[#allocation163_spill] sm:$0xff] %v6324_v59  ;;  %4858 = vmatpush3.msra.mxu0 %v3439_v61 }
 0x236   :  { %1959 = vrot.lane.b32.xlu0 %v614_v15, %s5046_s10  ;;  %4960 = vmatprep.subr.mxu1 %v3439_v61 }
 0x237   :  { %v6314_v40 = vpop.permute.xlu1 %1565  ;;  %4965 = vmatpush3.msra.mxu1 %v3439_v61 }
 0x238   :  { %9145 = vst [vmem:[#allocation162_spill] sm:$0xff] %v6314_v40  ;;  %v615_v40 = vld [vmem:[#allocation2 + $0x31] sm:$0xff]  ;;  %v6336_v59 = vpop.permute.xlu0 %1571 }
 0x239   :  { %1809 = vrot.lane.b32.xlu1 %v603_v30, %s5045_s26  ;;  %v3438_v30 = vld [vmem:[%s8958_s1] sm:$0xff]  ;;  %9148 = vst [vmem:[#allocation165_spill] sm:$0xff] %v6336_v59  ;;  %s5048_s1 = smov 28  }
 0x23a   :  { %4859 = vmatprep.subr.mxu0 %v3438_v30  ;;  %2215 = vrot.lane.b32.xlu0 %v679_v49, %s5047_s14 }
 0x23b   :  { %v6326_v26 = vpop.permute.xlu1 %1569  ;;  %4860 = vmatpush3.msra.mxu0 %v3438_v30  ;;  %4961 = vmatprep.subr.mxu1 %v3438_v30 }
 0x23c   :  { %9147 = vst [vmem:[#allocation164_spill] sm:$0xff] %v6326_v26  ;;  %v680_v26 = vld [vmem:[#allocation2 + $0x4f] sm:$0xff]  ;;  %4966 = vmatpush3.msra.mxu1 %v3438_v30 }
 0x23d   :  { %1961 = vrot.lane.b32.xlu1 %v615_v40, %s5046_s10  ;;  %v6342_v40 = vpop.permute.xlu0 %1703 }
 0x23e   :  { %2471 = vrot.lane.b32.xlu0 %v6093_v57, %s5048_s1 }
 0x23f   :  { %v6338_v38 = vpop.permute.xlu1 %1573 }
 0x240   :  { %9149 = vst [vmem:[#allocation166_spill] sm:$0xff] %v6338_v38  ;;  %v682_v38 = vld [vmem:[#allocation2 + $0x6f] sm:$0xff] }
 0x241   :  { %2217 = vrot.lane.b32.xlu1 %v680_v26, %s5047_s14  ;;  %v6350_v15 = vpop.permute.xlu0 %1707  ;;  %v808_v26 = vld [vmem:[#allocation2 + $0x51] sm:$0xff] }
 0x242   :  { %2727 = vrot.lane.b32.xlu0 %v807_v16, %s5049_s15 }
 0x243   :  { %v6344_v14 = vpop.permute.xlu1 %1705 }
 0x245   :  { %2473 = vrot.lane.b32.xlu1 %v6097_v21, %s5048_s1  ;;  %v6356_v61 = vpop.permute.xlu0 %1711  ;;  %v681_v21 = vld [vmem:[#allocation2 + $0x67] sm:$0xff] }
 0x246   :  { %2729 = vrot.lane.b32.xlu0 %v808_v26, %s5049_s15 }
 0x247   :  { %v6352_v49 = vpop.permute.xlu1 %1709 }
 0x249   :  { %1963 = vrot.lane.b32.xlu1 %v807_v16, %s5046_s10  ;;  %v6362_v57 = vpop.permute.xlu0 %1715 }
 0x24a   :  { %2219 = vrot.lane.b32.xlu0 %v681_v21, %s5047_s14 }
 0x24b   :  { %v6358_v30 = vpop.permute.xlu1 %1713 }
 0x24d   :  { %1965 = vrot.lane.b32.xlu1 %v808_v26, %s5046_s10  ;;  %v6368_v16 = vpop.permute.xlu0 %1719  ;;  %v809_v26 = vld [vmem:[#allocation2 + $0x69] sm:$0xff] }
 0x24e   :  { %2475 = vrot.lane.b32.xlu0 %v6105_v13, %s5048_s1  ;;  %v683_v13 = vld [vmem:[#allocation2 + $0x87] sm:$0xff] }
 0x24f   :  { %v6364_v59 = vpop.permute.xlu1 %1717 }
 0x251   :  { %2221 = vrot.lane.b32.xlu1 %v682_v38, %s5047_s14  ;;  %v6376_v12 = vpop.permute.xlu0 %1723  ;;  %v810_v38 = vld [vmem:[#allocation2 + $0x71] sm:$0xff] }
 0x252   :  { %9151 = vst [vmem:[#allocation168_spill] sm:$0xff] %v6376_v12  ;;  %2731 = vrot.lane.b32.xlu0 %v809_v26, %s5049_s15 }
 0x253   :  { %v6370_v55 = vpop.permute.xlu1 %1721 }
 0x254   :  { %9150 = vst [vmem:[#allocation167_spill] sm:$0xff] %v6370_v55  ;;  %v684_v55 = vld [vmem:[#allocation2 + $0x8f] sm:$0xff] }
 0x255   :  { %2477 = vrot.lane.b32.xlu1 %v6109_v52, %s5048_s1  ;;  %v6382_v21 = vpop.permute.xlu0 %1727 }
 0x256   :  { %2733 = vrot.lane.b32.xlu0 %v810_v38, %s5049_s15 }
 0x257   :  { %v6378_v46 = vpop.permute.xlu1 %1725 }
 0x258   :  { %9152 = vst [vmem:[#allocation169_spill] sm:$0xff] %v6378_v46 }
 0x259   :  { %1967 = vrot.lane.b32.xlu1 %v809_v26, %s5046_s10  ;;  %v6388_v52 = vpop.permute.xlu0 %1731 }
 0x25a   :  { %9154 = vst [vmem:[#allocation171_spill] sm:$0xff] %v6388_v52  ;;  %2223 = vrot.lane.b32.xlu0 %v683_v13, %s5047_s14 }
 0x25b   :  { %v6384_v7 = vpop.permute.xlu1 %1729 }
 0x25c   :  { %9153 = vst [vmem:[#allocation170_spill] sm:$0xff] %v6384_v7 }
 0x25d   :  { %1969 = vrot.lane.b32.xlu1 %v810_v38, %s5046_s10  ;;  %v6394_v26 = vpop.permute.xlu0 %1735  ;;  %v811_v38 = vld [vmem:[#allocation2 + $0x89] sm:$0xff] }
 0x25e   :  { %9155 = vst [vmem:[#allocation172_spill] sm:$0xff] %v6394_v26  ;;  %2479 = vrot.lane.b32.xlu0 %v6117_v9, %s5048_s1  ;;  %v685_v9 = vld [vmem:[#allocation2 + $0xa7] sm:$0xff] }
 0x25f   :  { %v6390_v12 = vpop.permute.xlu1 %1733 }
 0x261   :  { %2225 = vrot.lane.b32.xlu1 %v684_v55, %s5047_s14  ;;  %v6402_v7 = vpop.permute.xlu0 %1739  ;;  %v812_v55 = vld [vmem:[#allocation2 + $0x91] sm:$0xff] }
 0x262   :  { %9157 = vst [vmem:[#allocation174_spill] sm:$0xff] %v6402_v7  ;;  %2735 = vrot.lane.b32.xlu0 %v811_v38, %s5049_s15 }
 0x263   :  { %v6396_v46 = vpop.permute.xlu1 %1737 }
 0x264   :  { %9156 = vst [vmem:[#allocation173_spill] sm:$0xff] %v6396_v46  ;;  %v686_v46 = vld [vmem:[#allocation2 + $0xaf] sm:$0xff] }
 0x265   :  { %2481 = vrot.lane.b32.xlu1 %v6121_v29, %s5048_s1  ;;  %v6408_v13 = vpop.permute.xlu0 %1743 }
 0x266   :  { %2737 = vrot.lane.b32.xlu0 %v812_v55, %s5049_s15 }
 0x267   :  { %v6404_v52 = vpop.permute.xlu1 %1741 }
 0x268   :  { %9158 = vst [vmem:[#allocation175_spill] sm:$0xff] %v6404_v52 }
 0x269   :  { %1971 = vrot.lane.b32.xlu1 %v811_v38, %s5046_s10  ;;  %v6414_v29 = vpop.permute.xlu0 %1747 }
 0x26a   :  { %9160 = vst [vmem:[#allocation177_spill] sm:$0xff] %v6414_v29  ;;  %2227 = vrot.lane.b32.xlu0 %v685_v9, %s5047_s14 }
 0x26b   :  { %v6410_v26 = vpop.permute.xlu1 %1745 }
 0x26c   :  { %9159 = vst [vmem:[#allocation176_spill] sm:$0xff] %v6410_v26 }
 0x26d   :  { %1973 = vrot.lane.b32.xlu1 %v812_v55, %s5046_s10  ;;  %v6420_v38 = vpop.permute.xlu0 %1751  ;;  %v813_v55 = vld [vmem:[#allocation2 + $0xa9] sm:$0xff] }
 0x26e   :  { %9161 = vst [vmem:[#allocation178_spill] sm:$0xff] %v6420_v38  ;;  %2483 = vrot.lane.b32.xlu0 %v6129_v17, %s5048_s1  ;;  %v687_v17 = vld [vmem:[#allocation2 + $0xc7] sm:$0xff] }
 0x26f   :  { %v6416_v7 = vpop.permute.xlu1 %1749 }
 0x271   :  { %2229 = vrot.lane.b32.xlu1 %v686_v46, %s5047_s14  ;;  %v6428_v26 = vpop.permute.xlu0 %1755  ;;  %v814_v46 = vld [vmem:[#allocation2 + $0xb1] sm:$0xff] }
 0x272   :  { %9163 = vst [vmem:[#allocation180_spill] sm:$0xff] %v6428_v26  ;;  %2739 = vrot.lane.b32.xlu0 %v813_v55, %s5049_s15 }
 0x273   :  { %v6422_v52 = vpop.permute.xlu1 %1753 }
 0x274   :  { %9162 = vst [vmem:[#allocation179_spill] sm:$0xff] %v6422_v52  ;;  %v688_v52 = vld [vmem:[#allocation2 + $0xcf] sm:$0xff] }
 0x275   :  { %2485 = vrot.lane.b32.xlu1 %v6133_v37, %s5048_s1  ;;  %v6434_v9 = vpop.permute.xlu0 %1759 }
 0x276   :  { %2741 = vrot.lane.b32.xlu0 %v814_v46, %s5049_s15 }
 0x277   :  { %v6430_v29 = vpop.permute.xlu1 %1757 }
 0x278   :  { %9164 = vst [vmem:[#allocation181_spill] sm:$0xff] %v6430_v29 }
 0x279   :  { %1975 = vrot.lane.b32.xlu1 %v813_v55, %s5046_s10  ;;  %v6440_v37 = vpop.permute.xlu0 %1763 }
 0x27a   :  { %9166 = vst [vmem:[#allocation183_spill] sm:$0xff] %v6440_v37  ;;  %2231 = vrot.lane.b32.xlu0 %v687_v17, %s5047_s14 }
 0x27b   :  { %v6436_v38 = vpop.permute.xlu1 %1761 }
 0x27c   :  { %9165 = vst [vmem:[#allocation182_spill] sm:$0xff] %v6436_v38 }
 0x27d   :  { %1977 = vrot.lane.b32.xlu1 %v814_v46, %s5046_s10  ;;  %v6446_v55 = vpop.permute.xlu0 %1767  ;;  %v815_v46 = vld [vmem:[#allocation2 + $0xc9] sm:$0xff] }
 0x27e   :  { %9167 = vst [vmem:[#allocation184_spill] sm:$0xff] %v6446_v55  ;;  %2487 = vrot.lane.b32.xlu0 %v6141_v25, %s5048_s1  ;;  %v689_v25 = vld [vmem:[#allocation2 + $0xe7] sm:$0xff] }
 0x27f   :  { %v6442_v26 = vpop.permute.xlu1 %1765 }
 0x281   :  { %2233 = vrot.lane.b32.xlu1 %v688_v52, %s5047_s14  ;;  %v6454_v38 = vpop.permute.xlu0 %1771  ;;  %v816_v52 = vld [vmem:[#allocation2 + $0xd1] sm:$0xff] }
 0x282   :  { %9169 = vst [vmem:[#allocation186_spill] sm:$0xff] %v6454_v38  ;;  %2743 = vrot.lane.b32.xlu0 %v815_v46, %s5049_s15 }
 0x283   :  { %v6448_v29 = vpop.permute.xlu1 %1769 }
 0x284   :  { %9168 = vst [vmem:[#allocation185_spill] sm:$0xff] %v6448_v29  ;;  %v690_v29 = vld [vmem:[#allocation2 + $0xef] sm:$0xff] }
 0x285   :  { %2489 = vrot.lane.b32.xlu1 %v6145_v45, %s5048_s1  ;;  %v6460_v17 = vpop.permute.xlu0 %1775 }
 0x286   :  { %2745 = vrot.lane.b32.xlu0 %v816_v52, %s5049_s15 }
 0x287   :  { %v6456_v37 = vpop.permute.xlu1 %1773 }
 0x288   :  { %9170 = vst [vmem:[#allocation187_spill] sm:$0xff] %v6456_v37 }
 0x289   :  { %1979 = vrot.lane.b32.xlu1 %v815_v46, %s5046_s10  ;;  %v6466_v45 = vpop.permute.xlu0 %1779 }
 0x28a   :  { %9172 = vst [vmem:[#allocation189_spill] sm:$0xff] %v6466_v45  ;;  %2235 = vrot.lane.b32.xlu0 %v689_v25, %s5047_s14 }
 0x28b   :  { %v6462_v55 = vpop.permute.xlu1 %1777 }
 0x28c   :  { %9171 = vst [vmem:[#allocation188_spill] sm:$0xff] %v6462_v55 }
 0x28d   :  { %1981 = vrot.lane.b32.xlu1 %v816_v52, %s5046_s10  ;;  %v6472_v46 = vpop.permute.xlu0 %1783  ;;  %v817_v52 = vld [vmem:[#allocation2 + $0xe9] sm:$0xff] }
 0x28e   :  { %9173 = vst [vmem:[#allocation190_spill] sm:$0xff] %v6472_v46  ;;  %2491 = vrot.lane.b32.xlu0 %v6153_v33, %s5048_s1  ;;  %v691_v33 = vld [vmem:[#allocation2 + $0x107] sm:$0xff] }
 0x28f   :  { %v6468_v38 = vpop.permute.xlu1 %1781 }
 0x291   :  { %2237 = vrot.lane.b32.xlu1 %v690_v29, %s5047_s14  ;;  %v6480_v55 = vpop.permute.xlu0 %1787  ;;  %v818_v29 = vld [vmem:[#allocation2 + $0xf1] sm:$0xff] }
 0x292   :  { %9175 = vst [vmem:[#allocation192_spill] sm:$0xff] %v6480_v55  ;;  %2747 = vrot.lane.b32.xlu0 %v817_v52, %s5049_s15 }
 0x293   :  { %v6474_v37 = vpop.permute.xlu1 %1785 }
 0x294   :  { %9174 = vst [vmem:[#allocation191_spill] sm:$0xff] %v6474_v37  ;;  %v692_v37 = vld [vmem:[#allocation2 + $0x10f] sm:$0xff] }
 0x295   :  { %2493 = vrot.lane.b32.xlu1 %v6157_v53, %s5048_s1  ;;  %v6486_v25 = vpop.permute.xlu0 %1791 }
 0x296   :  { %9177 = vst [vmem:[#allocation194_spill] sm:$0xff] %v6486_v25  ;;  %2749 = vrot.lane.b32.xlu0 %v818_v29, %s5049_s15 }
 0x297   :  { %v6482_v45 = vpop.permute.xlu1 %1789 }
 0x298   :  { %9176 = vst [vmem:[#allocation193_spill] sm:$0xff] %v6482_v45 }
 0x299   :  { %1983 = vrot.lane.b32.xlu1 %v817_v52, %s5046_s10  ;;  %v6492_v53 = vpop.permute.xlu0 %1795 }
 0x29a   :  { %9179 = vst [vmem:[#allocation196_spill] sm:$0xff] %v6492_v53  ;;  %2239 = vrot.lane.b32.xlu0 %v691_v33, %s5047_s14 }
 0x29b   :  { %v6488_v46 = vpop.permute.xlu1 %1793 }
 0x29c   :  { %9178 = vst [vmem:[#allocation195_spill] sm:$0xff] %v6488_v46 }
 0x29d   :  { %1985 = vrot.lane.b32.xlu1 %v818_v29, %s5046_s10  ;;  %v6498_v52 = vpop.permute.xlu0 %1799  ;;  %v819_v29 = vld [vmem:[#allocation2 + $0x109] sm:$0xff] }
 0x29e   :  { %9181 = vst [vmem:[#allocation198_spill] sm:$0xff] %v6498_v52  ;;  %2495 = vrot.lane.b32.xlu0 %v6165_v28, %s5048_s1  ;;  %v693_v28 = vld [vmem:[#allocation2 + $0x127] sm:$0xff] }
 0x29f   :  { %v6494_v55 = vpop.permute.xlu1 %1797 }
 0x2a0   :  { %9180 = vst [vmem:[#allocation197_spill] sm:$0xff] %v6494_v55 }
 0x2a1   :  { %2241 = vrot.lane.b32.xlu1 %v692_v37, %s5047_s14  ;;  %v6506_v46 = vpop.permute.xlu0 %1803  ;;  %v820_v37 = vld [vmem:[#allocation2 + $0x111] sm:$0xff] }
 0x2a2   :  { %9183 = vst [vmem:[#allocation200_spill] sm:$0xff] %v6506_v46  ;;  %2751 = vrot.lane.b32.xlu0 %v819_v29, %s5049_s15 }
 0x2a3   :  { %v6500_v45 = vpop.permute.xlu1 %1801 }
 0x2a4   :  { %9182 = vst [vmem:[#allocation199_spill] sm:$0xff] %v6500_v45  ;;  %v694_v45 = vld [vmem:[#allocation2 + $0x12f] sm:$0xff] }
 0x2a5   :  { %2497 = vrot.lane.b32.xlu1 %v6169_v32, %s5048_s1  ;;  %v6512_v33 = vpop.permute.xlu0 %1807 }
 0x2a6   :  { %9185 = vst [vmem:[#allocation202_spill] sm:$0xff] %v6512_v33  ;;  %2753 = vrot.lane.b32.xlu0 %v820_v37, %s5049_s15 }
 0x2a7   :  { %v6508_v53 = vpop.permute.xlu1 %1805 }
 0x2a8   :  { %9184 = vst [vmem:[#allocation201_spill] sm:$0xff] %v6508_v53  ;;  %v294_v53 = vld [vmem:[#allocation2 + $0x7] sm:$0xff] }
 0x2a9   :  { %1987 = vrot.lane.b32.xlu1 %v819_v29, %s5046_s10  ;;  %v1960_v32 = vpop.permute.xlu0 %1959 }
 0x2aa   :  { %2243 = vrot.lane.b32.xlu0 %v693_v28, %s5047_s14 }
 0x2ab   :  { %v6514_v52 = vpop.permute.xlu1 %1809 }
 0x2ac   :  { %9186 = vst [vmem:[#allocation203_spill] sm:$0xff] %v6514_v52  ;;  %v2919_v52 = vsel %vm20_vm0, %v294_v53, %v5669_v56 }
 0x2ad   :  { %1989 = vrot.lane.b32.xlu1 %v820_v37, %s5046_s10  ;;  %v2216_v29 = vpop.permute.xlu0 %2215  ;;  %v295_v37 = vld [vmem:[#allocation2 + $0xf] sm:$0xff]  ;;  %v2984_v33 = vsel %vm2983_vm2, %v2919_v52, %v5869_v27 }
 0x2ae   :  { %2499 = vrot.lane.b32.xlu0 %v6177_v24, %s5048_s1  ;;  %v3049_v28 = vsel %vm3048_vm3, %v2984_v33, %v6069_v43  ;;  %v2920_v24 = vsel %vm20_vm0, %v295_v37, %v5675_v60  ;;  %v822_v52 = vld [vmem:[#allocation2 + $0x131] sm:$0xff] }
 0x2af   :  { %v1962_v55 = vpop.permute.xlu1 %1961  ;;  %v3114_v56 = vsel %vm3113_vm4, %v3049_v28, %v6342_v40 }
 0x2b0   :  { %v3179_v27 = vsel %vm3178_vm5, %v3114_v56, %v1960_v32  ;;  %v696_v56 = vld [vmem:[#allocation2 + $0x14f] sm:$0xff] }
 0x2b1   :  { %2245 = vrot.lane.b32.xlu1 %v694_v45, %s5047_s14  ;;  %v821_v45 = vld [vmem:[#allocation2 + $0x129] sm:$0xff]  ;;  %v2472_v25 = vpop.permute.xlu0 %2471  ;;  %v3244_v43 = vsel %vm3243_vm6, %v3179_v27, %v2216_v29 }
 0x2b2   :  { %2755 = vrot.lane.b32.xlu0 %v821_v45, %s5049_s15  ;;  %v3309_v33 = vsel %vm3308_vm7, %v3244_v43, %v2472_v25  ;;  %v823_v43 = vld [vmem:[#allocation2 + $0x149] sm:$0xff] }
 0x2b3   :  { %v2218_v46 = vpop.permute.xlu1 %2217 }
 0x2b5   :  { %2501 = vrot.lane.b32.xlu1 %v6181_v22, %s5048_s1  ;;  %v2985_v22 = vsel %vm2983_vm2, %v2920_v24, %v5871_v39  ;;  %v2728_v60 = vpop.permute.xlu0 %2727 }
 0x2b6   :  { %v3050_v40 = vsel %vm3048_vm3, %v2985_v22, %v6071_v5  ;;  %v3374_v28 = vsel %vm3373_vm8, %v3309_v33, %v2728_v60  ;;  %2757 = vrot.lane.b32.xlu0 %v822_v52, %s5049_s15  ;;  %v695_v5 = vld [vmem:[#allocation2 + $0x147] sm:$0xff] }
 0x2b7   :  { %v2474_v53 = vpop.permute.xlu1 %2473  ;;  %v3115_v32 = vsel %vm3113_vm4, %v3050_v40, %v6344_v14  ;;  %4861 = vmatprep.mubr.msk.f32.mxu0 %vm3465_vm9, %v3374_v28  ;;  %v4981_v22 = vld [vmem:[#allocation2 + $0x27] sm:$0xff] }
 0x2b8   :  { %v3180_v39 = vsel %vm3178_vm5, %v3115_v32, %v1962_v55  ;;  %v4982_v32 = vld [vmem:[#allocation2 + $0x2f] sm:$0xff] }
 0x2b9   :  { %1991 = vrot.lane.b32.xlu1 %v821_v45, %s5046_s10  ;;  %v3245_v29 = vsel %vm3243_vm6, %v3180_v39, %v2218_v46  ;;  %v2730_v45 = vpop.permute.xlu0 %2729  ;;  %v2921_v46 = vsel %vm20_vm0, %v4981_v22, %v5671_v58  ;;  %v2922_v58 = vsel %vm20_vm0, %v4982_v32, %v5677_v62  ;;  %v4983_v22 = vld [vmem:[#allocation2 + $0x47] sm:$0xff] }
 0x2ba   :  { %v3310_v25 = vsel %vm3308_vm7, %v3245_v29, %v2474_v53  ;;  %2247 = vrot.lane.b32.xlu0 %v695_v5, %s5047_s14  ;;  %v2986_v53 = vsel %vm2983_vm2, %v2921_v46, %v5883_v63  ;;  %v2987_v63 = vsel %vm2983_vm2, %v2922_v58, %v5885_v11 }
 0x2bb   :  { %v1964_v37 = vpop.permute.xlu1 %1963  ;;  %v3375_v14 = vsel %vm3373_vm8, %v3310_v25, %v2730_v45 }
 0x2bc   :  { %4862 = vmatmul.mubr.msk.f32.vlgmr.msra.gmra.mxu0 %vm3465_vm9, %v3375_v14 }
 0x2bd   :  { %1993 = vrot.lane.b32.xlu1 %v822_v52, %s5046_s10  ;;  %v2220_v55 = vpop.permute.xlu0 %2219  ;;  %v3051_v52 = vsel %vm3048_vm3, %v2986_v53, %v6075_v50  ;;  %v824_v50 = vld [vmem:[#allocation2 + $0x151] sm:$0xff]  ;;  %v825_v53 = vld [vmem:[#allocation2 + $0x169] sm:$0xff] }
 0x2be   :  { %2503 = vrot.lane.b32.xlu0 %v6189_v41, %s5048_s1  ;;  %v3116_v33 = vsel %vm3113_vm4, %v3051_v52, %v6350_v15  ;;  %v3052_v15 = vsel %vm3048_vm3, %v2987_v63, %v6077_v48  ;;  %v697_v48 = vld [vmem:[#allocation2 + $0x167] sm:$0xff] }
 0x2bf   :  { %v1966_v24 = vpop.permute.xlu1 %1965  ;;  %v3181_v41 = vsel %vm3178_vm5, %v3116_v33, %v1964_v37  ;;  %v3117_v62 = vsel %vm3113_vm4, %v3052_v15, %v6352_v49 }
 0x2c0   :  { %v3182_v5 = vsel %vm3178_vm5, %v3117_v62, %v1966_v24 }
 0x2c1   :  { %2249 = vrot.lane.b32.xlu1 %v696_v56, %s5047_s14  ;;  %v2476_v40 = vpop.permute.xlu0 %2475  ;;  %v698_v56 = vld [vmem:[#allocation2 + $0x16f] sm:$0xff] }
 0x2c2   :  { %2759 = vrot.lane.b32.xlu0 %v823_v43, %s5049_s15 }
 0x2c3   :  { %v2222_v27 = vpop.permute.xlu1 %2221 }
 0x2c4   :  { %v3247_v11 = vsel %vm3243_vm6, %v3182_v5, %v2222_v27  ;;  %v2923_v27 = vsel %vm20_vm0, %v4983_v22, %v5681_v0 }
 0x2c5   :  { %2505 = vrot.lane.b32.xlu1 %v6193_v1, %s5048_s1  ;;  %v3246_v1 = vsel %vm3243_vm6, %v3181_v41, %v2220_v55  ;;  %v2732_v39 = vpop.permute.xlu0 %2731  ;;  %v2988_v46 = vsel %vm2983_vm2, %v2923_v27, %v5889_v3 }
 0x2c6   :  { %v3311_v28 = vsel %vm3308_vm7, %v3246_v1, %v2476_v40  ;;  %2761 = vrot.lane.b32.xlu0 %v824_v50, %s5049_s15 }
 0x2c7   :  { %v2478_v60 = vpop.permute.xlu1 %2477  ;;  %v3376_v37 = vsel %vm3373_vm8, %v3311_v28, %v2732_v39  ;;  %v700_v28 = vld [vmem:[#allocation2 + $0x18f] sm:$0xff] }
 0x2c8   :  { %4864 = vmatprep.mubr.msk.f32.mxu0 %vm3465_vm9, %v3376_v37  ;;  %v3312_v25 = vsel %vm3308_vm7, %v3247_v11, %v2478_v60  ;;  %v4984_v60 = vld [vmem:[#allocation2 + $0x4f] sm:$0xff] }
 0x2c9   :  { %1995 = vrot.lane.b32.xlu1 %v823_v43, %s5046_s10  ;;  %v2734_v45 = vpop.permute.xlu0 %2733  ;;  %v3053_v43 = vsel %vm3048_vm3, %v2988_v46, %v6081_v35  ;;  %v2924_v0 = vsel %vm20_vm0, %v4984_v60, %v5683_v2  ;;  %v826_v35 = vld [vmem:[#allocation2 + $0x171] sm:$0xff] }
 0x2ca   :  { %v3377_v49 = vsel %vm3373_vm8, %v3312_v25, %v2734_v45  ;;  %2251 = vrot.lane.b32.xlu0 %v697_v48, %s5047_s14  ;;  %v3118_v40 = vsel %vm3113_vm4, %v3053_v43, %v6356_v61  ;;  %v827_v48 = vld [vmem:[#allocation2 + $0x189] sm:$0xff] }
 0x2cb   :  { %v1968_v29 = vpop.permute.xlu1 %1967  ;;  %4865 = vmatmul.mubr.msk.f32.gmra.mxu0 %vm3465_vm9, %v3377_v49 }
 0x2cd   :  { %1997 = vrot.lane.b32.xlu1 %v824_v50, %s5046_s10  ;;  %v2224_v24 = vpop.permute.xlu0 %2223 }
 0x2ce   :  { %2507 = vrot.lane.b32.xlu0 %v6201_v34, %s5048_s1  ;;  %v3183_v34 = vsel %vm3178_vm5, %v3118_v40, %v1968_v29  ;;  %v4985_v29 = vld [vmem:[#allocation2 + $0x67] sm:$0xff] }
 0x2cf   :  { %v1970_v14 = vpop.permute.xlu1 %1969  ;;  %v3248_v3 = vsel %vm3243_vm6, %v3183_v34, %v2224_v24  ;;  %v2925_v5 = vsel %vm20_vm0, %v4985_v29, %v5687_v4 }
 0x2d0   :  { %v2990_v11 = vsel %vm2983_vm2, %v2925_v5, %v5895_v51  ;;  %v703_v5 = vld [vmem:[#allocation2 + $0x1c7] sm:$0xff] }
 0x2d1   :  { %2253 = vrot.lane.b32.xlu1 %v698_v56, %s5047_s14  ;;  %v2480_v52 = vpop.permute.xlu0 %2479  ;;  %v3055_v25 = vsel %vm3048_vm3, %v2990_v11, %v6087_v47  ;;  %v828_v47 = vld [vmem:[#allocation2 + $0x191] sm:$0xff] }
 0x2d2   :  { %2763 = vrot.lane.b32.xlu0 %v825_v53, %s5049_s15  ;;  %v3313_v32 = vsel %vm3308_vm7, %v3248_v3, %v2480_v52  ;;  %v3120_v56 = vsel %vm3113_vm4, %v3055_v25, %v6362_v57  ;;  %v702_v52 = vld [vmem:[#allocation2 + $0x1af] sm:$0xff] }
 0x2d3   :  { %v2226_v55 = vpop.permute.xlu1 %2225  ;;  %v704_v25 = vld [vmem:[#allocation2 + $0x1cf] sm:$0xff] }
 0x2d5   :  { %2509 = vrot.lane.b32.xlu1 %v6205_v36, %s5048_s1  ;;  %v2989_v36 = vsel %vm2983_vm2, %v2924_v0, %v5891_v31  ;;  %v2736_v58 = vpop.permute.xlu0 %2735  ;;  %v766_v0 = vld [vmem:[#allocation2 + $0x1b0] sm:$0xff] }
 0x2d6   :  { %v3054_v61 = vsel %vm3048_vm3, %v2989_v36, %v6083_v44  ;;  %v3378_v41 = vsel %vm3373_vm8, %v3313_v32, %v2736_v58  ;;  %2765 = vrot.lane.b32.xlu0 %v826_v35, %s5049_s15  ;;  %v699_v44 = vld [vmem:[#allocation2 + $0x187] sm:$0xff] }
 0x2d7   :  { %v2482_v33 = vpop.permute.xlu1 %2481  ;;  %v3119_v2 = vsel %vm3113_vm4, %v3054_v61, %v6358_v30  ;;  %4867 = vmatprep.mubr.msk.f32.mxu0 %vm3465_vm9, %v3378_v41  ;;  %v4987_v36 = vld [vmem:[#allocation2 + $0x87] sm:$0xff] }
 0x2d8   :  { %v3184_v1 = vsel %vm3178_vm5, %v3119_v2, %v1970_v14  ;;  %v4986_v14 = vld [vmem:[#allocation2 + $0x6f] sm:$0xff]  ;;  %v2927_v3 = vsel %vm20_vm0, %v4987_v36, %v5693_v8 }
 0x2d9   :  { %1999 = vrot.lane.b32.xlu1 %v825_v53, %s5046_s10  ;;  %v3249_v31 = vsel %vm3243_vm6, %v3184_v1, %v2226_v55  ;;  %v2738_v15 = vpop.permute.xlu0 %2737  ;;  %v2926_v4 = vsel %vm20_vm0, %v4986_v14, %v5689_v6  ;;  %v829_v61 = vld [vmem:[#allocation2 + $0x1a9] sm:$0xff] }
 0x2da   :  { %v3314_v50 = vsel %vm3308_vm7, %v3249_v31, %v2482_v33  ;;  %2255 = vrot.lane.b32.xlu0 %v699_v44, %s5047_s14  ;;  %v765_v33 = vld [vmem:[#allocation2 + $0x1a8] sm:$0xff] }
 0x2db   :  { %v1972_v63 = vpop.permute.xlu1 %1971  ;;  %v3379_v30 = vsel %vm3373_vm8, %v3314_v50, %v2738_v15  ;;  %v9188_v50 = vld [vmem:[#allocation112_spill] sm:$0xff] }
 0x2dc   :  { %4868 = vmatmul.mubr.msk.f32.gmra.mxu0 %vm3465_vm9, %v3379_v30  ;;  %v9189_v30 = vld [vmem:[#allocation167_spill] sm:$0xff] }
 0x2dd   :  { %2001 = vrot.lane.b32.xlu1 %v826_v35, %s5046_s10  ;;  %v2228_v62 = vpop.permute.xlu0 %2227  ;;  %v2992_v35 = vsel %vm2983_vm2, %v2927_v3, %v5901_v19  ;;  %v9187_v19 = vld [vmem:[#allocation57_spill] sm:$0xff] }
 0x2de   :  { %2511 = vrot.lane.b32.xlu0 %v6213_v20, %s5048_s1  ;;  %v3185_v20 = vsel %vm3178_vm5, %v3120_v56, %v1972_v63  ;;  %v3057_v32 = vsel %vm3048_vm3, %v2992_v35, %v6095_v54  ;;  %v4988_v63 = vld [vmem:[#allocation2 + $0x8f] sm:$0xff] }
 0x2df   :  { %v1974_v39 = vpop.permute.xlu1 %1973  ;;  %v3250_v51 = vsel %vm3243_vm6, %v3185_v20, %v2228_v62  ;;  %v3122_v2 = vsel %vm3113_vm4, %v3057_v32, %v6368_v16  ;;  %v2928_v8 = vsel %vm20_vm0, %v4988_v63, %v5695_v10  ;;  %v830_v54 = vld [vmem:[#allocation2 + $0x1b1] sm:$0xff] }
 0x2e0   :  { %v2993_v31 = vsel %vm2983_vm2, %v2928_v8, %v9187_v19  ;;  %v705_v8 = vld [vmem:[#allocation2 + $0x1e7] sm:$0xff] }
 0x2e1   :  { %2257 = vrot.lane.b32.xlu1 %v700_v28, %s5047_s14  ;;  %v2484_v45 = vpop.permute.xlu0 %2483  ;;  %v3058_v16 = vsel %vm3048_vm3, %v2993_v31, %v9188_v50  ;;  %v706_v31 = vld [vmem:[#allocation2 + $0x1ef] sm:$0xff] }
 0x2e2   :  { %2767 = vrot.lane.b32.xlu0 %v827_v48, %s5049_s15  ;;  %v3315_v24 = vsel %vm3308_vm7, %v3250_v51, %v2484_v45  ;;  %v3123_v10 = vsel %vm3113_vm4, %v3058_v16, %v9189_v30  ;;  %v9190_v51 = vld [vmem:[#allocation3_spill] sm:$0xff]  ;;  %v769_v50 = vld [vmem:[#allocation2 + $0x1e8] sm:$0xff] }
 0x2e3   :  { %v2230_v37 = vpop.permute.xlu1 %2229  ;;  %v4991_v30 = vld [vmem:[#allocation2 + $0xc7] sm:$0xff] }
 0x2e5   :  { %2513 = vrot.lane.b32.xlu1 %v6217_v18, %s5048_s1  ;;  %v2991_v18 = vsel %vm2983_vm2, %v2926_v4, %v5897_v23  ;;  %v2740_v55 = vpop.permute.xlu0 %2739  ;;  %v768_v4 = vld [vmem:[#allocation2 + $0x1d0] sm:$0xff] }
 0x2e6   :  { %v3056_v57 = vsel %vm3048_vm3, %v2991_v18, %v6089_v42  ;;  %v3380_v22 = vsel %vm3373_vm8, %v3315_v24, %v2740_v55  ;;  %2769 = vrot.lane.b32.xlu0 %v828_v47, %s5049_s15  ;;  %v701_v42 = vld [vmem:[#allocation2 + $0x1a7] sm:$0xff] }
 0x2e7   :  { %v2486_v49 = vpop.permute.xlu1 %2485  ;;  %v3121_v6 = vsel %vm3113_vm4, %v3056_v57, %v6364_v59  ;;  %4870 = vmatprep.mubr.msk.f32.mxu0 %vm3465_vm9, %v3380_v22  ;;  %v4989_v18 = vld [vmem:[#allocation2 + $0xa7] sm:$0xff]  ;;  %v9191_v57 = vld [vmem:[#allocation58_spill] sm:$0xff] }
 0x2e8   :  { %v3186_v46 = vsel %vm3178_vm5, %v3121_v6, %v1974_v39  ;;  %v831_v55 = vld [vmem:[#allocation2 + $0x1c9] sm:$0xff] }
 0x2e9   :  { %2003 = vrot.lane.b32.xlu1 %v827_v48, %s5046_s10  ;;  %v3251_v23 = vsel %vm3243_vm6, %v3186_v46, %v2230_v37  ;;  %v2742_v43 = vpop.permute.xlu0 %2741  ;;  %v9192_v6 = vld [vmem:[#allocation113_spill] sm:$0xff]  ;;  %v9193_v46 = vld [vmem:[#allocation168_spill] sm:$0xff] }
 0x2ea   :  { %v3316_v53 = vsel %vm3308_vm7, %v3251_v23, %v2486_v49  ;;  %2259 = vrot.lane.b32.xlu0 %v701_v42, %s5047_s14  ;;  %v767_v49 = vld [vmem:[#allocation2 + $0x1c8] sm:$0xff] }
 0x2eb   :  { %v1976_v27 = vpop.permute.xlu1 %1975  ;;  %v3381_v59 = vsel %vm3373_vm8, %v3316_v53, %v2742_v43  ;;  %v4990_v53 = vld [vmem:[#allocation2 + $0xaf] sm:$0xff] }
 0x2ec   :  { %4871 = vmatmul.mubr.msk.f32.gmra.mxu0 %vm3465_vm9, %v3381_v59  ;;  %v3187_v1 = vsel %vm3178_vm5, %v3122_v2, %v1976_v27  ;;  %v9194_v43 = vld [vmem:[#allocation4_spill] sm:$0xff] }
 0x2ed   :  { %2005 = vrot.lane.b32.xlu1 %v828_v47, %s5046_s10  ;;  %v2232_v60 = vpop.permute.xlu0 %2231  ;;  %v2929_v47 = vsel %vm20_vm0, %v4989_v18, %v9190_v51 }
 0x2ee   :  { %2515 = vrot.lane.b32.xlu0 %v765_v33, %s5048_s1  ;;  %v3252_v44 = vsel %vm3243_vm6, %v3187_v1, %v2232_v60  ;;  %v2994_v24 = vsel %vm2983_vm2, %v2929_v47, %v9191_v57  ;;  %v834_v47 = vld [vmem:[#allocation2 + $0x1f1] sm:$0xff]  ;;  %v9203_v57 = vld [vmem:[#allocation116_spill] sm:$0xff] }
 0x2ef   :  { %v1978_v40 = vpop.permute.xlu1 %1977  ;;  %v3059_v22 = vsel %vm3048_vm3, %v2994_v24, %v9192_v6  ;;  %v9204_v6 = vld [vmem:[#allocation170_spill] sm:$0xff] }
 0x2f0   :  { %v3188_v37 = vsel %vm3178_vm5, %v3123_v10, %v1978_v40  ;;  %v3124_v23 = vsel %vm3113_vm4, %v3059_v22, %v9193_v46  ;;  %v9195_v40 = vld [vmem:[#allocation59_spill] sm:$0xff]  ;;  %v9198_v10 = vld [vmem:[#allocation5_spill] sm:$0xff] }
 0x2f1   :  { %2261 = vrot.lane.b32.xlu1 %v702_v52, %s5047_s14  ;;  %v2488_v58 = vpop.permute.xlu0 %2487  ;;  %v2930_v52 = vsel %vm20_vm0, %v4990_v53, %v9194_v43  ;;  %v707_v53 = vld [vmem:[#allocation2 + $0x207] sm:$0xff] }
 0x2f2   :  { %2771 = vrot.lane.b32.xlu0 %v829_v61, %s5049_s15  ;;  %v3317_v15 = vsel %vm3308_vm7, %v3252_v44, %v2488_v58  ;;  %v2995_v33 = vsel %vm2983_vm2, %v2930_v52, %v9195_v40 }
 0x2f3   :  { %v2234_v34 = vpop.permute.xlu1 %2233 }
 0x2f4   :  { %v3253_v29 = vsel %vm3243_vm6, %v3188_v37, %v2234_v34  ;;  %v9196_v34 = vld [vmem:[#allocation114_spill] sm:$0xff] }
 0x2f5   :  { %2517 = vrot.lane.b32.xlu1 %v766_v0, %s5048_s1  ;;  %v2744_v28 = vpop.permute.xlu0 %2743  ;;  %v832_v0 = vld [vmem:[#allocation2 + $0x1d1] sm:$0xff]  ;;  %v3060_v36 = vsel %vm3048_vm3, %v2995_v33, %v9196_v34 }
 0x2f6   :  { %v3382_v39 = vsel %vm3373_vm8, %v3317_v15, %v2744_v28  ;;  %2773 = vrot.lane.b32.xlu0 %v830_v54, %s5049_s15  ;;  %v770_v15 = vld [vmem:[#allocation2 + $0x1f0] sm:$0xff] }
 0x2f7   :  { %v2490_v41 = vpop.permute.xlu1 %2489  ;;  %4873 = vmatprep.mubr.msk.f32.mxu0 %vm3465_vm9, %v3382_v39  ;;  %v2931_v39 = vsel %vm20_vm0, %v4991_v30, %v9198_v10  ;;  %v772_v34 = vld [vmem:[#allocation2 + $0x210] sm:$0xff] }
 0x2f8   :  { %v3318_v11 = vsel %vm3308_vm7, %v3253_v29, %v2490_v41  ;;  %v833_v29 = vld [vmem:[#allocation2 + $0x1e9] sm:$0xff]  ;;  %v836_v10 = vld [vmem:[#allocation2 + $0x211] sm:$0xff] }
 0x2f9   :  { %2007 = vrot.lane.b32.xlu1 %v829_v61, %s5046_s10  ;;  %v2746_v48 = vpop.permute.xlu0 %2745  ;;  %v9197_v61 = vld [vmem:[#allocation169_spill] sm:$0xff] }
 0x2fa   :  { %v3383_v45 = vsel %vm3373_vm8, %v3318_v11, %v2746_v48  ;;  %2263 = vrot.lane.b32.xlu0 %v703_v5, %s5047_s14  ;;  %v3125_v32 = vsel %vm3113_vm4, %v3060_v36, %v9197_v61  ;;  %v9200_v5 = vld [vmem:[#allocation115_spill] sm:$0xff] }
 0x2fb   :  { %v1980_v62 = vpop.permute.xlu1 %1979  ;;  %4874 = vmatmul.mubr.msk.f32.gmra.mxu0 %vm3465_vm9, %v3383_v45 }
 0x2fc   :  { %v3189_v59 = vsel %vm3178_vm5, %v3124_v23, %v1980_v62  ;;  %v9199_v62 = vld [vmem:[#allocation60_spill] sm:$0xff] }
 0x2fd   :  { %2009 = vrot.lane.b32.xlu1 %v830_v54, %s5046_s10  ;;  %v2236_v14 = vpop.permute.xlu0 %2235  ;;  %v2996_v37 = vsel %vm2983_vm2, %v2931_v39, %v9199_v62  ;;  %v9211_v39 = vld [vmem:[#allocation118_spill] sm:$0xff] }
 0x2fe   :  { %2519 = vrot.lane.b32.xlu0 %v767_v49, %s5048_s1  ;;  %v3254_v60 = vsel %vm3243_vm6, %v3189_v59, %v2236_v14  ;;  %v3061_v11 = vsel %vm3048_vm3, %v2996_v37, %v9200_v5  ;;  %v9201_v49 = vld [vmem:[#allocation6_spill] sm:$0xff]  ;;  %v708_v59 = vld [vmem:[#allocation2 + $0x20f] sm:$0xff] }
 0x2ff   :  { %v1982_v56 = vpop.permute.xlu1 %1981 }
 0x300   :  { %v3190_v41 = vsel %vm3178_vm5, %v3125_v32, %v1982_v56  ;;  %v4992_v56 = vld [vmem:[#allocation2 + $0xcf] sm:$0xff]  ;;  %v9206_v32 = vld [vmem:[#allocation62_spill] sm:$0xff] }
 0x301   :  { %2265 = vrot.lane.b32.xlu1 %v704_v25, %s5047_s14  ;;  %v2492_v27 = vpop.permute.xlu0 %2491  ;;  %v3126_v25 = vsel %vm3113_vm4, %v3061_v11, %v6382_v21  ;;  %v2932_v14 = vsel %vm20_vm0, %v4992_v56, %v9201_v49  ;;  %v709_v56 = vld [vmem:[#allocation2 + $0x227] sm:$0xff] }
 0x302   :  { %2775 = vrot.lane.b32.xlu0 %v831_v55, %s5049_s15  ;;  %v3319_v3 = vsel %vm3308_vm7, %v3254_v60, %v2492_v27  ;;  %v771_v60 = vld [vmem:[#allocation2 + $0x208] sm:$0xff] }
 0x303   :  { %v2238_v20 = vpop.permute.xlu1 %2237 }
 0x304   :  { %v3255_v63 = vsel %vm3243_vm6, %v3190_v41, %v2238_v20  ;;  %v9202_v20 = vld [vmem:[#allocation61_spill] sm:$0xff] }
 0x305   :  { %2521 = vrot.lane.b32.xlu1 %v768_v4, %s5048_s1  ;;  %v2748_v35 = vpop.permute.xlu0 %2747  ;;  %v2997_v18 = vsel %vm2983_vm2, %v2932_v14, %v9202_v20  ;;  %v9207_v41 = vld [vmem:[#allocation117_spill] sm:$0xff] }
 0x306   :  { %v3384_v58 = vsel %vm3373_vm8, %v3319_v3, %v2748_v35  ;;  %2777 = vrot.lane.b32.xlu0 %v832_v0, %s5049_s15  ;;  %v3062_v21 = vsel %vm3048_vm3, %v2997_v18, %v9203_v57  ;;  %v4993_v3 = vld [vmem:[#allocation2 + $0xe7] sm:$0xff] }
 0x307   :  { %v2494_v42 = vpop.permute.xlu1 %2493  ;;  %4876 = vmatprep.mubr.msk.f32.mxu0 %vm3465_vm9, %v3384_v58  ;;  %v3127_v22 = vsel %vm3113_vm4, %v3062_v21, %v9204_v6  ;;  %v9205_v35 = vld [vmem:[#allocation7_spill] sm:$0xff]  ;;  %v773_v18 = vld [vmem:[#allocation2 + $0x228] sm:$0xff] }
 0x308   :  { %v3320_v1 = vsel %vm3308_vm7, %v3255_v63, %v2494_v42  ;;  %v2933_v61 = vsel %vm20_vm0, %v4993_v3, %v9205_v35  ;;  %v4995_v21 = vld [vmem:[#allocation2 + $0x107] sm:$0xff]  ;;  %v838_v35 = vld [vmem:[#allocation2 + $0x231] sm:$0xff] }
 0x309   :  { %2011 = vrot.lane.b32.xlu1 %v831_v55, %s5046_s10  ;;  %v2750_v19 = vpop.permute.xlu0 %2749  ;;  %v2998_v58 = vsel %vm2983_vm2, %v2933_v61, %v9206_v32  ;;  %v9213_v6 = vld [vmem:[#allocation64_spill] sm:$0xff] }
 0x30a   :  { %v3385_v44 = vsel %vm3373_vm8, %v3320_v1, %v2750_v19  ;;  %2267 = vrot.lane.b32.xlu0 %v705_v8, %s5047_s14  ;;  %v3063_v63 = vsel %vm3048_vm3, %v2998_v58, %v9207_v41  ;;  %v9208_v1 = vld [vmem:[#allocation171_spill] sm:$0xff]  ;;  %v9218_v61 = vld [vmem:[#allocation120_spill] sm:$0xff]  ;;  %v647_v41 = vld [vmem:[#allocation2 + $0x271] sm:$0xff] }
 0x30b   :  { %v1984_v2 = vpop.permute.xlu1 %1983  ;;  %4877 = vmatmul.mubr.msk.f32.gmra.mxu0 %vm3465_vm9, %v3385_v44  ;;  %v3128_v19 = vsel %vm3113_vm4, %v3063_v63, %v9208_v1  ;;  %v4994_v44 = vld [vmem:[#allocation2 + $0xef] sm:$0xff] }
 0x30c   :  { %v3191_v4 = vsel %vm3178_vm5, %v3126_v25, %v1984_v2  ;;  %v835_v2 = vld [vmem:[#allocation2 + $0x209] sm:$0xff] }
 0x30d   :  { %2013 = vrot.lane.b32.xlu1 %v832_v0, %s5046_s10  ;;  %v2240_v16 = vpop.permute.xlu0 %2239  ;;  %v9219_v63 = vld [vmem:[#allocation173_spill] sm:$0xff] }
 0x30e   :  { %2523 = vrot.lane.b32.xlu0 %v769_v50, %s5048_s1  ;;  %v3256_v51 = vsel %vm3243_vm6, %v3191_v4, %v2240_v16  ;;  %v710_v4 = vld [vmem:[#allocation2 + $0x22f] sm:$0xff] }
 0x30f   :  { %v1986_v54 = vpop.permute.xlu1 %1985 }
 0x310   :  { %v3192_v23 = vsel %vm3178_vm5, %v3127_v22, %v1986_v54  ;;  %v9209_v54 = vld [vmem:[#allocation8_spill] sm:$0xff] }
 0x311   :  { %2269 = vrot.lane.b32.xlu1 %v706_v31, %s5047_s14  ;;  %v2496_v48 = vpop.permute.xlu0 %2495  ;;  %v2934_v50 = vsel %vm20_vm0, %v4994_v44, %v9209_v54  ;;  %v711_v54 = vld [vmem:[#allocation2 + $0x287] sm:$0xff] }
 0x312   :  { %2779 = vrot.lane.b32.xlu0 %v833_v29, %s5049_s15  ;;  %v3321_v24 = vsel %vm3308_vm7, %v3256_v51, %v2496_v48 }
 0x313   :  { %v2242_v28 = vpop.permute.xlu1 %2241 }
 0x314   :  { %v3257_v42 = vsel %vm3243_vm6, %v3192_v23, %v2242_v28 }
 0x315   :  { %2525 = vrot.lane.b32.xlu1 %v770_v15, %s5048_s1  ;;  %v2752_v55 = vpop.permute.xlu0 %2751  ;;  %v9210_v15 = vld [vmem:[#allocation63_spill] sm:$0xff] }
 0x316   :  { %v3386_v27 = vsel %vm3373_vm8, %v3321_v24, %v2752_v55  ;;  %2781 = vrot.lane.b32.xlu0 %v834_v47, %s5049_s15  ;;  %v2999_v28 = vsel %vm2983_vm2, %v2934_v50, %v9210_v15  ;;  %v9212_v24 = vld [vmem:[#allocation9_spill] sm:$0xff] }
 0x317   :  { %v2498_v45 = vpop.permute.xlu1 %2497  ;;  %4879 = vmatprep.mubr.msk.f32.mxu0 %vm3465_vm9, %v3386_v27  ;;  %v3064_v62 = vsel %vm3048_vm3, %v2999_v28, %v9211_v39  ;;  %v2935_v55 = vsel %vm20_vm0, %v4995_v21, %v9212_v24  ;;  %v837_v27 = vld [vmem:[#allocation2 + $0x229] sm:$0xff]  ;;  %v9225_v21 = vld [vmem:[#allocation67_spill] sm:$0xff] }
 0x318   :  { %v3322_v43 = vsel %vm3308_vm7, %v3257_v42, %v2498_v45  ;;  %v3129_v5 = vsel %vm3113_vm4, %v3064_v62, %v6390_v12  ;;  %v3000_v22 = vsel %vm2983_vm2, %v2935_v55, %v9213_v6  ;;  %v712_v15 = vld [vmem:[#allocation2 + $0x28f] sm:$0xff] }
 0x319   :  { %2015 = vrot.lane.b32.xlu1 %v833_v29, %s5046_s10  ;;  %v2754_v52 = vpop.permute.xlu0 %2753  ;;  %v776_v62 = vld [vmem:[#allocation2 + $0x290] sm:$0xff] }
 0x31a   :  { %v3387_v40 = vsel %vm3373_vm8, %v3322_v43, %v2754_v52  ;;  %2271 = vrot.lane.b32.xlu0 %v707_v53, %s5047_s14  ;;  %v646_v53 = vld [vmem:[#allocation2 + $0x269] sm:$0xff]  ;;  %v840_v6 = vld [vmem:[#allocation2 + $0x291] sm:$0xff] }
 0x31b   :  { %v1988_v46 = vpop.permute.xlu1 %1987  ;;  %4880 = vmatmul.mubr.msk.f32.gmra.mxu0 %vm3465_vm9, %v3387_v40  ;;  %v9215_v43 = vld [vmem:[#allocation172_spill] sm:$0xff] }
 0x31c   :  { %v3193_v16 = vsel %vm3178_vm5, %v3128_v19, %v1988_v46  ;;  %v9214_v46 = vld [vmem:[#allocation119_spill] sm:$0xff]  ;;  %v4996_v40 = vld [vmem:[#allocation2 + $0x10f] sm:$0xff] }
 0x31d   :  { %2017 = vrot.lane.b32.xlu1 %v834_v47, %s5046_s10  ;;  %v2244_v0 = vpop.permute.xlu0 %2243  ;;  %v774_v47 = vld [vmem:[#allocation2 + $0x230] sm:$0xff]  ;;  %v3065_v23 = vsel %vm3048_vm3, %v3000_v22, %v9214_v46  ;;  %v9226_v22 = vld [vmem:[#allocation122_spill] sm:$0xff] }
 0x31e   :  { %2527 = vrot.lane.b32.xlu0 %v771_v60, %s5048_s1  ;;  %v3258_v30 = vsel %vm3243_vm6, %v3193_v16, %v2244_v0  ;;  %v3130_v52 = vsel %vm3113_vm4, %v3065_v23, %v9215_v43 }
 0x31f   :  { %v1990_v33 = vpop.permute.xlu1 %1989 }
 0x320   :  { %v3194_v25 = vsel %vm3178_vm5, %v3129_v5, %v1990_v33  ;;  %v9216_v33 = vld [vmem:[#allocation10_spill] sm:$0xff]  ;;  %v9220_v5 = vld [vmem:[#allocation11_spill] sm:$0xff] }
 0x321   :  { %2273 = vrot.lane.b32.xlu1 %v708_v59, %s5047_s14  ;;  %v2500_v8 = vpop.permute.xlu0 %2499  ;;  %v2936_v60 = vsel %vm20_vm0, %v4996_v40, %v9216_v33  ;;  %v713_v33 = vld [vmem:[#allocation2 + $0x2a7] sm:$0xff] }
 0x322   :  { %2783 = vrot.lane.b32.xlu0 %v835_v2, %s5049_s15  ;;  %v3323_v37 = vsel %vm3308_vm7, %v3258_v30, %v2500_v8 }
 0x323   :  { %v2246_v36 = vpop.permute.xlu1 %2245 }
 0x324   :  { %v3259_v45 = vsel %vm3243_vm6, %v3194_v25, %v2246_v36 }
 0x325   :  { %2529 = vrot.lane.b32.xlu1 %v772_v34, %s5048_s1  ;;  %v2756_v29 = vpop.permute.xlu0 %2755  ;;  %v9217_v34 = vld [vmem:[#allocation65_spill] sm:$0xff] }
 0x326   :  { %v3388_v11 = vsel %vm3373_vm8, %v3323_v37, %v2756_v29  ;;  %2785 = vrot.lane.b32.xlu0 %v836_v10, %s5049_s15  ;;  %v3001_v36 = vsel %vm2983_vm2, %v2936_v60, %v9217_v34  ;;  %v4997_v29 = vld [vmem:[#allocation2 + $0x127] sm:$0xff]  ;;  %v714_v34 = vld [vmem:[#allocation2 + $0x2af] sm:$0xff] }
 0x327   :  { %v2502_v31 = vpop.permute.xlu1 %2501  ;;  %4882 = vmatprep.mubr.msk.f32.mxu0 %vm3465_vm9, %v3388_v11  ;;  %v3066_v32 = vsel %vm3048_vm3, %v3001_v36, %v9218_v61  ;;  %v2937_v11 = vsel %vm20_vm0, %v4997_v29, %v9220_v5  ;;  %v842_v29 = vld [vmem:[#allocation2 + $0x2b1] sm:$0xff]  ;;  %v9233_v5 = vld [vmem:[#allocation124_spill] sm:$0xff] }
 0x328   :  { %v3324_v49 = vsel %vm3308_vm7, %v3259_v45, %v2502_v31  ;;  %v3131_v8 = vsel %vm3113_vm4, %v3066_v32, %v9219_v63  ;;  %v839_v45 = vld [vmem:[#allocation2 + $0x289] sm:$0xff] }
 0x329   :  { %2019 = vrot.lane.b32.xlu1 %v835_v2, %s5046_s10  ;;  %v2758_v14 = vpop.permute.xlu0 %2757  ;;  %v778_v32 = vld [vmem:[#allocation2 + $0x2b0] sm:$0xff] }
 0x32a   :  { %v3389_v12 = vsel %vm3373_vm8, %v3324_v49, %v2758_v14  ;;  %2275 = vrot.lane.b32.xlu0 %v709_v56, %s5047_s14  ;;  %v9222_v56 = vld [vmem:[#allocation121_spill] sm:$0xff] }
 0x32b   :  { %v1992_v48 = vpop.permute.xlu1 %1991  ;;  %4883 = vmatmul.mubr.msk.f32.gmra.mxu0 %vm3465_vm9, %v3389_v12 }
 0x32c   :  { %v3195_v0 = vsel %vm3178_vm5, %v3130_v52, %v1992_v48  ;;  %v9221_v48 = vld [vmem:[#allocation66_spill] sm:$0xff] }
 0x32d   :  { %2021 = vrot.lane.b32.xlu1 %v836_v10, %s5046_s10  ;;  %v2248_v51 = vpop.permute.xlu0 %2247  ;;  %v775_v10 = vld [vmem:[#allocation2 + $0x288] sm:$0xff]  ;;  %v3002_v25 = vsel %vm2983_vm2, %v2937_v11, %v9221_v48 }
 0x32e   :  { %2531 = vrot.lane.b32.xlu0 %v773_v18, %s5048_s1  ;;  %v3260_v3 = vsel %vm3243_vm6, %v3195_v0, %v2248_v51  ;;  %v3067_v49 = vsel %vm3048_vm3, %v3002_v25, %v9222_v56  ;;  %v4998_v18 = vld [vmem:[#allocation2 + $0x12f] sm:$0xff] }
 0x32f   :  { %v1994_v20 = vpop.permute.xlu1 %1993  ;;  %v9224_v51 = vld [vmem:[#allocation12_spill] sm:$0xff] }
 0x330   :  { %v3196_v31 = vsel %vm3178_vm5, %v3131_v8, %v1994_v20  ;;  %v9229_v8 = vld [vmem:[#allocation68_spill] sm:$0xff] }
 0x331   :  { %2277 = vrot.lane.b32.xlu1 %v710_v4, %s5047_s14  ;;  %v2504_v42 = vpop.permute.xlu0 %2503  ;;  %v9223_v4 = vld [vmem:[#allocation174_spill] sm:$0xff]  ;;  %v9234_v25 = vld [vmem:[#allocation176_spill] sm:$0xff] }
 0x332   :  { %2787 = vrot.lane.b32.xlu0 %v837_v27, %s5049_s15  ;;  %v3325_v58 = vsel %vm3308_vm7, %v3260_v3, %v2504_v42  ;;  %v3132_v12 = vsel %vm3113_vm4, %v3067_v49, %v9223_v4  ;;  %v9227_v42 = vld [vmem:[#allocation175_spill] sm:$0xff] }
 0x333   :  { %v2250_v57 = vpop.permute.xlu1 %2249 }
 0x334   :  { %v3261_v44 = vsel %vm3243_vm6, %v3196_v31, %v2250_v57  ;;  %v9230_v31 = vld [vmem:[#allocation123_spill] sm:$0xff] }
 0x335   :  { %2533 = vrot.lane.b32.xlu1 %v774_v47, %s5048_s1  ;;  %v2760_v2 = vpop.permute.xlu0 %2759  ;;  %v2938_v47 = vsel %vm20_vm0, %v4998_v18, %v9224_v51  ;;  %v716_v51 = vld [vmem:[#allocation2 + $0x2cf] sm:$0xff] }
 0x336   :  { %v3390_v1 = vsel %vm3373_vm8, %v3325_v58, %v2760_v2  ;;  %2789 = vrot.lane.b32.xlu0 %v838_v35, %s5049_s15  ;;  %v3003_v24 = vsel %vm2983_vm2, %v2938_v47, %v9225_v21  ;;  %v777_v35 = vld [vmem:[#allocation2 + $0x2a8] sm:$0xff] }
 0x337   :  { %v2506_v59 = vpop.permute.xlu1 %2505  ;;  %4885 = vmatprep.mubr.msk.f32.mxu0 %vm3465_vm9, %v3390_v1  ;;  %v3068_v27 = vsel %vm3048_vm3, %v3003_v24, %v9226_v22  ;;  %v4999_v2 = vld [vmem:[#allocation2 + $0x147] sm:$0xff] }
 0x338   :  { %v3326_v50 = vsel %vm3308_vm7, %v3261_v44, %v2506_v59  ;;  %v779_v21 = vld [vmem:[#allocation2 + $0x2c8] sm:$0xff] }
 0x339   :  { %2023 = vrot.lane.b32.xlu1 %v646_v53, %s5046_s10  ;;  %v2762_v16 = vpop.permute.xlu0 %2761  ;;  %v3133_v53 = vsel %vm3113_vm4, %v3068_v27, %v9227_v42  ;;  %v5001_v22 = vld [vmem:[#allocation2 + $0x167] sm:$0xff] }
 0x33a   :  { %v3391_v28 = vsel %vm3373_vm8, %v3326_v50, %v2762_v16  ;;  %2279 = vrot.lane.b32.xlu0 %v711_v54, %s5047_s14  ;;  %v9235_v27 = vld [vmem:[#allocation15_spill] sm:$0xff] }
 0x33b   :  { %v1996_v19 = vpop.permute.xlu1 %1995  ;;  %4886 = vmatmul.mubr.msk.f32.gmra.mxu0 %vm3465_vm9, %v3391_v28  ;;  %v9231_v28 = vld [vmem:[#allocation14_spill] sm:$0xff] }
 0x33c   :  { %v3197_v57 = vsel %vm3178_vm5, %v3132_v12, %v1996_v19  ;;  %v841_v19 = vld [vmem:[#allocation2 + $0x2a9] sm:$0xff] }
 0x33d   :  { %2025 = vrot.lane.b32.xlu1 %v647_v41, %s5046_s10  ;;  %v2252_v39 = vpop.permute.xlu0 %2251  ;;  %v9228_v41 = vld [vmem:[#allocation13_spill] sm:$0xff]  ;;  %v715_v12 = vld [vmem:[#allocation2 + $0x2c7] sm:$0xff] }
 0x33e   :  { %2535 = vrot.lane.b32.xlu0 %v775_v10, %s5048_s1  ;;  %v3262_v55 = vsel %vm3243_vm6, %v3197_v57, %v2252_v39  ;;  %v2939_v63 = vsel %vm20_vm0, %v4999_v2, %v9228_v41  ;;  %v9232_v39 = vld [vmem:[#allocation69_spill] sm:$0xff]  ;;  %v9241_v2 = vld [vmem:[#allocation126_spill] sm:$0xff] }
 0x33f   :  { %v1998_v30 = vpop.permute.xlu1 %1997  ;;  %v3004_v1 = vsel %vm2983_vm2, %v2939_v63, %v9229_v8 }
 0x340   :  { %v3198_v59 = vsel %vm3178_vm5, %v3133_v53, %v1998_v30  ;;  %v3069_v44 = vsel %vm3048_vm3, %v3004_v1, %v9230_v31  ;;  %v843_v53 = vld [vmem:[#allocation2 + $0x2c9] sm:$0xff] }
 0x341   :  { %2281 = vrot.lane.b32.xlu1 %v712_v15, %s5047_s14  ;;  %v2508_v14 = vpop.permute.xlu0 %2507  ;;  %v3134_v50 = vsel %vm3113_vm4, %v3069_v44, %v6408_v13  ;;  %v5000_v15 = vld [vmem:[#allocation2 + $0x14f] sm:$0xff] }
 0x342   :  { %2791 = vrot.lane.b32.xlu0 %v839_v45, %s5049_s15  ;;  %v3327_v46 = vsel %vm3308_vm7, %v3262_v55, %v2508_v14  ;;  %v2940_v30 = vsel %vm20_vm0, %v5000_v15, %v9231_v28  ;;  %v780_v55 = vld [vmem:[#allocation2 + $0x2d0] sm:$0xff] }
 0x343   :  { %v2254_v37 = vpop.permute.xlu1 %2253  ;;  %v718_v28 = vld [vmem:[#allocation2 + $0x2ef] sm:$0xff] }
 0x344   :  { %v3263_v40 = vsel %vm3243_vm6, %v3198_v59, %v2254_v37 }
 0x345   :  { %2537 = vrot.lane.b32.xlu1 %v776_v62, %s5048_s1  ;;  %v2764_v23 = vpop.permute.xlu0 %2763  ;;  %v3005_v62 = vsel %vm2983_vm2, %v2940_v30, %v9232_v39 }
 0x346   :  { %v3392_v43 = vsel %vm3373_vm8, %v3327_v46, %v2764_v23  ;;  %2793 = vrot.lane.b32.xlu0 %v840_v6, %s5049_s15  ;;  %v3070_v13 = vsel %vm3048_vm3, %v3005_v62, %v9233_v5  ;;  %v2941_v46 = vsel %vm20_vm0, %v5001_v22, %v9235_v27  ;;  %v9236_v23 = vld [vmem:[#allocation70_spill] sm:$0xff]  ;;  %v782_v62 = vld [vmem:[#allocation2 + $0x2f0] sm:$0xff] }
 0x347   :  { %v2510_v20 = vpop.permute.xlu1 %2509  ;;  %4888 = vmatprep.mubr.msk.f32.mxu0 %vm3465_vm9, %v3392_v43  ;;  %v3006_v42 = vsel %vm2983_vm2, %v2941_v46, %v9236_v23  ;;  %v9237_v43 = vld [vmem:[#allocation125_spill] sm:$0xff]  ;;  %v9249_v23 = vld [vmem:[#allocation179_spill] sm:$0xff] }
 0x348   :  { %v3328_v60 = vsel %vm3308_vm7, %v3263_v40, %v2510_v20  ;;  %v9238_v40 = vld [vmem:[#allocation177_spill] sm:$0xff] }
 0x349   :  { %2027 = vrot.lane.b32.xlu1 %v839_v45, %s5046_s10  ;;  %v2766_v0 = vpop.permute.xlu0 %2765  ;;  %v3135_v45 = vsel %vm3113_vm4, %v3070_v13, %v9234_v25  ;;  %v9242_v5 = vld [vmem:[#allocation17_spill] sm:$0xff] }
 0x34a   :  { %v3393_v36 = vsel %vm3373_vm8, %v3328_v60, %v2766_v0  ;;  %2283 = vrot.lane.b32.xlu0 %v713_v33, %s5047_s14  ;;  %v5002_v0 = vld [vmem:[#allocation2 + $0x16f] sm:$0xff] }
 0x34b   :  { %v2000_v52 = vpop.permute.xlu1 %1999  ;;  %4889 = vmatmul.mubr.msk.f32.gmra.mxu0 %vm3465_vm9, %v3393_v36  ;;  %v845_v25 = vld [vmem:[#allocation2 + $0x2e9] sm:$0xff] }
 0x34c   :  { %v3199_v10 = vsel %vm3178_vm5, %v3134_v50, %v2000_v52  ;;  %v3071_v52 = vsel %vm3048_vm3, %v3006_v42, %v9237_v43  ;;  %v717_v50 = vld [vmem:[#allocation2 + $0x2e7] sm:$0xff] }
 0x34d   :  { %2029 = vrot.lane.b32.xlu1 %v840_v6, %s5046_s10  ;;  %v2256_v61 = vpop.permute.xlu0 %2255  ;;  %v3136_v33 = vsel %vm3113_vm4, %v3071_v52, %v9238_v40  ;;  %v719_v40 = vld [vmem:[#allocation2 + $0x307] sm:$0xff] }
 0x34e   :  { %2539 = vrot.lane.b32.xlu0 %v777_v35, %s5048_s1  ;;  %v3264_v37 = vsel %vm3243_vm6, %v3199_v10, %v2256_v61  ;;  %v9240_v35 = vld [vmem:[#allocation71_spill] sm:$0xff]  ;;  %v781_v10 = vld [vmem:[#allocation2 + $0x2e8] sm:$0xff] }
 0x34f   :  { %v2002_v3 = vpop.permute.xlu1 %2001 }
 0x350   :  { %v3200_v14 = vsel %vm3178_vm5, %v3135_v45, %v2002_v3  ;;  %v9244_v45 = vld [vmem:[#allocation127_spill] sm:$0xff] }
 0x351   :  { %2285 = vrot.lane.b32.xlu1 %v714_v34, %s5047_s14  ;;  %v2512_v54 = vpop.permute.xlu0 %2511  ;;  %v9239_v34 = vld [vmem:[#allocation16_spill] sm:$0xff] }
 0x352   :  { %2795 = vrot.lane.b32.xlu0 %v841_v19, %s5049_s15  ;;  %v3329_v11 = vsel %vm3308_vm7, %v3264_v37, %v2512_v54  ;;  %v2942_v36 = vsel %vm20_vm0, %v5002_v0, %v9239_v34  ;;  %v720_v0 = vld [vmem:[#allocation2 + $0x30f] sm:$0xff] }
 0x353   :  { %v2258_v58 = vpop.permute.xlu1 %2257  ;;  %v3007_v61 = vsel %vm2983_vm2, %v2942_v36, %v9240_v35 }
 0x354   :  { %v3265_v4 = vsel %vm3243_vm6, %v3200_v14, %v2258_v58  ;;  %v844_v58 = vld [vmem:[#allocation2 + $0x2d1] sm:$0xff]  ;;  %v3072_v41 = vsel %vm3048_vm3, %v3007_v61, %v9241_v2  ;;  %v9250_v2 = vld [vmem:[#allocation19_spill] sm:$0xff] }
 0x355   :  { %2541 = vrot.lane.b32.xlu1 %v778_v32, %s5048_s1  ;;  %v2768_v48 = vpop.permute.xlu0 %2767  ;;  %v3137_v1 = vsel %vm3113_vm4, %v3072_v41, %v6416_v7  ;;  %v9245_v14 = vld [vmem:[#allocation178_spill] sm:$0xff]  ;;  %v784_v61 = vld [vmem:[#allocation2 + $0x310] sm:$0xff] }
 0x356   :  { %v3394_v56 = vsel %vm3373_vm8, %v3329_v11, %v2768_v48  ;;  %2797 = vrot.lane.b32.xlu0 %v842_v29, %s5049_s15  ;;  %v9243_v11 = vld [vmem:[#allocation72_spill] sm:$0xff] }
 0x357   :  { %v2514_v16 = vpop.permute.xlu1 %2513  ;;  %4891 = vmatprep.mubr.msk.f32.mxu0 %vm3465_vm9, %v3394_v56 }
 0x358   :  { %v3330_v20 = vsel %vm3308_vm7, %v3265_v4, %v2514_v16 }
 0x359   :  { %2031 = vrot.lane.b32.xlu1 %v841_v19, %s5046_s10  ;;  %v2770_v18 = vpop.permute.xlu0 %2769 }
 0x35a   :  { %v3395_v47 = vsel %vm3373_vm8, %v3330_v20, %v2770_v18  ;;  %2287 = vrot.lane.b32.xlu0 %v715_v12, %s5047_s14  ;;  %v5004_v20 = vld [vmem:[#allocation2 + $0x18f] sm:$0xff]  ;;  %v9246_v18 = vld [vmem:[#allocation18_spill] sm:$0xff] }
 0x35b   :  { %v2004_v49 = vpop.permute.xlu1 %2003  ;;  %4892 = vmatmul.mubr.msk.f32.gmra.mxu0 %vm3465_vm9, %v3395_v47 }
 0x35c   :  { %v3201_v3 = vsel %vm3178_vm5, %v3136_v33, %v2004_v49 }
 0x35d   :  { %2033 = vrot.lane.b32.xlu1 %v842_v29, %s5046_s10  ;;  %v2260_v24 = vpop.permute.xlu0 %2259  ;;  %v5003_v29 = vld [vmem:[#allocation2 + $0x187] sm:$0xff] }
 0x35e   :  { %2543 = vrot.lane.b32.xlu0 %v779_v21, %s5048_s1  ;;  %v3266_v32 = vsel %vm3243_vm6, %v3201_v3, %v2260_v24  ;;  %v2943_v13 = vsel %vm20_vm0, %v5003_v29, %v9242_v5  ;;  %v783_v3 = vld [vmem:[#allocation2 + $0x308] sm:$0xff]  ;;  %v9256_v29 = vld [vmem:[#allocation130_spill] sm:$0xff] }
 0x35f   :  { %v2006_v57 = vpop.permute.xlu1 %2005  ;;  %v3008_v48 = vsel %vm2983_vm2, %v2943_v13, %v9243_v11 }
 0x360   :  { %v3202_v44 = vsel %vm3178_vm5, %v3137_v1, %v2006_v57  ;;  %v3073_v56 = vsel %vm3048_vm3, %v3008_v48, %v9244_v45  ;;  %v9247_v57 = vld [vmem:[#allocation73_spill] sm:$0xff] }
 0x361   :  { %2289 = vrot.lane.b32.xlu1 %v716_v51, %s5047_s14  ;;  %v2516_v59 = vpop.permute.xlu0 %2515  ;;  %v3138_v4 = vsel %vm3113_vm4, %v3073_v56, %v9245_v14  ;;  %v2944_v51 = vsel %vm20_vm0, %v5004_v20, %v9246_v18  ;;  %v847_v1 = vld [vmem:[#allocation2 + $0x309] sm:$0xff] }
 0x362   :  { %2799 = vrot.lane.b32.xlu0 %v843_v53, %s5049_s15  ;;  %v3331_v63 = vsel %vm3308_vm7, %v3266_v32, %v2516_v59  ;;  %v3009_v21 = vsel %vm2983_vm2, %v2944_v51, %v9247_v57  ;;  %v9257_v48 = vld [vmem:[#allocation181_spill] sm:$0xff]  ;;  %v785_v57 = vld [vmem:[#allocation2 + $0x328] sm:$0xff] }
 0x363   :  { %v2262_v6 = vpop.permute.xlu1 %2261  ;;  %v722_v18 = vld [vmem:[#allocation2 + $0x32f] sm:$0xff] }
 0x364   :  { %v3267_v54 = vsel %vm3243_vm6, %v3202_v44, %v2262_v6  ;;  %v9248_v6 = vld [vmem:[#allocation128_spill] sm:$0xff] }
 0x365   :  { %2545 = vrot.lane.b32.xlu1 %v780_v55, %s5048_s1  ;;  %v2772_v8 = vpop.permute.xlu0 %2771  ;;  %v846_v55 = vld [vmem:[#allocation2 + $0x2f1] sm:$0xff]  ;;  %v3074_v22 = vsel %vm3048_vm3, %v3009_v21, %v9248_v6  ;;  %v5007_v6 = vld [vmem:[#allocation2 + $0x1c7] sm:$0xff] }
 0x366   :  { %v3396_v19 = vsel %vm3373_vm8, %v3331_v63, %v2772_v8  ;;  %2801 = vrot.lane.b32.xlu0 %v844_v58, %s5049_s15  ;;  %v3139_v42 = vsel %vm3113_vm4, %v3074_v22, %v9249_v23  ;;  %v9251_v63 = vld [vmem:[#allocation74_spill] sm:$0xff]  ;;  %v9258_v22 = vld [vmem:[#allocation21_spill] sm:$0xff] }
 0x367   :  { %v2518_v60 = vpop.permute.xlu1 %2517  ;;  %4894 = vmatprep.mubr.msk.f32.mxu0 %vm3465_vm9, %v3396_v19  ;;  %v9252_v19 = vld [vmem:[#allocation129_spill] sm:$0xff] }
 0x368   :  { %v3332_v16 = vsel %vm3308_vm7, %v3267_v54, %v2518_v60  ;;  %v9253_v54 = vld [vmem:[#allocation180_spill] sm:$0xff] }
 0x369   :  { %2035 = vrot.lane.b32.xlu1 %v843_v53, %s5046_s10  ;;  %v2774_v15 = vpop.permute.xlu0 %2773 }
 0x36a   :  { %v3397_v7 = vsel %vm3373_vm8, %v3332_v16, %v2774_v15  ;;  %2291 = vrot.lane.b32.xlu0 %v717_v50, %s5047_s14  ;;  %v5006_v15 = vld [vmem:[#allocation2 + $0x1af] sm:$0xff] }
 0x36b   :  { %v2008_v31 = vpop.permute.xlu1 %2007  ;;  %4895 = vmatmul.mubr.msk.f32.gmra.mxu0 %vm3465_vm9, %v3397_v7 }
 0x36c   :  { %v3203_v47 = vsel %vm3178_vm5, %v3138_v4, %v2008_v31  ;;  %v721_v4 = vld [vmem:[#allocation2 + $0x327] sm:$0xff] }
 0x36d   :  { %2037 = vrot.lane.b32.xlu1 %v844_v58, %s5046_s10  ;;  %v2264_v39 = vpop.permute.xlu0 %2263  ;;  %v5005_v58 = vld [vmem:[#allocation2 + $0x1a7] sm:$0xff] }
 0x36e   :  { %2547 = vrot.lane.b32.xlu0 %v781_v10, %s5048_s1  ;;  %v3268_v24 = vsel %vm3243_vm6, %v3203_v47, %v2264_v39  ;;  %v2945_v41 = vsel %vm20_vm0, %v5005_v58, %v9250_v2  ;;  %v9255_v10 = vld [vmem:[#allocation75_spill] sm:$0xff] }
 0x36f   :  { %v2010_v30 = vpop.permute.xlu1 %2009  ;;  %v3010_v8 = vsel %vm2983_vm2, %v2945_v41, %v9251_v63  ;;  %v9264_v41 = vld [vmem:[#allocation182_spill] sm:$0xff] }
 0x370   :  { %v3204_v52 = vsel %vm3178_vm5, %v3139_v42, %v2010_v30  ;;  %v3075_v31 = vsel %vm3048_vm3, %v3010_v8, %v9252_v19  ;;  %v849_v42 = vld [vmem:[#allocation2 + $0x329] sm:$0xff] }
 0x371   :  { %2293 = vrot.lane.b32.xlu1 %v718_v28, %s5047_s14  ;;  %v2520_v49 = vpop.permute.xlu0 %2519  ;;  %v3140_v50 = vsel %vm3113_vm4, %v3075_v31, %v9253_v54  ;;  %v9254_v28 = vld [vmem:[#allocation20_spill] sm:$0xff] }
 0x372   :  { %2803 = vrot.lane.b32.xlu0 %v845_v25, %s5049_s15  ;;  %v3333_v27 = vsel %vm3308_vm7, %v3268_v24, %v2520_v49  ;;  %v2946_v7 = vsel %vm20_vm0, %v5006_v15, %v9254_v28  ;;  %v786_v24 = vld [vmem:[#allocation2 + $0x330] sm:$0xff] }
 0x373   :  { %v2266_v37 = vpop.permute.xlu1 %2265  ;;  %v3011_v39 = vsel %vm2983_vm2, %v2946_v7, %v9255_v10  ;;  %v787_v7 = vld [vmem:[#allocation2 + $0x348] sm:$0xff]  ;;  %v788_v10 = vld [vmem:[#allocation2 + $0x350] sm:$0xff] }
 0x374   :  { %v3269_v59 = vsel %vm3243_vm6, %v3204_v52, %v2266_v37  ;;  %v848_v37 = vld [vmem:[#allocation2 + $0x311] sm:$0xff]  ;;  %v3076_v5 = vsel %vm3048_vm3, %v3011_v39, %v9256_v29 }
 0x375   :  { %2549 = vrot.lane.b32.xlu1 %v782_v62, %s5048_s1  ;;  %v2776_v46 = vpop.permute.xlu0 %2775 }
 0x376   :  { %v3398_v53 = vsel %vm3373_vm8, %v3333_v27, %v2776_v46  ;;  %2805 = vrot.lane.b32.xlu0 %v846_v55, %s5049_s15  ;;  %v2947_v27 = vsel %vm20_vm0, %v5007_v6, %v9258_v22  ;;  %v9259_v46 = vld [vmem:[#allocation76_spill] sm:$0xff] }
 0x377   :  { %v2522_v12 = vpop.permute.xlu1 %2521  ;;  %4897 = vmatprep.mubr.msk.f32.mxu0 %vm3465_vm9, %v3398_v53  ;;  %v3012_v23 = vsel %vm2983_vm2, %v2947_v27, %v9259_v46  ;;  %v9260_v53 = vld [vmem:[#allocation131_spill] sm:$0xff] }
 0x378   :  { %v3334_v33 = vsel %vm3308_vm7, %v3269_v59, %v2522_v12 }
 0x379   :  { %2039 = vrot.lane.b32.xlu1 %v845_v25, %s5046_s10  ;;  %v2778_v60 = vpop.permute.xlu0 %2777  ;;  %v3141_v25 = vsel %vm3113_vm4, %v3076_v5, %v9257_v48  ;;  %v9266_v5 = vld [vmem:[#allocation78_spill] sm:$0xff]  ;;  %v9267_v48 = vld [vmem:[#allocation133_spill] sm:$0xff] }
 0x37a   :  { %v3399_v34 = vsel %vm3373_vm8, %v3334_v33, %v2778_v60  ;;  %2295 = vrot.lane.b32.xlu0 %v719_v40, %s5047_s14  ;;  %v5008_v33 = vld [vmem:[#allocation2 + $0x1cf] sm:$0xff]  ;;  %v9261_v60 = vld [vmem:[#allocation22_spill] sm:$0xff] }
 0x37b   :  { %v2012_v43 = vpop.permute.xlu1 %2011  ;;  %4898 = vmatmul.mubr.msk.f32.gmra.mxu0 %vm3465_vm9, %v3399_v34 }
 0x37c   :  { %v3205_v30 = vsel %vm3178_vm5, %v3140_v50, %v2012_v43  ;;  %v3077_v43 = vsel %vm3048_vm3, %v3012_v23, %v9260_v53 }
 0x37d   :  { %2041 = vrot.lane.b32.xlu1 %v846_v55, %s5046_s10  ;;  %v2268_v35 = vpop.permute.xlu0 %2267  ;;  %v3142_v59 = vsel %vm3113_vm4, %v3077_v43, %v6434_v9  ;;  %v725_v43 = vld [vmem:[#allocation2 + $0x367] sm:$0xff] }
 0x37e   :  { %2551 = vrot.lane.b32.xlu0 %v783_v3, %s5048_s1  ;;  %v3270_v62 = vsel %vm3243_vm6, %v3205_v30, %v2268_v35 }
 0x37f   :  { %v2014_v36 = vpop.permute.xlu1 %2013 }
 0x380   :  { %v3206_v49 = vsel %vm3178_vm5, %v3141_v25, %v2014_v36  ;;  %v9262_v36 = vld [vmem:[#allocation77_spill] sm:$0xff] }
 0x381   :  { %2297 = vrot.lane.b32.xlu1 %v720_v0, %s5047_s14  ;;  %v2524_v44 = vpop.permute.xlu0 %2523  ;;  %v2948_v0 = vsel %vm20_vm0, %v5008_v33, %v9261_v60  ;;  %v326_v60 = vld [vmem:[#allocation2 + $0x247] sm:$0xff] }
 0x382   :  { %2807 = vrot.lane.b32.xlu0 %v847_v1, %s5049_s15  ;;  %v3335_v13 = vsel %vm3308_vm7, %v3270_v62, %v2524_v44  ;;  %v3013_v3 = vsel %vm2983_vm2, %v2948_v0, %v9262_v36  ;;  %v723_v44 = vld [vmem:[#allocation2 + $0x347] sm:$0xff]  ;;  %v790_v36 = vld [vmem:[#allocation2 + $0x370] sm:$0xff] }
 0x383   :  { %v2270_v32 = vpop.permute.xlu1 %2269  ;;  %v5009_v62 = vld [vmem:[#allocation2 + $0x1e7] sm:$0xff] }
 0x384   :  { %v3271_v14 = vsel %vm3243_vm6, %v3206_v49, %v2270_v32  ;;  %v9263_v32 = vld [vmem:[#allocation132_spill] sm:$0xff] }
 0x385   :  { %2553 = vrot.lane.b32.xlu1 %v784_v61, %s5048_s1  ;;  %v2780_v11 = vpop.permute.xlu0 %2779  ;;  %v850_v61 = vld [vmem:[#allocation2 + $0x331] sm:$0xff]  ;;  %v3078_v9 = vsel %vm3048_vm3, %v3013_v3, %v9263_v32  ;;  %v789_v0 = vld [vmem:[#allocation2 + $0x368] sm:$0xff] }
 0x386   :  { %v3400_v45 = vsel %vm3373_vm8, %v3335_v13, %v2780_v11  ;;  %2809 = vrot.lane.b32.xlu0 %v848_v37, %s5049_s15  ;;  %v3143_v63 = vsel %vm3113_vm4, %v3078_v9, %v9264_v41  ;;  %v851_v11 = vld [vmem:[#allocation2 + $0x349] sm:$0xff]  ;;  %v9274_v41 = vld [vmem:[#allocation135_spill] sm:$0xff] }
 0x387   :  { %v2526_v16 = vpop.permute.xlu1 %2525  ;;  %4900 = vmatprep.mubr.msk.f32.mxu0 %vm3465_vm9, %v3400_v45  ;;  %v327_v32 = vld [vmem:[#allocation2 + $0x24f] sm:$0xff] }
 0x388   :  { %v3336_v12 = vsel %vm3308_vm7, %v3271_v14, %v2526_v16  ;;  %v724_v16 = vld [vmem:[#allocation2 + $0x34f] sm:$0xff] }
 0x389   :  { %2043 = vrot.lane.b32.xlu1 %v847_v1, %s5046_s10  ;;  %v2782_v20 = vpop.permute.xlu0 %2781  ;;  %v9273_v9 = vld [vmem:[#allocation80_spill] sm:$0xff] }
 0x38a   :  { %v3401_v51 = vsel %vm3373_vm8, %v3336_v12, %v2782_v20  ;;  %2299 = vrot.lane.b32.xlu0 %v721_v4, %s5047_s14  ;;  %v5010_v4 = vld [vmem:[#allocation2 + $0x1ef] sm:$0xff] }
 0x38b   :  { %v2016_v56 = vpop.permute.xlu1 %2015  ;;  %4901 = vmatmul.mubr.msk.f32.gmra.mxu0 %vm3465_vm9, %v3401_v51  ;;  %v9269_v12 = vld [vmem:[#allocation24_spill] sm:$0xff]  ;;  %v9270_v51 = vld [vmem:[#allocation79_spill] sm:$0xff] }
 0x38c   :  { %v3207_v34 = vsel %vm3178_vm5, %v3142_v59, %v2016_v56  ;;  %v9268_v56 = vld [vmem:[#allocation183_spill] sm:$0xff]  ;;  %v2950_v20 = vsel %vm20_vm0, %v5010_v4, %v9269_v12  ;;  %v791_v12 = vld [vmem:[#allocation2 + $0x388] sm:$0xff] }
 0x38d   :  { %2045 = vrot.lane.b32.xlu1 %v848_v37, %s5046_s10  ;;  %v2272_v21 = vpop.permute.xlu0 %2271  ;;  %v9265_v37 = vld [vmem:[#allocation23_spill] sm:$0xff] }
 0x38e   :  { %2555 = vrot.lane.b32.xlu0 %v785_v57, %s5048_s1  ;;  %v3272_v35 = vsel %vm3243_vm6, %v3207_v34, %v2272_v21  ;;  %v2949_v29 = vsel %vm20_vm0, %v5009_v62, %v9265_v37  ;;  %v852_v21 = vld [vmem:[#allocation2 + $0x351] sm:$0xff] }
 0x38f   :  { %v2018_v47 = vpop.permute.xlu1 %2017  ;;  %v3014_v13 = vsel %vm2983_vm2, %v2949_v29, %v9266_v5  ;;  %v9279_v37 = vld [vmem:[#allocation185_spill] sm:$0xff] }
 0x390   :  { %v3208_v19 = vsel %vm3178_vm5, %v3143_v63, %v2018_v47  ;;  %v3079_v25 = vsel %vm3048_vm3, %v3014_v13, %v9267_v48  ;;  %v3015_v47 = vsel %vm2983_vm2, %v2950_v20, %v9270_v51 }
 0x391   :  { %2301 = vrot.lane.b32.xlu1 %v722_v18, %s5047_s14  ;;  %v2528_v52 = vpop.permute.xlu0 %2527  ;;  %v3144_v49 = vsel %vm3113_vm4, %v3079_v25, %v9268_v56  ;;  %v727_v25 = vld [vmem:[#allocation2 + $0x387] sm:$0xff] }
 0x392   :  { %2811 = vrot.lane.b32.xlu0 %v849_v42, %s5049_s15  ;;  %v3337_v58 = vsel %vm3308_vm7, %v3272_v35, %v2528_v52  ;;  %v9272_v35 = vld [vmem:[#allocation25_spill] sm:$0xff] }
 0x393   :  { %v2274_v55 = vpop.permute.xlu1 %2273 }
 0x394   :  { %v3273_v31 = vsel %vm3243_vm6, %v3208_v19, %v2274_v55 }
 0x395   :  { %2557 = vrot.lane.b32.xlu1 %v786_v24, %s5048_s1  ;;  %v2784_v2 = vpop.permute.xlu0 %2783  ;;  %v9271_v24 = vld [vmem:[#allocation134_spill] sm:$0xff] }
 0x396   :  { %v3402_v8 = vsel %vm3373_vm8, %v3337_v58, %v2784_v2  ;;  %2813 = vrot.lane.b32.xlu0 %v850_v61, %s5049_s15  ;;  %v3080_v55 = vsel %vm3048_vm3, %v3015_v47, %v9271_v24  ;;  %v853_v2 = vld [vmem:[#allocation2 + $0x369] sm:$0xff]  ;;  %v9281_v24 = vld [vmem:[#allocation82_spill] sm:$0xff] }
 0x397   :  { %v2530_v40 = vpop.permute.xlu1 %2529  ;;  %4903 = vmatprep.mubr.msk.f32.mxu0 %vm3465_vm9, %v3402_v8  ;;  %v3145_v27 = vsel %vm3113_vm4, %v3080_v55, %v6442_v26  ;;  %v5011_v47 = vld [vmem:[#allocation2 + $0x267] sm:$0xff] }
 0x398   :  { %v3338_v54 = vsel %vm3308_vm7, %v3273_v31, %v2530_v40  ;;  %v726_v40 = vld [vmem:[#allocation2 + $0x36f] sm:$0xff] }
 0x399   :  { %2047 = vrot.lane.b32.xlu1 %v849_v42, %s5046_s10  ;;  %v2786_v50 = vpop.permute.xlu0 %2785 }
 0x39a   :  { %v3403_v15 = vsel %vm3373_vm8, %v3338_v54, %v2786_v50  ;;  %2303 = vrot.lane.b32.xlu0 %v723_v44, %s5047_s14  ;;  %v9276_v44 = vld [vmem:[#allocation26_spill] sm:$0xff] }
 0x39b   :  { %v2020_v1 = vpop.permute.xlu1 %2019  ;;  %4904 = vmatmul.mubr.msk.f32.gmra.mxu0 %vm3465_vm9, %v3403_v15  ;;  %v2952_v54 = vsel %vm20_vm0, %v327_v32, %v9276_v44 }
 0x39c   :  { %v3209_v18 = vsel %vm3178_vm5, %v3144_v49, %v2020_v1  ;;  %v9275_v1 = vld [vmem:[#allocation184_spill] sm:$0xff] }
 0x39d   :  { %2049 = vrot.lane.b32.xlu1 %v850_v61, %s5046_s10  ;;  %v2276_v30 = vpop.permute.xlu0 %2275  ;;  %v2951_v61 = vsel %vm20_vm0, %v326_v60, %v9272_v35  ;;  %v728_v49 = vld [vmem:[#allocation2 + $0x38f] sm:$0xff] }
 0x39e   :  { %2559 = vrot.lane.b32.xlu0 %v787_v7, %s5048_s1  ;;  %v3274_v57 = vsel %vm3243_vm6, %v3209_v18, %v2276_v30  ;;  %v3016_v58 = vsel %vm2983_vm2, %v2951_v61, %v9273_v9  ;;  %v854_v7 = vld [vmem:[#allocation2 + $0x371] sm:$0xff]  ;;  %v9278_v30 = vld [vmem:[#allocation136_spill] sm:$0xff]  ;;  %v9287_v61 = vld [vmem:[#allocation187_spill] sm:$0xff] }
 0x39f   :  { %v2022_v28 = vpop.permute.xlu1 %2021  ;;  %v3081_v63 = vsel %vm3048_vm3, %v3016_v58, %v9274_v41  ;;  %v792_v18 = vld [vmem:[#allocation2 + $0x390] sm:$0xff] }
 0x3a0   :  { %v3210_v42 = vsel %vm3178_vm5, %v3145_v27, %v2022_v28  ;;  %v3146_v19 = vsel %vm3113_vm4, %v3081_v63, %v9275_v1  ;;  %v729_v63 = vld [vmem:[#allocation2 + $0x3a7] sm:$0xff] }
 0x3a1   :  { %2305 = vrot.lane.b32.xlu1 %v724_v16, %s5047_s14  ;;  %v2532_v45 = vpop.permute.xlu0 %2531  ;;  %v9277_v16 = vld [vmem:[#allocation81_spill] sm:$0xff] }
 0x3a2   :  { %2815 = vrot.lane.b32.xlu0 %v851_v11, %s5049_s15  ;;  %v3339_v6 = vsel %vm3308_vm7, %v3274_v57, %v2532_v45  ;;  %v3017_v15 = vsel %vm2983_vm2, %v2952_v54, %v9277_v16  ;;  %v9280_v57 = vld [vmem:[#allocation27_spill] sm:$0xff]  ;;  %v793_v54 = vld [vmem:[#allocation2 + $0x3a8] sm:$0xff]  ;;  %v794_v16 = vld [vmem:[#allocation2 + $0x3b0] sm:$0xff] }
 0x3a3   :  { %v2278_v39 = vpop.permute.xlu1 %2277 }
 0x3a4   :  { %v3275_v53 = vsel %vm3243_vm6, %v3210_v42, %v2278_v39 }
 0x3a5   :  { %2561 = vrot.lane.b32.xlu1 %v788_v10, %s5048_s1  ;;  %v2788_v22 = vpop.permute.xlu0 %2787  ;;  %v3082_v10 = vsel %vm3048_vm3, %v3017_v15, %v9278_v30 }
 0x3a6   :  { %v3404_v46 = vsel %vm3373_vm8, %v3339_v6, %v2788_v22  ;;  %2817 = vrot.lane.b32.xlu0 %v852_v21, %s5049_s15  ;;  %v3147_v29 = vsel %vm3113_vm4, %v3082_v10, %v9279_v37  ;;  %v855_v6 = vld [vmem:[#allocation2 + $0x389] sm:$0xff]  ;;  %v9290_v37 = vld [vmem:[#allocation139_spill] sm:$0xff] }
 0x3a7   :  { %v2534_v14 = vpop.permute.xlu1 %2533  ;;  %4906 = vmatprep.mubr.msk.f32.mxu0 %vm3465_vm9, %v3404_v46  ;;  %v9282_v22 = vld [vmem:[#allocation137_spill] sm:$0xff]  ;;  %v9289_v10 = vld [vmem:[#allocation84_spill] sm:$0xff] }
 0x3a8   :  { %v3340_v52 = vsel %vm3308_vm7, %v3275_v53, %v2534_v14 }
 0x3a9   :  { %2051 = vrot.lane.b32.xlu1 %v851_v11, %s5046_s10  ;;  %v2790_v59 = vpop.permute.xlu0 %2789 }
 0x3aa   :  { %v3405_v26 = vsel %vm3373_vm8, %v3340_v52, %v2790_v59  ;;  %2307 = vrot.lane.b32.xlu0 %v725_v43, %s5047_s14  ;;  %v5012_v43 = vld [vmem:[#allocation2 + $0x26f] sm:$0xff] }
 0x3ab   :  { %v2024_v23 = vpop.permute.xlu1 %2023  ;;  %4907 = vmatmul.mubr.msk.f32.gmra.mxu0 %vm3465_vm9, %v3405_v26  ;;  %v9284_v52 = vld [vmem:[#allocation28_spill] sm:$0xff]  ;;  %v9285_v26 = vld [vmem:[#allocation83_spill] sm:$0xff] }
 0x3ac   :  { %v3211_v50 = vsel %vm3178_vm5, %v3146_v19, %v2024_v23  ;;  %v9283_v23 = vld [vmem:[#allocation186_spill] sm:$0xff]  ;;  %v2954_v59 = vsel %vm20_vm0, %v5012_v43, %v9284_v52  ;;  %v730_v19 = vld [vmem:[#allocation2 + $0x3af] sm:$0xff] }
 0x3ad   :  { %2053 = vrot.lane.b32.xlu1 %v852_v21, %s5046_s10  ;;  %v2280_v34 = vpop.permute.xlu0 %2279  ;;  %v2953_v21 = vsel %vm20_vm0, %v5011_v47, %v9280_v57  ;;  %v9294_v47 = vld [vmem:[#allocation188_spill] sm:$0xff] }
 0x3ae   :  { %2563 = vrot.lane.b32.xlu0 %v789_v0, %s5048_s1  ;;  %v3276_v28 = vsel %vm3243_vm6, %v3211_v50, %v2280_v34  ;;  %v3018_v55 = vsel %vm2983_vm2, %v2953_v21, %v9281_v24  ;;  %v856_v0 = vld [vmem:[#allocation2 + $0x391] sm:$0xff]  ;;  %v795_v43 = vld [vmem:[#allocation2 + $0x3c8] sm:$0xff] }
 0x3af   :  { %v2026_v33 = vpop.permute.xlu1 %2025  ;;  %v3083_v27 = vsel %vm3048_vm3, %v3018_v55, %v9282_v22  ;;  %v9286_v34 = vld [vmem:[#allocation138_spill] sm:$0xff]  ;;  %v731_v22 = vld [vmem:[#allocation2 + $0x3c7] sm:$0xff] }
 0x3b0   :  { %v3212_v11 = vsel %vm3178_vm5, %v3147_v29, %v2026_v33  ;;  %v3148_v42 = vsel %vm3113_vm4, %v3083_v27, %v9283_v23  ;;  %v3019_v33 = vsel %vm2983_vm2, %v2954_v59, %v9285_v26  ;;  %v732_v23 = vld [vmem:[#allocation2 + $0x3cf] sm:$0xff]  ;;  %v9295_v26 = vld [vmem:[#allocation31_spill] sm:$0xff] }
 0x3b1   :  { %2309 = vrot.lane.b32.xlu1 %v726_v40, %s5047_s14  ;;  %v2536_v8 = vpop.permute.xlu0 %2535 }
 0x3b2   :  { %2819 = vrot.lane.b32.xlu0 %v853_v2, %s5049_s15  ;;  %v3341_v39 = vsel %vm3308_vm7, %v3276_v28, %v2536_v8  ;;  %v5013_v28 = vld [vmem:[#allocation2 + $0x287] sm:$0xff] }
 0x3b3   :  { %v2282_v3 = vpop.permute.xlu1 %2281 }
 0x3b4   :  { %v3277_v48 = vsel %vm3243_vm6, %v3212_v11, %v2282_v3 }
 0x3b5   :  { %2565 = vrot.lane.b32.xlu1 %v790_v36, %s5048_s1  ;;  %v2792_v62 = vpop.permute.xlu0 %2791  ;;  %v3084_v36 = vsel %vm3048_vm3, %v3019_v33, %v9286_v34  ;;  %v796_v34 = vld [vmem:[#allocation2 + $0x3d0] sm:$0xff] }
 0x3b6   :  { %v3406_v13 = vsel %vm3373_vm8, %v3341_v39, %v2792_v62  ;;  %2821 = vrot.lane.b32.xlu0 %v854_v7, %s5049_s15  ;;  %v3149_v32 = vsel %vm3113_vm4, %v3084_v36, %v9287_v61  ;;  %v857_v62 = vld [vmem:[#allocation2 + $0x3a9] sm:$0xff] }
 0x3b7   :  { %v2538_v31 = vpop.permute.xlu1 %2537  ;;  %4909 = vmatprep.mubr.msk.f32.mxu1 %vm3465_vm9, %v3406_v13  ;;  %v9297_v36 = vld [vmem:[#allocation141_spill] sm:$0xff] }
 0x3b8   :  { %v3342_v45 = vsel %vm3308_vm7, %v3277_v48, %v2538_v31  ;;  %v5014_v48 = vld [vmem:[#allocation2 + $0x28f] sm:$0xff] }
 0x3b9   :  { %2055 = vrot.lane.b32.xlu1 %v853_v2, %s5046_s10  ;;  %v2794_v56 = vpop.permute.xlu0 %2793  ;;  %v859_v61 = vld [vmem:[#allocation2 + $0x3c9] sm:$0xff] }
 0x3ba   :  { %v3407_v14 = vsel %vm3373_vm8, %v3342_v45, %v2794_v56  ;;  %2311 = vrot.lane.b32.xlu0 %v727_v25, %s5047_s14  ;;  %v9291_v25 = vld [vmem:[#allocation30_spill] sm:$0xff] }
 0x3bb   :  { %v2028_v5 = vpop.permute.xlu1 %2027  ;;  %4910 = vmatmul.mubr.msk.f32.vlgmr.msra.gmra.mxu1 %vm3465_vm9, %v3407_v14  ;;  %v2956_v45 = vsel %vm20_vm0, %v5014_v48, %v9291_v25  ;;  %v5017_v25 = vld [vmem:[#allocation2 + $0x2c7] sm:$0xff] }
 0x3bc   :  { %v3213_v40 = vsel %vm3178_vm5, %v3148_v42, %v2028_v5 }
 0x3bd   :  { %2057 = vrot.lane.b32.xlu1 %v854_v7, %s5046_s10  ;;  %v2284_v20 = vpop.permute.xlu0 %2283  ;;  %v9288_v7 = vld [vmem:[#allocation29_spill] sm:$0xff] }
 0x3be   :  { %2567 = vrot.lane.b32.xlu0 %v791_v12, %s5048_s1  ;;  %v3278_v60 = vsel %vm3243_vm6, %v3213_v40, %v2284_v20  ;;  %v2955_v30 = vsel %vm20_vm0, %v5013_v28, %v9288_v7  ;;  %v858_v12 = vld [vmem:[#allocation2 + $0x3b1] sm:$0xff]  ;;  %v9293_v20 = vld [vmem:[#allocation140_spill] sm:$0xff] }
 0x3bf   :  { %v2030_v4 = vpop.permute.xlu1 %2029  ;;  %v3020_v39 = vsel %vm2983_vm2, %v2955_v30, %v9289_v10  ;;  %v5015_v40 = vld [vmem:[#allocation2 + $0x2a7] sm:$0xff] }
 0x3c0   :  { %v3214_v2 = vsel %vm3178_vm5, %v3149_v32, %v2030_v4  ;;  %v3085_v29 = vsel %vm3048_vm3, %v3020_v39, %v9290_v37  ;;  %v2957_v33 = vsel %vm20_vm0, %v5015_v40, %v9295_v26  ;;  %v9298_v32 = vld [vmem:[#allocation189_spill] sm:$0xff] }
 0x3c1   :  { %2313 = vrot.lane.b32.xlu1 %v728_v49, %s5047_s14  ;;  %v2540_v46 = vpop.permute.xlu0 %2539  ;;  %v3150_v13 = vsel %vm3113_vm4, %v3085_v29, %v6460_v17  ;;  %v9292_v49 = vld [vmem:[#allocation85_spill] sm:$0xff] }
 0x3c2   :  { %2823 = vrot.lane.b32.xlu0 %v855_v6, %s5049_s15  ;;  %v3343_v3 = vsel %vm3308_vm7, %v3278_v60, %v2540_v46  ;;  %v3021_v14 = vsel %vm2983_vm2, %v2956_v45, %v9292_v49  ;;  %v9296_v60 = vld [vmem:[#allocation86_spill] sm:$0xff]  ;;  %v9302_v45 = vld [vmem:[#allocation33_spill] sm:$0xff]  ;;  %v9303_v49 = vld [vmem:[#allocation88_spill] sm:$0xff] }
 0x3c3   :  { %v2286_v51 = vpop.permute.xlu1 %2285  ;;  %v3086_v17 = vsel %vm3048_vm3, %v3021_v14, %v9293_v20  ;;  %v860_v39 = vld [vmem:[#allocation2 + $0x3d1] sm:$0xff] }
 0x3c4   :  { %v3279_v41 = vsel %vm3243_vm6, %v3214_v2, %v2286_v51  ;;  %v3151_v57 = vsel %vm3113_vm4, %v3086_v17, %v9294_v47  ;;  %v5016_v2 = vld [vmem:[#allocation2 + $0x2af] sm:$0xff] }
 0x3c5   :  { %2569 = vrot.lane.b32.xlu1 %v792_v18, %s5048_s1  ;;  %v2796_v35 = vpop.permute.xlu0 %2795 }
 0x3c6   :  { %v3408_v9 = vsel %vm3373_vm8, %v3343_v3, %v2796_v35  ;;  %2825 = vrot.lane.b32.xlu0 %v856_v0, %s5049_s15 }
 0x3c7   :  { %v2542_v53 = vpop.permute.xlu1 %2541  ;;  %4912 = vmatprep.mubr.msk.f32.mxu1 %vm3465_vm9, %v3408_v9 }
 0x3c8   :  { %v3344_v8 = vsel %vm3308_vm7, %v3279_v41, %v2542_v53  ;;  %v9299_v41 = vld [vmem:[#allocation32_spill] sm:$0xff] }
 0x3c9   :  { %2059 = vrot.lane.b32.xlu1 %v855_v6, %s5046_s10  ;;  %v2798_v1 = vpop.permute.xlu0 %2797 }
 0x3ca   :  { %v3409_v31 = vsel %vm3373_vm8, %v3344_v8, %v2798_v1  ;;  %2315 = vrot.lane.b32.xlu0 %v729_v63, %s5047_s14  ;;  %v2958_v63 = vsel %vm20_vm0, %v5016_v2, %v9299_v41  ;;  %v9300_v1 = vld [vmem:[#allocation87_spill] sm:$0xff] }
 0x3cb   :  { %v2032_v58 = vpop.permute.xlu1 %2031  ;;  %4913 = vmatmul.mubr.msk.f32.gmra.mxu1 %vm3465_vm9, %v3409_v31  ;;  %v9310_v2 = vld [vmem:[#allocation35_spill] sm:$0xff] }
 0x3cc   :  { %v3215_v56 = vsel %vm3178_vm5, %v3150_v13, %v2032_v58 }
 0x3cd   :  { %2061 = vrot.lane.b32.xlu1 %v856_v0, %s5046_s10  ;;  %v2288_v50 = vpop.permute.xlu0 %2287  ;;  %v3022_v0 = vsel %vm2983_vm2, %v2957_v33, %v9296_v60 }
 0x3ce   :  { %2571 = vrot.lane.b32.xlu0 %v793_v54, %s5048_s1  ;;  %v3280_v4 = vsel %vm3243_vm6, %v3215_v56, %v2288_v50  ;;  %v3087_v3 = vsel %vm3048_vm3, %v3022_v0, %v9297_v36  ;;  %v2959_v56 = vsel %vm20_vm0, %v5017_v25, %v9302_v45 }
 0x3cf   :  { %v2034_v44 = vpop.permute.xlu1 %2033  ;;  %v3152_v9 = vsel %vm3113_vm4, %v3087_v3, %v9298_v32  ;;  %v3024_v14 = vsel %vm2983_vm2, %v2959_v56, %v9303_v49 }
 0x3d0   :  { %v3216_v55 = vsel %vm3178_vm5, %v3151_v57, %v2034_v44  ;;  %v9301_v44 = vld [vmem:[#allocation142_spill] sm:$0xff]  ;;  %v5018_v57 = vld [vmem:[#allocation2 + $0x2cf] sm:$0xff] }
 0x3d1   :  { %2317 = vrot.lane.b32.xlu1 %v730_v19, %s5047_s14  ;;  %v2544_v5 = vpop.permute.xlu0 %2543  ;;  %v3023_v19 = vsel %vm2983_vm2, %v2958_v63, %v9300_v1  ;;  %v9311_v63 = vld [vmem:[#allocation90_spill] sm:$0xff]  ;;  %v735_v1 = vld [vmem:[#allocation2 + $0x407] sm:$0xff] }
 0x3d2   :  { %2827 = vrot.lane.b32.xlu0 %v857_v62, %s5049_s15  ;;  %v3345_v18 = vsel %vm3308_vm7, %v3280_v4, %v2544_v5  ;;  %v3088_v54 = vsel %vm3048_vm3, %v3023_v19, %v9301_v44  ;;  %v733_v5 = vld [vmem:[#allocation2 + $0x3e7] sm:$0xff]  ;;  %v9312_v19 = vld [vmem:[#allocation145_spill] sm:$0xff] }
 0x3d3   :  { %v2290_v15 = vpop.permute.xlu1 %2289  ;;  %v797_v4 = vld [vmem:[#allocation2 + $0x3e8] sm:$0xff] }
 0x3d4   :  { %v3281_v6 = vsel %vm3243_vm6, %v3216_v55, %v2290_v15  ;;  %v3153_v15 = vsel %vm3113_vm4, %v3088_v54, %v6468_v38  ;;  %v736_v54 = vld [vmem:[#allocation2 + $0x40f] sm:$0xff] }
 0x3d5   :  { %2573 = vrot.lane.b32.xlu1 %v794_v16, %s5048_s1  ;;  %v2800_v51 = vpop.permute.xlu0 %2799 }
 0x3d6   :  { %v3410_v21 = vsel %vm3373_vm8, %v3345_v18, %v2800_v51  ;;  %2829 = vrot.lane.b32.xlu0 %v858_v12, %s5049_s15  ;;  %v9305_v18 = vld [vmem:[#allocation190_spill] sm:$0xff] }
 0x3d7   :  { %v2546_v11 = vpop.permute.xlu1 %2545  ;;  %4915 = vmatprep.mubr.msk.f32.mxu1 %vm3465_vm9, %v3410_v21  ;;  %v9306_v21 = vld [vmem:[#allocation34_spill] sm:$0xff] }
 0x3d8   :  { %v3346_v27 = vsel %vm3308_vm7, %v3281_v6, %v2546_v11  ;;  %v734_v11 = vld [vmem:[#allocation2 + $0x3ef] sm:$0xff] }
 0x3d9   :  { %2063 = vrot.lane.b32.xlu1 %v857_v62, %s5046_s10  ;;  %v2802_v46 = vpop.permute.xlu0 %2801  ;;  %v9307_v6 = vld [vmem:[#allocation89_spill] sm:$0xff] }
 0x3da   :  { %v3411_v42 = vsel %vm3373_vm8, %v3346_v27, %v2802_v46  ;;  %2319 = vrot.lane.b32.xlu0 %v731_v22, %s5047_s14  ;;  %v798_v46 = vld [vmem:[#allocation2 + $0x3f0] sm:$0xff] }
 0x3db   :  { %v2036_v24 = vpop.permute.xlu1 %2035  ;;  %4916 = vmatmul.mubr.msk.f32.gmra.mxu1 %vm3465_vm9, %v3411_v42 }
 0x3dc   :  { %v3217_v8 = vsel %vm3178_vm5, %v3152_v9, %v2036_v24  ;;  %v2960_v24 = vsel %vm20_vm0, %v5018_v57, %v9306_v21  ;;  %v5021_v21 = vld [vmem:[#allocation2 + $0x307] sm:$0xff] }
 0x3dd   :  { %2065 = vrot.lane.b32.xlu1 %v858_v12, %s5046_s10  ;;  %v2292_v52 = vpop.permute.xlu0 %2291  ;;  %v9304_v12 = vld [vmem:[#allocation143_spill] sm:$0xff]  ;;  %v3025_v22 = vsel %vm2983_vm2, %v2960_v24, %v9307_v6  ;;  %v9318_v24 = vld [vmem:[#allocation37_spill] sm:$0xff]  ;;  %v9319_v6 = vld [vmem:[#allocation92_spill] sm:$0xff] }
 0x3de   :  { %2575 = vrot.lane.b32.xlu0 %v795_v43, %s5048_s1  ;;  %v3282_v31 = vsel %vm3243_vm6, %v3217_v8, %v2292_v52  ;;  %v3089_v20 = vsel %vm3048_vm3, %v3024_v14, %v9304_v12  ;;  %v861_v52 = vld [vmem:[#allocation2 + $0x3e9] sm:$0xff] }
 0x3df   :  { %v2038_v53 = vpop.permute.xlu1 %2037  ;;  %v3154_v51 = vsel %vm3113_vm4, %v3089_v20, %v9305_v18 }
 0x3e0   :  { %v3218_v30 = vsel %vm3178_vm5, %v3153_v15, %v2038_v53 }
 0x3e1   :  { %2321 = vrot.lane.b32.xlu1 %v732_v23, %s5047_s14  ;;  %v2548_v35 = vpop.permute.xlu0 %2547  ;;  %v9308_v23 = vld [vmem:[#allocation144_spill] sm:$0xff] }
 0x3e2   :  { %2577 = vrot.lane.b32.xlu0 %v796_v34, %s5048_s1  ;;  %v3347_v50 = vsel %vm3308_vm7, %v3282_v31, %v2548_v35  ;;  %v3090_v42 = vsel %vm3048_vm3, %v3025_v22, %v9308_v23 }
 0x3e3   :  { %v2294_v59 = vpop.permute.xlu1 %2293 }
 0x3e4   :  { %v3283_v10 = vsel %vm3243_vm6, %v3218_v30, %v2294_v59  ;;  %v9309_v59 = vld [vmem:[#allocation191_spill] sm:$0xff] }
 0x3e5   :  { %1811 = vrot.lane.b32.xlu1 %v795_v43, %s5045_s26  ;;  %v2804_v16 = vpop.permute.xlu0 %2803  ;;  %v3155_v40 = vsel %vm3113_vm4, %v3090_v42, %v9309_v59  ;;  %v5022_v59 = vld [vmem:[#allocation2 + $0x30f] sm:$0xff] }
 0x3e6   :  { %v3412_v28 = vsel %vm3373_vm8, %v3347_v50, %v2804_v16  ;;  %1813 = vrot.lane.b32.xlu0 %v796_v34, %s5045_s26  ;;  %v9313_v50 = vld [vmem:[#allocation192_spill] sm:$0xff] }
 0x3e7   :  { %v2550_v58 = vpop.permute.xlu1 %2549  ;;  %4918 = vmatprep.mubr.msk.f32.mxu1 %vm3465_vm9, %v3412_v28  ;;  %v5020_v28 = vld [vmem:[#allocation2 + $0x2ef] sm:$0xff] }
 0x3e8   :  { %v3348_v62 = vsel %vm3308_vm7, %v3283_v10, %v2550_v58  ;;  %v5019_v58 = vld [vmem:[#allocation2 + $0x2e7] sm:$0xff] }
 0x3e9   :  { %2831 = vrot.lane.b32.xlu1 %v859_v61, %s5049_s15  ;;  %v2806_v37 = vpop.permute.xlu0 %2805  ;;  %v2961_v41 = vsel %vm20_vm0, %v5019_v58, %v9310_v2  ;;  %v9325_v58 = vld [vmem:[#allocation195_spill] sm:$0xff] }
 0x3ea   :  { %v3413_v29 = vsel %vm3373_vm8, %v3348_v62, %v2806_v37  ;;  %2833 = vrot.lane.b32.xlu0 %v860_v39, %s5049_s15  ;;  %v3026_v8 = vsel %vm2983_vm2, %v2961_v41, %v9311_v63 }
 0x3eb   :  { %v2040_v7 = vpop.permute.xlu1 %2039  ;;  %4919 = vmatmul.mubr.msk.f32.gmra.mxu1 %vm3465_vm9, %v3413_v29  ;;  %v3091_v31 = vsel %vm3048_vm3, %v3026_v8, %v9312_v19  ;;  %v799_v29 = vld [vmem:[#allocation2 + $0x408] sm:$0xff] }
 0x3ec   :  { %v3219_v55 = vsel %vm3178_vm5, %v3154_v51, %v2040_v7  ;;  %v3156_v16 = vsel %vm3113_vm4, %v3091_v31, %v9313_v50  ;;  %v9314_v7 = vld [vmem:[#allocation36_spill] sm:$0xff] }
 0x3ed   :  { %2067 = vrot.lane.b32.xlu1 %v859_v61, %s5046_s10  ;;  %v2296_v13 = vpop.permute.xlu0 %2295  ;;  %v862_v61 = vld [vmem:[#allocation2 + $0x3f1] sm:$0xff]  ;;  %v2962_v30 = vsel %vm20_vm0, %v5020_v28, %v9314_v7  ;;  %v801_v19 = vld [vmem:[#allocation2 + $0x428] sm:$0xff] }
 0x3ee   :  { %2323 = vrot.lane.b32.xlu0 %v733_v5, %s5047_s14  ;;  %v3284_v27 = vsel %vm3243_vm6, %v3219_v55, %v2296_v13  ;;  %v2963_v55 = vsel %vm20_vm0, %v5021_v21, %v9318_v24  ;;  %v865_v28 = vld [vmem:[#allocation2 + $0x429] sm:$0xff] }
 0x3ef   :  { %v2042_v38 = vpop.permute.xlu1 %2041  ;;  %v3028_v22 = vsel %vm2983_vm2, %v2963_v55, %v9319_v6 }
 0x3f0   :  { %v3220_v60 = vsel %vm3178_vm5, %v3155_v40, %v2042_v38  ;;  %v9316_v38 = vld [vmem:[#allocation146_spill] sm:$0xff] }
 0x3f1   :  { %2069 = vrot.lane.b32.xlu1 %v860_v39, %s5046_s10  ;;  %v2552_v17 = vpop.permute.xlu0 %2551  ;;  %v9315_v39 = vld [vmem:[#allocation91_spill] sm:$0xff]  ;;  %v9322_v40 = vld [vmem:[#allocation38_spill] sm:$0xff] }
 0x3f2   :  { %2579 = vrot.lane.b32.xlu0 %v797_v4, %s5048_s1  ;;  %v3349_v53 = vsel %vm3308_vm7, %v3284_v27, %v2552_v17  ;;  %v3027_v62 = vsel %vm2983_vm2, %v2962_v30, %v9315_v39  ;;  %v863_v17 = vld [vmem:[#allocation2 + $0x409] sm:$0xff]  ;;  %v864_v27 = vld [vmem:[#allocation2 + $0x411] sm:$0xff] }
 0x3f3   :  { %v2298_v48 = vpop.permute.xlu1 %2297  ;;  %v3092_v5 = vsel %vm3048_vm3, %v3027_v62, %v9316_v38  ;;  %v5023_v30 = vld [vmem:[#allocation2 + $0x327] sm:$0xff]  ;;  %v9327_v62 = vld [vmem:[#allocation94_spill] sm:$0xff] }
 0x3f4   :  { %v3285_v0 = vsel %vm3243_vm6, %v3220_v60, %v2298_v48  ;;  %v9317_v48 = vld [vmem:[#allocation193_spill] sm:$0xff] }
 0x3f5   :  { %2325 = vrot.lane.b32.xlu1 %v734_v11, %s5047_s14  ;;  %v2808_v43 = vpop.permute.xlu0 %2807  ;;  %v3157_v25 = vsel %vm3113_vm4, %v3092_v5, %v9317_v48  ;;  %v9323_v60 = vld [vmem:[#allocation93_spill] sm:$0xff] }
 0x3f6   :  { %v3414_v26 = vsel %vm3373_vm8, %v3349_v53, %v2808_v43  ;;  %2581 = vrot.lane.b32.xlu0 %v798_v46, %s5048_s1  ;;  %v9321_v53 = vld [vmem:[#allocation194_spill] sm:$0xff] }
 0x3f7   :  { %v2554_v47 = vpop.permute.xlu1 %2553  ;;  %4921 = vmatprep.mubr.msk.f32.mxu1 %vm3465_vm9, %v3414_v26  ;;  %v2964_v26 = vsel %vm20_vm0, %v5022_v59, %v9322_v40 }
 0x3f8   :  { %v3350_v34 = vsel %vm3308_vm7, %v3285_v0, %v2554_v47  ;;  %v3029_v0 = vsel %vm2983_vm2, %v2964_v26, %v9323_v60  ;;  %v5025_v26 = vld [vmem:[#allocation2 + $0x347] sm:$0xff] }
 0x3f9   :  { %1815 = vrot.lane.b32.xlu1 %v797_v4, %s5045_s26  ;;  %v2810_v36 = vpop.permute.xlu0 %2809  ;;  %v800_v4 = vld [vmem:[#allocation2 + $0x410] sm:$0xff] }
 0x3fa   :  { %v3415_v3 = vsel %vm3373_vm8, %v3350_v34, %v2810_v36  ;;  %1817 = vrot.lane.b32.xlu0 %v798_v46, %s5045_s26  ;;  %v9320_v46 = vld [vmem:[#allocation147_spill] sm:$0xff] }
 0x3fb   :  { %v2044_v33 = vpop.permute.xlu1 %2043  ;;  %4922 = vmatmul.mubr.msk.f32.gmra.mxu1 %vm3465_vm9, %v3415_v3  ;;  %v3093_v23 = vsel %vm3048_vm3, %v3028_v22, %v9320_v46  ;;  %v737_v36 = vld [vmem:[#allocation2 + $0x427] sm:$0xff] }
 0x3fc   :  { %v3221_v10 = vsel %vm3178_vm5, %v3156_v16, %v2044_v33  ;;  %v3158_v43 = vsel %vm3113_vm4, %v3093_v23, %v9321_v53  ;;  %v9324_v3 = vld [vmem:[#allocation148_spill] sm:$0xff]  ;;  %v802_v16 = vld [vmem:[#allocation2 + $0x430] sm:$0xff] }
 0x3fd   :  { %2835 = vrot.lane.b32.xlu1 %v861_v52, %s5049_s15  ;;  %v2300_v32 = vpop.permute.xlu0 %2299 }
 0x3fe   :  { %2837 = vrot.lane.b32.xlu0 %v862_v61, %s5049_s15  ;;  %v3286_v37 = vsel %vm3243_vm6, %v3221_v10, %v2300_v32  ;;  %v9326_v10 = vld [vmem:[#allocation39_spill] sm:$0xff] }
 0x3ff   :  { %v2046_v35 = vpop.permute.xlu1 %2045  ;;  %v2965_v39 = vsel %vm20_vm0, %v5023_v30, %v9326_v10 }
 0x400   :  { %v3222_v49 = vsel %vm3178_vm5, %v3157_v25, %v2046_v35  ;;  %v3094_v35 = vsel %vm3048_vm3, %v3029_v0, %v9324_v3  ;;  %v5024_v25 = vld [vmem:[#allocation2 + $0x32f] sm:$0xff]  ;;  %v9336_v3 = vld [vmem:[#allocation151_spill] sm:$0xff] }
 0x401   :  { %2071 = vrot.lane.b32.xlu1 %v861_v52, %s5046_s10  ;;  %v2556_v44 = vpop.permute.xlu0 %2555  ;;  %v3159_v2 = vsel %vm3113_vm4, %v3094_v35, %v9325_v58  ;;  %v9335_v0 = vld [vmem:[#allocation96_spill] sm:$0xff] }
 0x402   :  { %2327 = vrot.lane.b32.xlu0 %v735_v1, %s5047_s14  ;;  %v3351_v13 = vsel %vm3308_vm7, %v3286_v37, %v2556_v44  ;;  %v3030_v37 = vsel %vm2983_vm2, %v2965_v39, %v9327_v62 }
 0x403   :  { %v2302_v9 = vpop.permute.xlu1 %2301 }
 0x404   :  { %v3287_v14 = vsel %vm3243_vm6, %v3222_v49, %v2302_v9  ;;  %v738_v9 = vld [vmem:[#allocation2 + $0x42f] sm:$0xff] }
 0x405   :  { %2073 = vrot.lane.b32.xlu1 %v862_v61, %s5046_s10  ;;  %v2812_v11 = vpop.permute.xlu0 %2811 }
 0x406   :  { %v3416_v45 = vsel %vm3373_vm8, %v3351_v13, %v2812_v11  ;;  %2583 = vrot.lane.b32.xlu0 %v799_v29, %s5048_s1  ;;  %v9329_v13 = vld [vmem:[#allocation196_spill] sm:$0xff] }
 0x407   :  { %v2558_v15 = vpop.permute.xlu1 %2557  ;;  %4924 = vmatprep.mubr.msk.f32.mxu1 %vm3465_vm9, %v3416_v45  ;;  %v9330_v45 = vld [vmem:[#allocation40_spill] sm:$0xff] }
 0x408   :  { %v3352_v12 = vsel %vm3308_vm7, %v3287_v14, %v2558_v15  ;;  %v9331_v14 = vld [vmem:[#allocation95_spill] sm:$0xff] }
 0x409   :  { %2329 = vrot.lane.b32.xlu1 %v736_v54, %s5047_s14  ;;  %v2814_v20 = vpop.permute.xlu0 %2813 }
 0x40a   :  { %v3417_v18 = vsel %vm3373_vm8, %v3352_v12, %v2814_v20  ;;  %2585 = vrot.lane.b32.xlu0 %v800_v4, %s5048_s1  ;;  %v866_v20 = vld [vmem:[#allocation2 + $0x431] sm:$0xff] }
 0x40b   :  { %v2048_v56 = vpop.permute.xlu1 %2047  ;;  %4925 = vmatmul.mubr.msk.f32.gmra.mxu1 %vm3465_vm9, %v3417_v18 }
 0x40c   :  { %v3223_v33 = vsel %vm3178_vm5, %v3158_v43, %v2048_v56  ;;  %v2966_v56 = vsel %vm20_vm0, %v5024_v25, %v9330_v45  ;;  %v742_v45 = vld [vmem:[#allocation2 + $0x46f] sm:$0xff] }
 0x40d   :  { %1819 = vrot.lane.b32.xlu1 %v799_v29, %s5045_s26  ;;  %v2304_v47 = vpop.permute.xlu0 %2303  ;;  %v9328_v29 = vld [vmem:[#allocation149_spill] sm:$0xff] }
 0x40e   :  { %1821 = vrot.lane.b32.xlu0 %v800_v4, %s5045_s26  ;;  %v3288_v34 = vsel %vm3243_vm6, %v3223_v33, %v2304_v47  ;;  %v3095_v38 = vsel %vm3048_vm3, %v3030_v37, %v9328_v29  ;;  %v3031_v4 = vsel %vm2983_vm2, %v2966_v56, %v9331_v14  ;;  %v9334_v33 = vld [vmem:[#allocation41_spill] sm:$0xff]  ;;  %v9342_v14 = vld [vmem:[#allocation43_spill] sm:$0xff] }
 0x40f   :  { %v2050_v51 = vpop.permute.xlu1 %2049  ;;  %v3160_v11 = vsel %vm3113_vm4, %v3095_v38, %v9329_v13  ;;  %v2967_v60 = vsel %vm20_vm0, %v5025_v26, %v9334_v33  ;;  %v868_v37 = vld [vmem:[#allocation2 + $0x451] sm:$0xff] }
 0x410   :  { %v3224_v8 = vsel %vm3178_vm5, %v3159_v2, %v2050_v51  ;;  %v9348_v26 = vld [vmem:[#allocation154_spill] sm:$0xff] }
 0x411   :  { %2839 = vrot.lane.b32.xlu1 %v863_v17, %s5049_s15  ;;  %v2560_v42 = vpop.permute.xlu0 %2559 }
 0x412   :  { %2841 = vrot.lane.b32.xlu0 %v864_v27, %s5049_s15  ;;  %v3353_v61 = vsel %vm3308_vm7, %v3288_v34, %v2560_v42  ;;  %v740_v42 = vld [vmem:[#allocation2 + $0x44f] sm:$0xff]  ;;  %v3032_v34 = vsel %vm2983_vm2, %v2967_v60, %v9335_v0 }
 0x413   :  { %v2306_v57 = vpop.permute.xlu1 %2305  ;;  %v3097_v35 = vsel %vm3048_vm3, %v3032_v34, %v9336_v3  ;;  %v870_v34 = vld [vmem:[#allocation2 + $0x471] sm:$0xff] }
 0x414   :  { %v3289_v1 = vsel %vm3243_vm6, %v3224_v8, %v2306_v57  ;;  %v9333_v57 = vld [vmem:[#allocation197_spill] sm:$0xff] }
 0x415   :  { %2075 = vrot.lane.b32.xlu1 %v863_v17, %s5046_s10  ;;  %v2816_v32 = vpop.permute.xlu0 %2815  ;;  %v9332_v17 = vld [vmem:[#allocation150_spill] sm:$0xff] }
 0x416   :  { %v3418_v41 = vsel %vm3373_vm8, %v3353_v61, %v2816_v32  ;;  %2331 = vrot.lane.b32.xlu0 %v737_v36, %s5047_s14  ;;  %v3096_v18 = vsel %vm3048_vm3, %v3031_v4, %v9332_v17  ;;  %v804_v36 = vld [vmem:[#allocation2 + $0x450] sm:$0xff] }
 0x417   :  { %v2562_v52 = vpop.permute.xlu1 %2561  ;;  %4927 = vmatprep.mubr.msk.f32.mxu1 %vm3465_vm9, %v3418_v41  ;;  %v3161_v21 = vsel %vm3113_vm4, %v3096_v18, %v9333_v57  ;;  %v867_v32 = vld [vmem:[#allocation2 + $0x449] sm:$0xff] }
 0x418   :  { %v3354_v31 = vsel %vm3308_vm7, %v3289_v1, %v2562_v52  ;;  %v803_v52 = vld [vmem:[#allocation2 + $0x448] sm:$0xff] }
 0x419   :  { %2077 = vrot.lane.b32.xlu1 %v864_v27, %s5046_s10  ;;  %v2818_v44 = vpop.permute.xlu0 %2817  ;;  %v739_v27 = vld [vmem:[#allocation2 + $0x447] sm:$0xff]  ;;  %v5026_v41 = vld [vmem:[#allocation2 + $0x34f] sm:$0xff] }
 0x41a   :  { %v3419_v54 = vsel %vm3373_vm8, %v3354_v31, %v2818_v44  ;;  %2587 = vrot.lane.b32.xlu0 %v801_v19, %s5048_s1  ;;  %v805_v18 = vld [vmem:[#allocation2 + $0x468] sm:$0xff] }
 0x41b   :  { %v2052_v63 = vpop.permute.xlu1 %2051  ;;  %4928 = vmatmul.mubr.msk.f32.gmra.mxu1 %vm3465_vm9, %v3419_v54  ;;  %v9340_v54 = vld [vmem:[#allocation152_spill] sm:$0xff] }
 0x41c   :  { %v3225_v49 = vsel %vm3178_vm5, %v3160_v11, %v2052_v63  ;;  %v9338_v63 = vld [vmem:[#allocation42_spill] sm:$0xff]  ;;  %v3445_v11 = vlaneseq }
 0x41d   :  { %2333 = vrot.lane.b32.xlu1 %v738_v9, %s5047_s14  ;;  %v2308_v15 = vpop.permute.xlu0 %2307  ;;  %v9337_v9 = vld [vmem:[#allocation198_spill] sm:$0xff]  ;;  %v2968_v8 = vsel %vm20_vm0, %v5026_v41, %v9338_v63 }
 0x41e   :  { %2589 = vrot.lane.b32.xlu0 %v802_v16, %s5048_s1  ;;  %v3290_v12 = vsel %vm3243_vm6, %v3225_v49, %v2308_v15  ;;  %v3162_v58 = vsel %vm3113_vm4, %v3097_v35, %v9337_v9  ;;  %v5027_v49 = vld [vmem:[#allocation2 + $0x367] sm:$0xff] }
 0x41f   :  { %v2054_v50 = vpop.permute.xlu1 %2053  ;;  %v2969_v4 = vsel %vm20_vm0, %v5027_v49, %v9342_v14  ;;  %v9356_v49 = vld [vmem:[#allocation156_spill] sm:$0xff] }
 0x420   :  { %v3226_v6 = vsel %vm3178_vm5, %v3161_v21, %v2054_v50  ;;  %v806_v21 = vld [vmem:[#allocation2 + $0x470] sm:$0xff] }
 0x421   :  { %1823 = vrot.lane.b32.xlu1 %v801_v19, %s5045_s26  ;;  %v2564_v5 = vpop.permute.xlu0 %2563  ;;  %v9339_v19 = vld [vmem:[#allocation97_spill] sm:$0xff] }
 0x422   :  { %1825 = vrot.lane.b32.xlu0 %v802_v16, %s5045_s26  ;;  %v3355_v51 = vsel %vm3308_vm7, %v3290_v12, %v2564_v5  ;;  %v3033_v31 = vsel %vm2983_vm2, %v2968_v8, %v9339_v19  ;;  %v3446_v12 = vshrl.u32 %v3445_v11, 7  ;;  %v9354_v11 = vld [vmem:[#allocation46_spill] sm:$0xff] }
 0x423   :  { %v2310_v7 = vpop.permute.xlu1 %2309  ;;  %v3098_v50 = vsel %vm3048_vm3, %v3033_v31, %v9340_v54  ;;  %v5029_v31 = vld [vmem:[#allocation2 + $0x387] sm:$0xff] }
 0x424   :  { %v3291_v22 = vsel %vm3243_vm6, %v3226_v6, %v2310_v7 }
 0x425   :  { %2843 = vrot.lane.b32.xlu1 %v865_v28, %s5049_s15  ;;  %v2820_v47 = vpop.permute.xlu0 %2819 }
 0x426   :  { %v3420_v24 = vsel %vm3373_vm8, %v3355_v51, %v2820_v47  ;;  %2845 = vrot.lane.b32.xlu0 %v866_v20, %s5049_s15  ;;  %v9344_v51 = vld [vmem:[#allocation153_spill] sm:$0xff] }
 0x427   :  { %v2566_v48 = vpop.permute.xlu1 %2565  ;;  %4930 = vmatprep.mubr.msk.f32.mxu1 %vm3465_vm9, %v3420_v24  ;;  %v9345_v24 = vld [vmem:[#allocation200_spill] sm:$0xff] }
 0x428   :  { %v3356_v46 = vsel %vm3308_vm7, %v3291_v22, %v2566_v48  ;;  %v741_v48 = vld [vmem:[#allocation2 + $0x467] sm:$0xff]  ;;  %v5028_v22 = vld [vmem:[#allocation2 + $0x36f] sm:$0xff] }
 0x429   :  { %2079 = vrot.lane.b32.xlu1 %v865_v28, %s5046_s10  ;;  %v2822_v23 = vpop.permute.xlu0 %2821  ;;  %v9341_v28 = vld [vmem:[#allocation199_spill] sm:$0xff] }
 0x42a   :  { %v3421_v53 = vsel %vm3373_vm8, %v3356_v46, %v2822_v23  ;;  %2335 = vrot.lane.b32.xlu0 %v739_v27, %s5047_s14  ;;  %v3163_v7 = vsel %vm3113_vm4, %v3098_v50, %v9341_v28  ;;  %v9346_v27 = vld [vmem:[#allocation44_spill] sm:$0xff]  ;;  %v9352_v28 = vld [vmem:[#allocation155_spill] sm:$0xff] }
 0x42b   :  { %v2056_v55 = vpop.permute.xlu1 %2055  ;;  %4931 = vmatmul.mubr.msk.f32.gmra.mxu1 %vm3465_vm9, %v3421_v53  ;;  %v2970_v46 = vsel %vm20_vm0, %v5028_v22, %v9346_v27  ;;  %v9347_v53 = vld [vmem:[#allocation99_spill] sm:$0xff]  ;;  %v9351_v50 = vld [vmem:[#allocation100_spill] sm:$0xff] }
 0x42c   :  { %v3227_v1 = vsel %vm3178_vm5, %v3162_v58, %v2056_v55  ;;  %v5031_v22 = vld [vmem:[#allocation2 + $0x3a7] sm:$0xff] }
 0x42d   :  { %2081 = vrot.lane.b32.xlu1 %v866_v20, %s5046_s10  ;;  %v2312_v59 = vpop.permute.xlu0 %2311  ;;  %v9343_v20 = vld [vmem:[#allocation98_spill] sm:$0xff]  ;;  %v9358_v27 = vld [vmem:[#allocation47_spill] sm:$0xff] }
 0x42e   :  { %2591 = vrot.lane.b32.xlu0 %v803_v52, %s5048_s1  ;;  %v3292_v44 = vsel %vm3243_vm6, %v3227_v1, %v2312_v59  ;;  %v3034_v17 = vsel %vm2983_vm2, %v2969_v4, %v9343_v20  ;;  %v869_v59 = vld [vmem:[#allocation2 + $0x469] sm:$0xff] }
 0x42f   :  { %v2058_v43 = vpop.permute.xlu1 %2057  ;;  %v3099_v47 = vsel %vm3048_vm3, %v3034_v17, %v9344_v51 }
 0x430   :  { %v3228_v39 = vsel %vm3178_vm5, %v3163_v7, %v2058_v43  ;;  %v3164_v55 = vsel %vm3113_vm4, %v3099_v47, %v9345_v24  ;;  %v3035_v43 = vsel %vm2983_vm2, %v2970_v46, %v9347_v53  ;;  %v2973_v46 = vsel %vm20_vm0, %v5031_v22, %v9358_v27 }
 0x431   :  { %2337 = vrot.lane.b32.xlu1 %v740_v42, %s5047_s14  ;;  %v2568_v61 = vpop.permute.xlu0 %2567  ;;  %v7392_v42 = vsub.s32 0, %v3446_v12  ;;  %v3100_v33 = vsel %vm3048_vm3, %v3035_v43, %v9348_v26  ;;  %v9357_v12 = vld [vmem:[#allocation203_spill] sm:$0xff] }
 0x432   :  { %2593 = vrot.lane.b32.xlu0 %v804_v36, %s5048_s1  ;;  %v3357_v16 = vsel %vm3308_vm7, %v3292_v44, %v2568_v61  ;;  %v9350_v44 = vld [vmem:[#allocation45_spill] sm:$0xff] }
 0x433   :  { %v2314_v40 = vpop.permute.xlu1 %2313  ;;  %v2971_v54 = vsel %vm20_vm0, %v5029_v31, %v9350_v44 }
 0x434   :  { %v3293_v62 = vsel %vm3243_vm6, %v3228_v39, %v2314_v40  ;;  %v7401_v40 = vld [vmem:[%s8959_s2] sm:$0x1]  ;;  %s5050_s2 = smov 124  }
 0x435   :  { %1827 = vrot.lane.b32.xlu1 %v803_v52, %s5045_s26  ;;  %v2824_v15 = vpop.permute.xlu0 %2823  ;;  %v3448_v9 = vrot.slane %v7401_v40, %v7392_v42 }
 0x436   :  { %v3422_v30 = vsel %vm3373_vm8, %v3357_v16, %v2824_v15  ;;  %1829 = vrot.lane.b32.xlu0 %v804_v36, %s5045_s26  ;;  %v9349_v36 = vld [vmem:[#allocation201_spill] sm:$0xff]  ;;  %v3036_v16 = vsel %vm2983_vm2, %v2971_v54, %v9351_v50 }
 0x437   :  { %v2570_v2 = vpop.permute.xlu1 %2569  ;;  %4933 = vmatprep.mubr.msk.f32.mxu1 %vm3465_vm9, %v3422_v30  ;;  %v3165_v3 = vsel %vm3113_vm4, %v3100_v33, %v9349_v36  ;;  %v3101_v7 = vsel %vm3048_vm3, %v3036_v16, %v9352_v28 }
 0x438   :  { %v3358_v29 = vsel %vm3308_vm7, %v3293_v62, %v2570_v2 }
 0x439   :  { %2847 = vrot.lane.b32.xlu1 %v867_v32, %s5049_s15  ;;  %v2826_v38 = vpop.permute.xlu0 %2825 }
 0x43a   :  { %v3423_v5 = vsel %vm3373_vm8, %v3358_v29, %v2826_v38  ;;  %2849 = vrot.lane.b32.xlu0 %v868_v37, %s5049_s15 }
 0x43b   :  { %v2060_v10 = vpop.permute.xlu1 %2059  ;;  %4934 = vmatmul.mubr.msk.f32.gmra.mxu1 %vm3465_vm9, %v3423_v5 }
 0x43c   :  { %v3229_v23 = vsel %vm3178_vm5, %v3164_v55, %v2060_v10  ;;  %v9353_v10 = vld [vmem:[#allocation202_spill] sm:$0xff] }
 0x43d   :  { %2083 = vrot.lane.b32.xlu1 %v867_v32, %s5046_s10  ;;  %v2316_v25 = vpop.permute.xlu0 %2315  ;;  %v3166_v39 = vsel %vm3113_vm4, %v3101_v7, %v9353_v10  ;;  %v9364_v10 = vld [vmem:[#allocation49_spill] sm:$0xff] }
 0x43e   :  { %2339 = vrot.lane.b32.xlu0 %v741_v48, %s5047_s14  ;;  %v3294_v52 = vsel %vm3243_vm6, %v3229_v23, %v2316_v25  ;;  %v9359_v23 = vld [vmem:[#allocation102_spill] sm:$0xff] }
 0x43f   :  { %v2062_v13 = vpop.permute.xlu1 %2061  ;;  %v3038_v53 = vsel %vm2983_vm2, %v2973_v46, %v9359_v23 }
 0x440   :  { %v3230_v32 = vsel %vm3178_vm5, %v3165_v3, %v2062_v13  ;;  %v5030_v13 = vld [vmem:[#allocation2 + $0x38f] sm:$0xff] }
 0x441   :  { %2085 = vrot.lane.b32.xlu1 %v868_v37, %s5046_s10  ;;  %v2572_v57 = vpop.permute.xlu0 %2571  ;;  %v2972_v48 = vsel %vm20_vm0, %v5030_v13, %v9354_v11 }
 0x442   :  { %2595 = vrot.lane.b32.xlu0 %v805_v18, %s5048_s1  ;;  %v3359_v60 = vsel %vm3308_vm7, %v3294_v52, %v2572_v57  ;;  %v9360_v52 = vld [vmem:[#allocation157_spill] sm:$0xff] }
 0x443   :  { %v2318_v56 = vpop.permute.xlu1 %2317 }
 0x444   :  { %v3295_v58 = vsel %vm3243_vm6, %v3230_v32, %v2318_v56 }
 0x445   :  { %2341 = vrot.lane.b32.xlu1 %v742_v45, %s5047_s14  ;;  %v2828_v0 = vpop.permute.xlu0 %2827  ;;  %v9355_v45 = vld [vmem:[#allocation101_spill] sm:$0xff] }
 0x446   :  { %v3424_v35 = vsel %vm3373_vm8, %v3359_v60, %v2828_v0  ;;  %2851 = vrot.lane.b32.xlu0 %v869_v59, %s5049_s15  ;;  %v3037_v56 = vsel %vm2983_vm2, %v2972_v48, %v9355_v45  ;;  %v3103_v59 = vsel %vm3048_vm3, %v3038_v53, %v9360_v52  ;;  %v5035_v52 = vld [vmem:[#allocation2 + $0x3e7] sm:$0xff] }
 0x447   :  { %v2574_v6 = vpop.permute.xlu1 %2573  ;;  %4936 = vmatprep.mubr.msk.f32.mxu1 %vm3465_vm9, %v3424_v35  ;;  %v3102_v14 = vsel %vm3048_vm3, %v3037_v56, %v9356_v49  ;;  %v5032_v35 = vld [vmem:[#allocation2 + $0x3af] sm:$0xff] }
 0x448   :  { %v3360_v2 = vsel %vm3308_vm7, %v3295_v58, %v2574_v6  ;;  %v3167_v20 = vsel %vm3113_vm4, %v3102_v14, %v9357_v12  ;;  %v9362_v58 = vld [vmem:[#allocation103_spill] sm:$0xff]  ;;  %v5034_v14 = vld [vmem:[#allocation2 + $0x3cf] sm:$0xff] }
 0x449   :  { %2597 = vrot.lane.b32.xlu1 %v806_v21, %s5048_s1  ;;  %v2830_v41 = vpop.permute.xlu0 %2829 }
 0x44a   :  { %v3425_v63 = vsel %vm3373_vm8, %v3360_v2, %v2830_v41  ;;  %3449 = vrot.lane.b32.xlu0 %v3448_v9, %s5042_s12  ;;  %v9363_v41 = vld [vmem:[#allocation158_spill] sm:$0xff] }
 0x44b   :  { %v2064_v61 = vpop.permute.xlu1 %2063  ;;  %4937 = vmatmul.mubr.msk.f32.gmra.mxu1 %vm3465_vm9, %v3425_v63 }
 0x44c   :  { %v3231_v62 = vsel %vm3178_vm5, %v3166_v39, %v2064_v61  ;;  %v9361_v61 = vld [vmem:[#allocation48_spill] sm:$0xff] }
 0x44d   :  { %2853 = vrot.lane.b32.xlu1 %v870_v34, %s5049_s15  ;;  %v2320_v1 = vpop.permute.xlu0 %2319  ;;  %v2974_v32 = vsel %vm20_vm0, %v5032_v35, %v9361_v61 }
 0x44e   :  { %3455 = vrot.lane.b32.xlu0 %v3448_v9, %s5044_s0  ;;  %v3296_v37 = vsel %vm3243_vm6, %v3231_v62, %v2320_v1  ;;  %v3039_v2 = vsel %vm2983_vm2, %v2974_v32, %v9362_v58  ;;  %v9365_v62 = vld [vmem:[#allocation104_spill] sm:$0xff] }
 0x44f   :  { %v2066_v8 = vpop.permute.xlu1 %2065  ;;  %v3104_v63 = vsel %vm3048_vm3, %v3039_v2, %v9363_v41  ;;  %v5036_v41 = vld [vmem:[#allocation2 + $0x3ef] sm:$0xff] }
 0x450   :  { %v3232_v18 = vsel %vm3178_vm5, %v3167_v20, %v2066_v8 }
 0x451   :  { %3452 = vrot.lane.b32.xlu1 %v3448_v9, %s5043_s17  ;;  %v2576_v15 = vpop.permute.xlu0 %2575 }
 0x452   :  { %v3361_v38 = vsel %vm3308_vm7, %v3296_v37, %v2576_v15 }
 0x453   :  { %v2322_v19 = vpop.permute.xlu1 %2321 }
 0x454   :  { %v3297_v51 = vsel %vm3243_vm6, %v3232_v18, %v2322_v19 }
 0x455   :  { %v2578_v29 = vpop.permute.xlu0 %2577 }
 0x456   :  { %v3362_v47 = vsel %vm3308_vm7, %v3297_v51, %v2578_v29  ;;  %v9369_v51 = vld [vmem:[#allocation160_spill] sm:$0xff] }
 0x457   :  { %v1812_v30 = vpop.permute.xlu1 %1811 }
 0x458   :  { %v3168_v33 = vsel %vm3113_vm4, %v3103_v59, %v1812_v30  ;;  %v5033_v30 = vld [vmem:[#allocation2 + $0x3c7] sm:$0xff] }
 0x459   :  { %v1814_v4 = vpop.permute.xlu0 %1813  ;;  %v2975_v39 = vsel %vm20_vm0, %v5033_v30, %v9364_v10  ;;  %v9370_v59 = vld [vmem:[#allocation51_spill] sm:$0xff] }
 0x45a   :  { %v3169_v1 = vsel %vm3113_vm4, %v3104_v63, %v1814_v4  ;;  %v3040_v37 = vsel %vm2983_vm2, %v2975_v39, %v9365_v62  ;;  %v9367_v4 = vld [vmem:[#allocation50_spill] sm:$0xff]  ;;  %v9373_v63 = vld [vmem:[#allocation52_spill] sm:$0xff] }
 0x45b   :  { %v2832_v5 = vpop.permute.xlu1 %2831  ;;  %v2976_v12 = vsel %vm20_vm0, %v5034_v14, %v9367_v4 }
 0x45c   :  { %v3426_v25 = vsel %vm3373_vm8, %v3361_v38, %v2832_v5  ;;  %v9366_v38 = vld [vmem:[#allocation159_spill] sm:$0xff] }
 0x45d   :  { %4939 = vmatprep.mubr.msk.f32.mxu1 %vm3465_vm9, %v3426_v25  ;;  %v2834_v57 = vpop.permute.xlu0 %2833  ;;  %v3105_v5 = vsel %vm3048_vm3, %v3040_v37, %v9366_v38  ;;  %v5037_v38 = vld [vmem:[#allocation2 + $0x407] sm:$0xff] }
 0x45e   :  { %v3427_v21 = vsel %vm3373_vm8, %v3362_v47, %v2834_v57 }
 0x45f   :  { %v2068_v17 = vpop.permute.xlu1 %2067  ;;  %4940 = vmatmul.mubr.msk.f32.gmra.mxu1 %vm3465_vm9, %v3427_v21 }
 0x460   :  { %v3233_v60 = vsel %vm3178_vm5, %v3168_v33, %v2068_v17  ;;  %v9368_v17 = vld [vmem:[#allocation105_spill] sm:$0xff]  ;;  %v9371_v33 = vld [vmem:[#allocation106_spill] sm:$0xff] }
 0x461   :  { %v2324_v55 = vpop.permute.xlu0 %2323  ;;  %v3041_v18 = vsel %vm2983_vm2, %v2976_v12, %v9368_v17 }
 0x462   :  { %v3298_v0 = vsel %vm3243_vm6, %v3233_v60, %v2324_v55  ;;  %v3106_v47 = vsel %vm3048_vm3, %v3041_v18, %v9369_v51  ;;  %v5038_v51 = vld [vmem:[#allocation2 + $0x40f] sm:$0xff] }
 0x463   :  { %v2070_v24 = vpop.permute.xlu1 %2069 }
 0x464   :  { %v3234_v31 = vsel %vm3178_vm5, %v3169_v1, %v2070_v24 }
 0x465   :  { %v2580_v43 = vpop.permute.xlu0 %2579 }
 0x466   :  { %v3363_v36 = vsel %vm3308_vm7, %v3298_v0, %v2580_v43 }
 0x467   :  { %v2326_v6 = vpop.permute.xlu1 %2325 }
 0x468   :  { %v3299_v44 = vsel %vm3243_vm6, %v3234_v31, %v2326_v6 }
 0x469   :  { %v2582_v34 = vpop.permute.xlu0 %2581 }
 0x46a   :  { %v3364_v54 = vsel %vm3308_vm7, %v3299_v44, %v2582_v34  ;;  %v9372_v34 = vld [vmem:[#allocation161_spill] sm:$0xff]  ;;  %v9375_v44 = vld [vmem:[#allocation162_spill] sm:$0xff] }
 0x46b   :  { %v1816_v26 = vpop.permute.xlu1 %1815 }
 0x46c   :  { %v3170_v11 = vsel %vm3113_vm4, %v3105_v5, %v1816_v26  ;;  %v2977_v26 = vsel %vm20_vm0, %v5035_v52, %v9370_v59  ;;  %v9376_v5 = vld [vmem:[#allocation53_spill] sm:$0xff] }
 0x46d   :  { %v1818_v8 = vpop.permute.xlu0 %1817  ;;  %v3042_v60 = vsel %vm2983_vm2, %v2977_v26, %v9371_v33 }
 0x46e   :  { %v3171_v21 = vsel %vm3113_vm4, %v3106_v47, %v1818_v8  ;;  %v2978_v8 = vsel %vm20_vm0, %v5036_v41, %v9373_v63  ;;  %v9379_v47 = vld [vmem:[#allocation54_spill] sm:$0xff]  ;;  %v9386_v63 = vld [vmem:[#allocation165_spill] sm:$0xff] }
 0x46f   :  { %v2836_v3 = vpop.permute.xlu1 %2835 }
 0x470   :  { %v3428_v9 = vsel %vm3373_vm8, %v3363_v36, %v2836_v3  ;;  %v3107_v36 = vsel %vm3048_vm3, %v3042_v60, %v9372_v34  ;;  %v5039_v34 = vld [vmem:[#allocation2 + $0x427] sm:$0xff] }
 0x471   :  { %4942 = vmatprep.mubr.msk.f32.mxu1 %vm3465_vm9, %v3428_v9  ;;  %v2838_v50 = vpop.permute.xlu0 %2837 }
 0x472   :  { %v3429_v16 = vsel %vm3373_vm8, %v3364_v54, %v2838_v50 }
 0x473   :  { %v2072_v19 = vpop.permute.xlu1 %2071  ;;  %4943 = vmatmul.mubr.msk.f32.gmra.mxu1 %vm3465_vm9, %v3429_v16 }
 0x474   :  { %v3235_v48 = vsel %vm3178_vm5, %v3170_v11, %v2072_v19  ;;  %v9374_v19 = vld [vmem:[#allocation107_spill] sm:$0xff]  ;;  %v9377_v11 = vld [vmem:[#allocation108_spill] sm:$0xff] }
 0x475   :  { %v2328_v28 = vpop.permute.xlu0 %2327  ;;  %v3043_v31 = vsel %vm2983_vm2, %v2978_v8, %v9374_v19  ;;  %v9387_v19 = vld [vmem:[#allocation166_spill] sm:$0xff] }
 0x476   :  { %v3300_v25 = vsel %vm3243_vm6, %v3235_v48, %v2328_v28  ;;  %v3108_v54 = vsel %vm3048_vm3, %v3043_v31, %v9375_v44 }
 0x477   :  { %v2074_v15 = vpop.permute.xlu1 %2073 }
 0x478   :  { %v3236_v55 = vsel %vm3178_vm5, %v3171_v21, %v2074_v15 }
 0x479   :  { %v2584_v29 = vpop.permute.xlu0 %2583 }
 0x47a   :  { %v3365_v56 = vsel %vm3308_vm7, %v3300_v25, %v2584_v29 }
 0x47b   :  { %v2330_v7 = vpop.permute.xlu1 %2329 }
 0x47c   :  { %v3301_v6 = vsel %vm3243_vm6, %v3236_v55, %v2330_v7 }
 0x47d   :  { %v2586_v45 = vpop.permute.xlu0 %2585 }
 0x47e   :  { %v3366_v22 = vsel %vm3308_vm7, %v3301_v6, %v2586_v45  ;;  %v9378_v45 = vld [vmem:[#allocation163_spill] sm:$0xff]  ;;  %v9381_v6 = vld [vmem:[#allocation164_spill] sm:$0xff] }
 0x47f   :  { %v1820_v13 = vpop.permute.xlu1 %1819 }
 0x480   :  { %v3172_v35 = vsel %vm3113_vm4, %v3107_v36, %v1820_v13  ;;  %v2979_v13 = vsel %vm20_vm0, %v5037_v38, %v9376_v5  ;;  %v9382_v36 = vld [vmem:[#allocation55_spill] sm:$0xff] }
 0x481   :  { %v1822_v57 = vpop.permute.xlu0 %1821  ;;  %v3044_v48 = vsel %vm2983_vm2, %v2979_v13, %v9377_v11 }
 0x482   :  { %v3173_v16 = vsel %vm3113_vm4, %v3108_v54, %v1822_v57  ;;  %v2980_v57 = vsel %vm20_vm0, %v5038_v51, %v9379_v47 }
 0x483   :  { %v2840_v49 = vpop.permute.xlu1 %2839 }
 0x484   :  { %v3430_v20 = vsel %vm3373_vm8, %v3365_v56, %v2840_v49  ;;  %v3109_v56 = vsel %vm3048_vm3, %v3044_v48, %v9378_v45 }
 0x485   :  { %4945 = vmatprep.mubr.msk.f32.mxu1 %vm3465_vm9, %v3430_v20  ;;  %v2842_v27 = vpop.permute.xlu0 %2841 }
 0x486   :  { %v3431_v46 = vsel %vm3373_vm8, %v3366_v22, %v2842_v27 }
 0x487   :  { %v2076_v24 = vpop.permute.xlu1 %2075  ;;  %4946 = vmatmul.mubr.msk.f32.gmra.mxu1 %vm3465_vm9, %v3431_v46 }
 0x488   :  { %v3237_v61 = vsel %vm3178_vm5, %v3172_v35, %v2076_v24  ;;  %v9380_v24 = vld [vmem:[#allocation109_spill] sm:$0xff] }
 0x489   :  { %v2332_v53 = vpop.permute.xlu0 %2331  ;;  %v3045_v55 = vsel %vm2983_vm2, %v2980_v57, %v9380_v24  ;;  %v5040_v35 = vld [vmem:[#allocation2 + $0x42f] sm:$0xff] }
 0x48a   :  { %v3302_v32 = vsel %vm3243_vm6, %v3237_v61, %v2332_v53  ;;  %v3110_v22 = vsel %vm3048_vm3, %v3045_v55, %v9381_v6  ;;  %v9383_v61 = vld [vmem:[#allocation56_spill] sm:$0xff] }
 0x48b   :  { %v2078_v23 = vpop.permute.xlu1 %2077 }
 0x48c   :  { %v3238_v28 = vsel %vm3178_vm5, %v3173_v16, %v2078_v23 }
 0x48d   :  { %v2588_v0 = vpop.permute.xlu0 %2587 }
 0x48e   :  { %v3367_v58 = vsel %vm3308_vm7, %v3302_v32, %v2588_v0  ;;  %v2982_v32 = vsel %vm20_vm0, %v5040_v35, %v9383_v61 }
 0x48f   :  { %v2334_v43 = vpop.permute.xlu1 %2333 }
 0x490   :  { %v3303_v7 = vsel %vm3243_vm6, %v3238_v28, %v2334_v43 }
 0x491   :  { %v2590_v9 = vpop.permute.xlu0 %2589 }
 0x492   :  { %v3368_v30 = vsel %vm3308_vm7, %v3303_v7, %v2590_v9  ;;  %v9384_v9 = vld [vmem:[#allocation110_spill] sm:$0xff]  ;;  %v4863_v7 = vpop.f32.mrf.mxu0 }
 0x493   :  { %v1824_v3 = vpop.permute.xlu1 %1823 }
 0x494   :  { %v3174_v14 = vsel %vm3113_vm4, %v3109_v56, %v1824_v3  ;;  %v2981_v3 = vsel %vm20_vm0, %v5039_v34, %v9382_v36  ;;  %v3728_v5 = vpop.f32.mrf.mxu0 }
 0x495   :  { %v1826_v50 = vpop.permute.xlu0 %1825 }
 0x496   :  { %v3175_v46 = vsel %vm3113_vm4, %v3110_v22, %v1826_v50  ;;  %v4866_v13 = vpop.f32.mrf.mxu0 }
 0x497   :  { %v2844_v2 = vpop.permute.xlu1 %2843 }
 0x498   :  { %v3432_v1 = vsel %vm3373_vm8, %v3367_v58, %v2844_v2  ;;  %v3046_v58 = vsel %vm2983_vm2, %v2981_v3, %v9384_v9  ;;  %v9385_v2 = vld [vmem:[#allocation111_spill] sm:$0xff]  ;;  %v3738_v11 = vpop.f32.mrf.mxu0 }
 0x499   :  { %4948 = vmatprep.mubr.msk.f32.mxu1 %vm3465_vm9, %v3432_v1  ;;  %v2846_v10 = vpop.permute.xlu0 %2845  ;;  %v3047_v41 = vsel %vm2983_vm2, %v2982_v32, %v9385_v2  ;;  %v3111_v8 = vsel %vm3048_vm3, %v3046_v58, %v9386_v63 }
 0x49a   :  { %v3433_v39 = vsel %vm3373_vm8, %v3368_v30, %v2846_v10  ;;  %v3112_v31 = vsel %vm3048_vm3, %v3047_v41, %v9387_v19  ;;  %v4869_v48 = vpop.f32.mrf.mxu0 }
 0x49b   :  { %v2080_v15 = vpop.permute.xlu1 %2079  ;;  %4949 = vmatmul.mubr.msk.f32.gmra.mxu1 %vm3465_vm9, %v3433_v39 }
 0x49c   :  { %v3239_v4 = vsel %vm3178_vm5, %v3174_v14, %v2080_v15 }
 0x49d   :  { %v2336_v37 = vpop.permute.xlu0 %2335 }
 0x49e   :  { %v3304_v12 = vsel %vm3243_vm6, %v3239_v4, %v2336_v37 }
 0x49f   :  { %v2082_v62 = vpop.permute.xlu1 %2081 }
 0x4a0   :  { %v3240_v53 = vsel %vm3178_vm5, %v3175_v46, %v2082_v62 }
 0x4a1   :  { %v2592_v25 = vpop.permute.xlu0 %2591 }
 0x4a2   :  { %v3369_v17 = vsel %vm3308_vm7, %v3304_v12, %v2592_v25  ;;  %v3748_v25 = vpop.f32.mrf.mxu0 }
 0x4a3   :  { %v2338_v29 = vpop.permute.xlu1 %2337 }
 0x4a4   :  { %v3305_v43 = vsel %vm3243_vm6, %v3240_v53, %v2338_v29  ;;  %v4872_v45 = vpop.f32.mrf.mxu0 }
 0x4a5   :  { %v2594_v20 = vpop.permute.xlu0 %2593 }
 0x4a6   :  { %v3370_v52 = vsel %vm3308_vm7, %v3305_v43, %v2594_v20 }
 0x4a7   :  { %v1828_v49 = vpop.permute.xlu1 %1827 }
 0x4a8   :  { %v3176_v44 = vsel %vm3113_vm4, %v3111_v8, %v1828_v49  ;;  %v3758_v49 = vpop.f32.mrf.mxu0 }
 0x4a9   :  { %v1830_v27 = vpop.permute.xlu0 %1829 }
 0x4aa   :  { %v3177_v50 = vsel %vm3113_vm4, %v3112_v31, %v1830_v27  ;;  %v4875_v14 = vpop.f32.mrf.mxu0 }
 0x4ab   :  { %v2848_v18 = vpop.permute.xlu1 %2847 }
 0x4ac   :  { %v3434_v21 = vsel %vm3373_vm8, %v3369_v17, %v2848_v18  ;;  %v3768_v18 = vpop.f32.mrf.mxu0 }
 0x4ad   :  { %4951 = vmatprep.mubr.msk.f32.mxu1 %vm3465_vm9, %v3434_v21  ;;  %v2850_v59 = vpop.permute.xlu0 %2849 }
 0x4ae   :  { %v3435_v26 = vsel %vm3373_vm8, %v3370_v52, %v2850_v59  ;;  %v4878_v51 = vpop.f32.mrf.mxu0 }
 0x4af   :  { %v2084_v23 = vpop.permute.xlu1 %2083  ;;  %4952 = vmatmul.mubr.msk.f32.gmra.mxu1 %vm3465_vm9, %v3435_v26 }
 0x4b0   :  { %v3241_v16 = vsel %vm3178_vm5, %v3176_v44, %v2084_v23  ;;  %v3778_v21 = vpop.f32.mrf.mxu0 }
 0x4b1   :  { %v2340_v60 = vpop.permute.xlu0 %2339 }
 0x4b2   :  { %v3306_v28 = vsel %vm3243_vm6, %v3241_v16, %v2340_v60  ;;  %v7575_v24 = vpop.f32.mrf.mxu0 }
 0x4b3   :  { %v2086_v33 = vpop.permute.xlu1 %2085 }
 0x4b4   :  { %v3242_v15 = vsel %vm3178_vm5, %v3177_v50, %v2086_v33  ;;  %v3788_v22 = vpop.f32.mrf.mxu0 }
 0x4b5   :  { %v2596_v1 = vpop.permute.xlu0 %2595 }
 0x4b6   :  { %v3371_v10 = vsel %vm3308_vm7, %v3306_v28, %v2596_v1  ;;  %v7597_v52 = vpop.f32.mrf.mxu0 }
 0x4b7   :  { %v2342_v0 = vpop.permute.xlu1 %2341 }
 0x4b8   :  { %v3307_v30 = vsel %vm3243_vm6, %v3242_v15, %v2342_v0  ;;  %v3798_v35 = vpop.f32.mrf.mxu0 }
 0x4b9   :  { %v2852_v39 = vpop.permute.xlu0 %2851 }
 0x4ba   :  { %v3436_v37 = vsel %vm3373_vm8, %v3371_v10, %v2852_v39  ;;  %v7621_v63 = vpop.f32.mrf.mxu0 }
 0x4bb   :  { %v2598_v54 = vpop.permute.xlu1 %2597  ;;  %4954 = vmatprep.mubr.msk.f32.mxu1 %vm3465_vm9, %v3436_v37 }
 0x4bc   :  { %v3372_v62 = vsel %vm3308_vm7, %v3307_v30, %v2598_v54  ;;  %v3808_v10 = vpop.f32.mrf.mxu0 }
 0x4bd   :  { %v3450_v56 = vpop.permute.xlu0 %3449 }
 0x4be   :  { %v3458_v4 = vsel %vm20_vm0, %v7401_v40, %v3450_v56 }
 0x4bf   :  { %v2854_v29 = vpop.permute.xlu1 %2853 }
 0x4c0   :  { %v3437_v38 = vsel %vm3373_vm8, %v3372_v62, %v2854_v29 }
 0x4c1   :  { %4955 = vmatmul.mubr.msk.f32.gmra.mxu1 %vm3465_vm9, %v3437_v38  ;;  %v3456_v17 = vpop.permute.xlu0 %3455 }
 0x4c3   :  { %v3453_v12 = vpop.permute.xlu1 %3452 }
 0x4c4   :  { %v3459_v20 = vsel %vm2983_vm2, %v3458_v4, %v3453_v12 }
 0x4c5   :  { %v3460_v47 = vsel %vm3048_vm3, %v3459_v20, %v3456_v17 }
 0x4c6   :  { %v7573_v57 = vrot.slane %v3460_v47, %v7392_v42 }
 0x4c8   :  { %v7578_v55 = vadd.f32 %v3728_v5, %v7573_v57  ;;  %v7581_v6 = vadd.f32 %v4863_v7, %v7573_v57  ;;  %v7584_v40 = vadd.f32 %v3738_v11, %v7573_v57  ;;  %v7587_v27 = vadd.f32 %v4866_v13, %v7573_v57  ;;  %v7647_v13 = vpop.f32.mrf.mxu0 }
 0x4c9   :  { %v7600_v59 = vadd.f32 %v3748_v25, %v7573_v57  ;;  %v7605_v33 = vadd.f32 %v4869_v48, %v7573_v57  ;;  %v7614_v9 = vadd.f32 %v3758_v49, %v7573_v57  ;;  %v7624_v19 = vadd.f32 %v4872_v45, %v7573_v57 }
 0x4ca   :  { %v4047_v46 = vsel %vm3113_vm4, %v7578_v55, 0.0  ;;  %v4048_v23 = vsel %vm3113_vm4, %v7581_v6, 0.0  ;;  %v4180_v53 = vmul.f32 %v7578_v55, %v7578_v55  ;;  %v4181_v43 = vmul.f32 %v7581_v6, %v7581_v6  ;;  %v3818_v47 = vpop.f32.mrf.mxu0 }
 0x4cb   :  { %v4182_v26 = vmul.f32 %v7584_v40, %v7584_v40  ;;  %v4049_v60 = vadd.f32 %v4048_v23, %v4047_v46  ;;  %v4050_v0 = vsel %vm3113_vm4, %v7584_v40, 0.0  ;;  %v4183_v34 = vmul.f32 %v7587_v27, %v7587_v27 }
 0x4cc   :  { %v4244_v36 = vsel %vm3113_vm4, %v4180_v53, 0.0  ;;  %v4245_v3 = vsel %vm3113_vm4, %v4181_v43, 0.0  ;;  %v4052_v58 = vsel %vm3113_vm4, %v7587_v27, 0.0  ;;  %v4184_v2 = vmul.f32 %v7600_v59, %v7600_v59 }
 0x4cd   :  { %v4051_v61 = vadd.f32 %v4050_v0, %v4049_v60  ;;  %v4246_v32 = vadd.f32 %v4245_v3, %v4244_v36  ;;  %v4247_v41 = vsel %vm3113_vm4, %v4182_v26, 0.0  ;;  %v4054_v31 = vsel %vm3113_vm4, %v7600_v59, 0.0  ;;  %v4893_v26 = vpop.f32.mrf.mxu0 }
 0x4ce   :  { %v4185_v44 = vmul.f32 %v7605_v33, %v7605_v33  ;;  %v4249_v54 = vsel %vm3113_vm4, %v4183_v34, 0.0  ;;  %v7632_v15 = vadd.f32 %v3768_v18, %v7573_v57  ;;  %v4056_v28 = vsel %vm3113_vm4, %v7605_v33, 0.0 }
 0x4cf   :  { %v4053_v8 = vadd.f32 %v4052_v58, %v4051_v61  ;;  %v4248_v1 = vadd.f32 %v4247_v41, %v4246_v32  ;;  %v4186_v7 = vmul.f32 %v7614_v9, %v7614_v9  ;;  %v4251_v30 = vsel %vm3113_vm4, %v4184_v2, 0.0 }
 0x4d0   :  { %v7640_v37 = vadd.f32 %v4875_v14, %v7573_v57  ;;  %v4058_v29 = vsel %vm3113_vm4, %v7614_v9, 0.0  ;;  %v4187_v38 = vmul.f32 %v7624_v19, %v7624_v19  ;;  %v4253_v5 = vsel %vm3113_vm4, %v4185_v44, 0.0 }
 0x4d1   :  { %v4055_v50 = vadd.f32 %v4054_v31, %v4053_v8  ;;  %v4250_v16 = vadd.f32 %v4249_v54, %v4248_v1  ;;  %v7650_v25 = vadd.f32 %v3778_v21, %v7573_v57  ;;  %v4060_v45 = vsel %vm3113_vm4, %v7624_v19, 0.0  ;;  %v3828_v8 = vpop.f32.mrf.mxu0 }
 0x4d2   :  { %v4188_v56 = vmul.f32 %v7632_v15, %v7632_v15  ;;  %v4255_v49 = vsel %vm3113_vm4, %v4186_v7, 0.0  ;;  %v7658_v12 = vadd.f32 %v4878_v51, %v7573_v57  ;;  %v4062_v20 = vsel %vm3113_vm4, %v7632_v15, 0.0 }
 0x4d3   :  { %v4057_v39 = vadd.f32 %v4056_v28, %v4055_v50  ;;  %v4252_v62 = vadd.f32 %v4251_v30, %v4250_v16  ;;  %v4189_v17 = vmul.f32 %v7640_v37, %v7640_v37  ;;  %v4257_v18 = vsel %vm3113_vm4, %v4187_v38, 0.0  ;;  %v4896_v16 = vpop.f32.mrf.mxu0 }
 0x4d4   :  { %v7666_v23 = vadd.f32 %v3788_v22, %v7573_v57  ;;  %v4064_v53 = vsel %vm3113_vm4, %v7640_v37, 0.0  ;;  %v4190_v51 = vmul.f32 %v7650_v25, %v7650_v25  ;;  %v4259_v43 = vsel %vm3113_vm4, %v4188_v56, 0.0 }
 0x4d5   :  { %v4059_v11 = vadd.f32 %v4058_v29, %v4057_v39  ;;  %v4254_v48 = vadd.f32 %v4253_v5, %v4252_v62  ;;  %v7675_v34 = vadd.f32 %v7575_v24, %v7573_v57  ;;  %v4066_v36 = vsel %vm3113_vm4, %v7650_v25, 0.0 }
 0x4d6   :  { %v4191_v22 = vmul.f32 %v7658_v12, %v7658_v12  ;;  %v4261_v3 = vsel %vm3113_vm4, %v4189_v17, 0.0  ;;  %v7683_v58 = vadd.f32 %v3798_v35, %v7573_v57  ;;  %v4068_v2 = vsel %vm3113_vm4, %v7658_v12, 0.0 }
 0x4d7   :  { %v4061_v14 = vadd.f32 %v4060_v45, %v4059_v11  ;;  %v4256_v4 = vadd.f32 %v4255_v49, %v4254_v48  ;;  %v4192_v24 = vmul.f32 %v7666_v23, %v7666_v23  ;;  %v4263_v41 = vsel %vm3113_vm4, %v4190_v51, 0.0  ;;  %v3838_v45 = vpop.f32.mrf.mxu0 }
 0x4d8   :  { %v7692_v44 = vadd.f32 %v7597_v52, %v7573_v57  ;;  %v4070_v54 = vsel %vm3113_vm4, %v7666_v23, 0.0  ;;  %v4193_v35 = vmul.f32 %v7675_v34, %v7675_v34  ;;  %v4265_v50 = vsel %vm3113_vm4, %v4191_v22, 0.0 }
 0x4d9   :  { %v4063_v21 = vadd.f32 %v4062_v20, %v4061_v14  ;;  %v4258_v46 = vadd.f32 %v4257_v18, %v4256_v4  ;;  %v7700_v30 = vadd.f32 %v3808_v10, %v7573_v57  ;;  %v4072_v39 = vsel %vm3113_vm4, %v7675_v34, 0.0  ;;  %v4899_v17 = vpop.f32.mrf.mxu0 }
 0x4da   :  { %v4194_v52 = vmul.f32 %v7683_v58, %v7683_v58  ;;  %v4267_v62 = vsel %vm3113_vm4, %v4192_v24, 0.0  ;;  %v7709_v5 = vadd.f32 %v7621_v63, %v7573_v57  ;;  %v4074_v11 = vsel %vm3113_vm4, %v7683_v58, 0.0 }
 0x4db   :  { %v4065_v60 = vadd.f32 %v4064_v53, %v4063_v21  ;;  %v4260_v0 = vadd.f32 %v4259_v43, %v4258_v46  ;;  %v4195_v10 = vmul.f32 %v7692_v44, %v7692_v44  ;;  %v4269_v48 = vsel %vm3113_vm4, %v4193_v35, 0.0 }
 0x4dc   :  { %v7717_v14 = vadd.f32 %v3818_v47, %v7573_v57  ;;  %v4076_v4 = vsel %vm3113_vm4, %v7692_v44, 0.0  ;;  %v4196_v63 = vmul.f32 %v7700_v30, %v7700_v30  ;;  %v4271_v20 = vsel %vm3113_vm4, %v4194_v52, 0.0 }
 0x4dd   :  { %v4067_v61 = vadd.f32 %v4066_v36, %v4065_v60  ;;  %v4262_v32 = vadd.f32 %v4261_v3, %v4260_v0  ;;  %v7726_v46 = vadd.f32 %v7647_v13, %v7573_v57  ;;  %v4078_v53 = vsel %vm3113_vm4, %v7700_v30, 0.0  ;;  %v3848_v3 = vpop.f32.mrf.mxu0 }
 0x4de   :  { %v4197_v47 = vmul.f32 %v7709_v5, %v7709_v5  ;;  %v4273_v51 = vsel %vm3113_vm4, %v4195_v10, 0.0  ;;  %v7734_v0 = vadd.f32 %v3828_v8, %v7573_v57  ;;  %v4080_v36 = vsel %vm3113_vm4, %v7709_v5, 0.0 }
 0x4df   :  { %v4069_v1 = vadd.f32 %v4068_v2, %v4067_v61  ;;  %v4264_v31 = vadd.f32 %v4263_v41, %v4262_v32  ;;  %v4198_v13 = vmul.f32 %v7717_v14, %v7717_v14  ;;  %v4275_v22 = vsel %vm3113_vm4, %v4196_v63, 0.0 }
 0x4e0   :  { %v7742_v2 = vadd.f32 %v4893_v26, %v7573_v57  ;;  %v4082_v24 = vsel %vm3113_vm4, %v7717_v14, 0.0  ;;  %v4199_v41 = vmul.f32 %v7726_v46, %v7726_v46  ;;  %v4277_v8 = vsel %vm3113_vm4, %v4197_v47, 0.0 }
 0x4e1   :  { %v4071_v28 = vadd.f32 %v4070_v54, %v4069_v1  ;;  %v4266_v7 = vadd.f32 %v4265_v50, %v4264_v31  ;;  %v4902_v1 = vpop.f32.mrf.mxu0  ;;  %v7750_v35 = vadd.f32 %v3838_v45, %v7573_v57  ;;  %v4084_v50 = vsel %vm3113_vm4, %v7726_v46, 0.0 }
 0x4e2   :  { %v4200_v26 = vmul.f32 %v7734_v0, %v7734_v0  ;;  %v7758_v52 = vadd.f32 %v4896_v16, %v7573_v57  ;;  %v7766_v45 = vadd.f32 %v3848_v3, %v7573_v57 }
 0x4e3   :  { %v4073_v29 = vadd.f32 %v4072_v39, %v4071_v28  ;;  %v4268_v38 = vadd.f32 %v4267_v62, %v4266_v7  ;;  %v4279_v28 = vsel %vm3113_vm4, %v4198_v13, 0.0  ;;  %v4086_v62 = vsel %vm3113_vm4, %v7734_v0, 0.0 }
 0x4e4   :  { %v4202_v16 = vmul.f32 %v7750_v35, %v7750_v35  ;;  %v4092_v13 = vsel %vm3113_vm4, %v7758_v52, 0.0 }
 0x4e5   :  { %v4075_v56 = vadd.f32 %v4074_v11, %v4073_v29  ;;  %v4270_v49 = vadd.f32 %v4269_v48, %v4268_v38  ;;  %v4201_v29 = vmul.f32 %v7742_v2, %v7742_v2  ;;  %v4281_v38 = vsel %vm3113_vm4, %v4199_v41, 0.0  ;;  %v3858_v11 = vpop.f32.mrf.mxu0 }
 0x4e6   :  { %v4094_v41 = vsel %vm3113_vm4, %v7766_v45, 0.0 }
 0x4e7   :  { %v4077_v18 = vadd.f32 %v4076_v4, %v4075_v56  ;;  %v4272_v21 = vadd.f32 %v4271_v20, %v4270_v49  ;;  %v4088_v56 = vsel %vm3113_vm4, %v7742_v2, 0.0  ;;  %v4283_v49 = vsel %vm3113_vm4, %v4200_v26, 0.0  ;;  %v4905_v4 = vpop.f32.mrf.mxu0 }
 0x4e8   :  { %v4285_v47 = vsel %vm3113_vm4, %v4201_v29, 0.0 }
 0x4e9   :  { %v4079_v43 = vadd.f32 %v4078_v53, %v4077_v18  ;;  %v4274_v60 = vadd.f32 %v4273_v51, %v4272_v21  ;;  %v7774_v18 = vadd.f32 %v4899_v17, %v7573_v57  ;;  %v4090_v21 = vsel %vm3113_vm4, %v7750_v35, 0.0  ;;  %v3868_v3 = vpop.f32.mrf.mxu0 }
 0x4ea   :  { %v4203_v53 = vmul.f32 %v7758_v52, %v7758_v52  ;;  %v4204_v17 = vmul.f32 %v7766_v45, %v7766_v45 }
 0x4eb   :  { %v4081_v61 = vadd.f32 %v4080_v36, %v4079_v43  ;;  %v4276_v32 = vadd.f32 %v4275_v22, %v4274_v60  ;;  %v4911_v60 = vpop.f32.mrf.mxu1  ;;  %v7782_v36 = vadd.f32 %v3858_v11, %v7573_v57  ;;  %v4287_v22 = vsel %vm3113_vm4, %v4202_v16, 0.0 }
 0x4ed   :  { %v4083_v31 = vadd.f32 %v4082_v24, %v4081_v61  ;;  %v4278_v54 = vadd.f32 %v4277_v8, %v4276_v32  ;;  %v7790_v24 = vadd.f32 %v4902_v1, %v7573_v57  ;;  %v4205_v8 = vmul.f32 %v7774_v18, %v7774_v18 }
 0x4ee   :  { %v4206_v1 = vmul.f32 %v7782_v36, %v7782_v36 }
 0x4ef   :  { %v4085_v7 = vadd.f32 %v4084_v50, %v4083_v31  ;;  %v4280_v39 = vadd.f32 %v4279_v28, %v4278_v54  ;;  %v4289_v31 = vsel %vm3113_vm4, %v4203_v53, 0.0  ;;  %v4908_v54 = vpop.f32.mrf.mxu0  ;;  %v3888_v28 = vpop.f32.mrf.mxu1  ;;  %v4293_v16 = vsel %vm3113_vm4, %v4205_v8, 0.0 }
 0x4f0   :  { %v4100_v53 = vsel %vm3113_vm4, %v7790_v24, 0.0 }
 0x4f1   :  { %v4087_v10 = vadd.f32 %v4086_v62, %v4085_v7  ;;  %v4282_v48 = vadd.f32 %v4281_v38, %v4280_v39  ;;  %v7798_v7 = vadd.f32 %v3868_v3, %v7573_v57  ;;  %v4096_v39 = vsel %vm3113_vm4, %v7774_v18, 0.0  ;;  %v4914_v11 = vpop.f32.mrf.mxu1 }
 0x4f2   :  { %v4291_v62 = vsel %vm3113_vm4, %v4204_v17, 0.0  ;;  %v7822_v17 = vadd.f32 %v4908_v54, %v7573_v57 }
 0x4f3   :  { %v4089_v63 = vadd.f32 %v4088_v56, %v4087_v10  ;;  %v4284_v20 = vadd.f32 %v4283_v49, %v4282_v48  ;;  %v7806_v10 = vadd.f32 %v4905_v4, %v7573_v57  ;;  %v4098_v48 = vsel %vm3113_vm4, %v7782_v36, 0.0  ;;  %v3878_v49 = vpop.f32.mrf.mxu0 }
 0x4f4   :  { %v4207_v56 = vmul.f32 %v7790_v24, %v7790_v24  ;;  %v4208_v4 = vmul.f32 %v7798_v7, %v7798_v7 }
 0x4f5   :  { %v4091_v51 = vadd.f32 %v4090_v21, %v4089_v63  ;;  %v4286_v43 = vadd.f32 %v4285_v47, %v4284_v20  ;;  %v7814_v21 = vadd.f32 %v3878_v49, %v7573_v57  ;;  %v4295_v47 = vsel %vm3113_vm4, %v4206_v1, 0.0 }
 0x4f6   :  { %v4209_v3 = vmul.f32 %v7806_v10, %v7806_v10 }
 0x4f7   :  { %v4093_v61 = vadd.f32 %v4092_v13, %v4091_v51  ;;  %v4288_v32 = vadd.f32 %v4287_v22, %v4286_v43  ;;  %v3898_v13 = vpop.f32.mrf.mxu1  ;;  %v4102_v22 = vsel %vm3113_vm4, %v7798_v7, 0.0  ;;  %v4210_v54 = vmul.f32 %v7814_v21, %v7814_v21 }
 0x4f8   :  { %v7846_v49 = vadd.f32 %v3898_v13, %v7573_v57 }
 0x4f9   :  { %v4095_v50 = vadd.f32 %v4094_v41, %v4093_v61  ;;  %v4290_v26 = vadd.f32 %v4289_v31, %v4288_v32  ;;  %v4297_v61 = vsel %vm3113_vm4, %v4207_v56, 0.0  ;;  %v4917_v8 = vpop.f32.mrf.mxu1  ;;  %v7830_v31 = vadd.f32 %v3888_v28, %v7573_v57 }
 0x4fa   :  { %v4211_v28 = vmul.f32 %v7822_v17, %v7822_v17 }
 0x4fb   :  { %v4097_v29 = vadd.f32 %v4096_v39, %v4095_v50  ;;  %v4292_v38 = vadd.f32 %v4291_v62, %v4290_v26  ;;  %v4104_v50 = vsel %vm3113_vm4, %v7806_v10, 0.0  ;;  %v4299_v26 = vsel %vm3113_vm4, %v4208_v4, 0.0 }
 0x4fc   :  { %v7838_v62 = vadd.f32 %v4911_v60, %v7573_v57  ;;  %v4212_v60 = vmul.f32 %v7830_v31, %v7830_v31 }
 0x4fd   :  { %v4099_v63 = vadd.f32 %v4098_v48, %v4097_v29  ;;  %v4294_v20 = vadd.f32 %v4293_v16, %v4292_v38  ;;  %v4106_v29 = vsel %vm3113_vm4, %v7814_v21, 0.0  ;;  %v4301_v38 = vsel %vm3113_vm4, %v4209_v3, 0.0  ;;  %v3908_v16 = vpop.f32.mrf.mxu1 }
 0x4fe   :  { %v4213_v13 = vmul.f32 %v7838_v62, %v7838_v62 }
 0x4ff   :  { %v4101_v51 = vadd.f32 %v4100_v53, %v4099_v63  ;;  %v4296_v43 = vadd.f32 %v4295_v47, %v4294_v20  ;;  %v4108_v63 = vsel %vm3113_vm4, %v7822_v17, 0.0  ;;  %v4303_v20 = vsel %vm3113_vm4, %v4210_v54, 0.0  ;;  %v4920_v47 = vpop.f32.mrf.mxu1 }
 0x501   :  { %v4103_v32 = vadd.f32 %v4102_v22, %v4101_v51  ;;  %v4298_v41 = vadd.f32 %v4297_v61, %v4296_v43  ;;  %v7854_v51 = vadd.f32 %v4914_v11, %v7573_v57  ;;  %v4110_v43 = vsel %vm3113_vm4, %v7830_v31, 0.0 }
 0x502   :  { %v4305_v22 = vsel %vm3113_vm4, %v4211_v28, 0.0  ;;  %v4214_v11 = vmul.f32 %v7846_v49, %v7846_v49 }
 0x503   :  { %v4105_v39 = vadd.f32 %v4104_v50, %v4103_v32  ;;  %v4300_v1 = vadd.f32 %v4299_v26, %v4298_v41  ;;  %v7862_v32 = vadd.f32 %v3908_v16, %v7573_v57  ;;  %v4112_v41 = vsel %vm3113_vm4, %v7838_v62, 0.0 }
 0x504   :  { %v4307_v50 = vsel %vm3113_vm4, %v4212_v60, 0.0  ;;  %v4215_v28 = vmul.f32 %v7854_v51, %v7854_v51  ;;  %v4116_v60 = vsel %vm3113_vm4, %v7854_v51, 0.0 }
 0x505   :  { %v4107_v48 = vadd.f32 %v4106_v29, %v4105_v39  ;;  %v4302_v56 = vadd.f32 %v4301_v38, %v4300_v1  ;;  %v3918_v39 = vpop.f32.mrf.mxu1  ;;  %v7870_v1 = vadd.f32 %v4917_v8, %v7573_v57  ;;  %v4114_v29 = vsel %vm3113_vm4, %v7846_v49, 0.0 }
 0x506   :  { %v4309_v38 = vsel %vm3113_vm4, %v4213_v13, 0.0  ;;  %v4216_v8 = vmul.f32 %v7862_v32, %v7862_v32  ;;  %v4118_v13 = vsel %vm3113_vm4, %v7862_v32, 0.0 }
 0x507   :  { %v4109_v53 = vadd.f32 %v4108_v63, %v4107_v48  ;;  %v4304_v4 = vadd.f32 %v4303_v20, %v4302_v56  ;;  %v4923_v16 = vpop.f32.mrf.mxu1  ;;  %v7878_v63 = vadd.f32 %v3918_v39, %v7573_v57  ;;  %v4311_v20 = vsel %vm3113_vm4, %v4214_v11, 0.0 }
 0x509   :  { %v4111_v3 = vadd.f32 %v4110_v43, %v4109_v53  ;;  %v4306_v61 = vadd.f32 %v4305_v22, %v4304_v4  ;;  %v7886_v43 = vadd.f32 %v4920_v47, %v7573_v57  ;;  %v4217_v22 = vmul.f32 %v7870_v1, %v7870_v1 }
 0x50a   :  { %v4218_v11 = vmul.f32 %v7878_v63, %v7878_v63  ;;  %v4315_v47 = vsel %vm3113_vm4, %v4216_v8, 0.0 }
 0x50b   :  { %v4113_v54 = vadd.f32 %v4112_v41, %v4111_v3  ;;  %v4308_v26 = vadd.f32 %v4307_v50, %v4306_v61  ;;  %v4313_v3 = vsel %vm3113_vm4, %v4215_v28, 0.0  ;;  %v3928_v50 = vpop.f32.mrf.mxu1  ;;  %v4122_v28 = vsel %vm3113_vm4, %v7878_v63, 0.0 }
 0x50c   :  { %v4319_v8 = vsel %vm3113_vm4, %v4218_v11, 0.0 }
 0x50d   :  { %v4115_v48 = vadd.f32 %v4114_v29, %v4113_v54  ;;  %v4310_v56 = vadd.f32 %v4309_v38, %v4308_v26  ;;  %v4120_v54 = vsel %vm3113_vm4, %v7870_v1, 0.0  ;;  %v7899_v26 = vadd.f32 %v3928_v50, %v7573_v57  ;;  %v4926_v38 = vpop.f32.mrf.mxu1 }
 0x50f   :  { %v4117_v53 = vadd.f32 %v4116_v60, %v4115_v48  ;;  %v4312_v4 = vadd.f32 %v4311_v20, %v4310_v56  ;;  %9388 = vst [vmem:[#allocation57_spill] sm:$0xff] %v7899_v26  ;;  %v4219_v48 = vmul.f32 %v7886_v43, %v7886_v43  ;;  %v4317_v56 = vsel %vm3113_vm4, %v4217_v22, 0.0 }
 0x510   :  { %v4126_v22 = vsel %vm3113_vm4, %v7899_v26, 0.0 }
 0x511   :  { %v4119_v61 = vadd.f32 %v4118_v13, %v4117_v53  ;;  %v4314_v41 = vadd.f32 %v4313_v3, %v4312_v4  ;;  %v4124_v53 = vsel %vm3113_vm4, %v7886_v43, 0.0  ;;  %v7910_v4 = vadd.f32 %v4923_v16, %v7573_v57 }
 0x512   :  { %v4220_v13 = vmul.f32 %v7899_v26, %v7899_v26  ;;  %v4321_v50 = vsel %vm3113_vm4, %v4219_v48, 0.0  ;;  %v7926_v48 = vadd.f32 %v4926_v38, %v7573_v57 }
 0x513   :  { %v4121_v39 = vadd.f32 %v4120_v54, %v4119_v61  ;;  %v4316_v29 = vadd.f32 %v4315_v47, %v4314_v41  ;;  %9389 = vst [vmem:[#allocation112_spill] sm:$0xff] %v7910_v4  ;;  %v3938_v41 = vpop.f32.mrf.mxu1 }
 0x514   :  { %v7920_v11 = vadd.f32 %v3938_v41, %v7573_v57  ;;  %v4323_v16 = vsel %vm3113_vm4, %v4220_v13, 0.0  ;;  %9391 = vst [vmem:[#allocation3_spill] sm:$0xff] %v7926_v48  ;;  %v4223_v41 = vmul.f32 %v7926_v48, %v7926_v48 }
 0x515   :  { %v4123_v60 = vadd.f32 %v4122_v28, %v4121_v39  ;;  %v4318_v20 = vadd.f32 %v4317_v56, %v4316_v29  ;;  %v4221_v39 = vmul.f32 %v7910_v4, %v7910_v4  ;;  %v4929_v28 = vpop.f32.mrf.mxu1  ;;  %v4128_v56 = vsel %vm3113_vm4, %v7910_v4, 0.0 }
 0x516   :  { %9390 = vst [vmem:[#allocation167_spill] sm:$0xff] %v7920_v11 }
 0x517   :  { %v4125_v3 = vadd.f32 %v4124_v53, %v4123_v60  ;;  %v4320_v61 = vadd.f32 %v4319_v8, %v4318_v20  ;;  %v4222_v20 = vmul.f32 %v7920_v11, %v7920_v11  ;;  %v4325_v53 = vsel %vm3113_vm4, %v4221_v39, 0.0 }
 0x519   :  { %v4322_v54 = vadd.f32 %v4321_v50, %v4320_v61  ;;  %v4127_v47 = vadd.f32 %v4126_v22, %v4125_v3  ;;  %v3948_v3 = vpop.f32.mrf.mxu1  ;;  %v4130_v61 = vsel %vm3113_vm4, %v7920_v11, 0.0  ;;  %v4327_v50 = vsel %vm3113_vm4, %v4222_v20, 0.0 }
 0x51a   :  { %v7937_v22 = vadd.f32 %v3948_v3, %v7573_v57 }
 0x51b   :  { %v4324_v29 = vadd.f32 %v4323_v16, %v4322_v54  ;;  %v4129_v60 = vadd.f32 %v4128_v56, %v4127_v47  ;;  %v4932_v54 = vpop.f32.mrf.mxu1  ;;  %v4132_v47 = vsel %vm3113_vm4, %v7926_v48, 0.0  ;;  %v4329_v16 = vsel %vm3113_vm4, %v4223_v41, 0.0 }
 0x51c   :  { %9392 = vst [vmem:[#allocation58_spill] sm:$0xff] %v7937_v22  ;;  %v4224_v56 = vmul.f32 %v7937_v22, %v7937_v22  ;;  %v4134_v20 = vsel %vm3113_vm4, %v7937_v22, 0.0 }
 0x51d   :  { %v4326_v8 = vadd.f32 %v4325_v53, %v4324_v29  ;;  %v4131_v13 = vadd.f32 %v4130_v61, %v4129_v60  ;;  %v7943_v29 = vadd.f32 %v4929_v28, %v7573_v57  ;;  %v3958_v53 = vpop.f32.mrf.mxu1 }
 0x51e   :  { %v4331_v61 = vsel %vm3113_vm4, %v4224_v56, 0.0 }
 0x51f   :  { %v4328_v38 = vadd.f32 %v4327_v50, %v4326_v8  ;;  %v4133_v39 = vadd.f32 %v4132_v47, %v4131_v13  ;;  %9393 = vst [vmem:[#allocation113_spill] sm:$0xff] %v7943_v29  ;;  %v4225_v8 = vmul.f32 %v7943_v29, %v7943_v29  ;;  %v7953_v13 = vadd.f32 %v3958_v53, %v7573_v57  ;;  %v4935_v28 = vpop.f32.mrf.mxu1 }
 0x520   :  { %v4136_v50 = vsel %vm3113_vm4, %v7943_v29, 0.0 }
 0x521   :  { %v4330_v60 = vadd.f32 %v4329_v16, %v4328_v38  ;;  %v4135_v3 = vadd.f32 %v4134_v20, %v4133_v39  ;;  %9394 = vst [vmem:[#allocation168_spill] sm:$0xff] %v7953_v13  ;;  %v4333_v38 = vsel %vm3113_vm4, %v4225_v8, 0.0  ;;  %v7959_v16 = vadd.f32 %v4932_v54, %v7573_v57  ;;  %v3968_v22 = vpop.f32.mrf.mxu1 }
 0x522   :  { %v4226_v39 = vmul.f32 %v7953_v13, %v7953_v13  ;;  %v4138_v56 = vsel %vm3113_vm4, %v7953_v13, 0.0 }
 0x523   :  { %v4332_v41 = vadd.f32 %v4331_v61, %v4330_v60  ;;  %v4137_v47 = vadd.f32 %v4136_v50, %v4135_v3  ;;  %9395 = vst [vmem:[#allocation4_spill] sm:$0xff] %v7959_v16  ;;  %v4227_v60 = vmul.f32 %v7959_v16, %v7959_v16  ;;  %v7969_v3 = vadd.f32 %v3968_v22, %v7573_v57  ;;  %v4938_v54 = vpop.f32.mrf.mxu1 }
 0x524   :  { %v4335_v61 = vsel %vm3113_vm4, %v4226_v39, 0.0  ;;  %v4140_v50 = vsel %vm3113_vm4, %v7959_v16, 0.0 }
 0x525   :  { %v4334_v20 = vadd.f32 %v4333_v38, %v4332_v41  ;;  %v4139_v53 = vadd.f32 %v4138_v56, %v4137_v47  ;;  %9396 = vst [vmem:[#allocation59_spill] sm:$0xff] %v7969_v3  ;;  %v4337_v41 = vsel %vm3113_vm4, %v4227_v60, 0.0  ;;  %v7975_v38 = vadd.f32 %v4935_v28, %v7573_v57  ;;  %v3978_v13 = vpop.f32.mrf.mxu1 }
 0x526   :  { %v4228_v47 = vmul.f32 %v7969_v3, %v7969_v3  ;;  %v4142_v22 = vsel %vm3113_vm4, %v7969_v3, 0.0  ;;  %v7985_v60 = vadd.f32 %v3978_v13, %v7573_v57  ;;  %v7991_v3 = vadd.f32 %v4938_v54, %v7573_v57 }
 0x527   :  { %v4336_v8 = vadd.f32 %v4335_v61, %v4334_v20  ;;  %v4141_v29 = vadd.f32 %v4140_v50, %v4139_v53  ;;  %9397 = vst [vmem:[#allocation114_spill] sm:$0xff] %v7975_v38  ;;  %v4941_v20 = vpop.f32.mrf.mxu1  ;;  %v4229_v61 = vmul.f32 %v7975_v38, %v7975_v38  ;;  %v4144_v50 = vsel %vm3113_vm4, %v7975_v38, 0.0 }
 0x528   :  { %v4339_v53 = vsel %vm3113_vm4, %v4228_v47, 0.0  ;;  %9398 = vst [vmem:[#allocation169_spill] sm:$0xff] %v7985_v60  ;;  %9399 = vst [vmem:[#allocation5_spill] sm:$0xff] %v7991_v3  ;;  %v4146_v13 = vsel %vm3113_vm4, %v7985_v60, 0.0 }
 0x529   :  { %v4338_v56 = vadd.f32 %v4337_v41, %v4336_v8  ;;  %v4143_v39 = vadd.f32 %v4142_v22, %v4141_v29  ;;  %v3988_v8 = vpop.f32.mrf.mxu1  ;;  %v4341_v41 = vsel %vm3113_vm4, %v4229_v61, 0.0  ;;  %v4230_v29 = vmul.f32 %v7985_v60, %v7985_v60 }
 0x52a   :  { %v8007_v60 = vadd.f32 %v4941_v20, %v7573_v57 }
 0x52b   :  { %v4340_v28 = vadd.f32 %v4339_v53, %v4338_v56  ;;  %v4145_v16 = vadd.f32 %v4144_v50, %v4143_v39  ;;  %v4231_v56 = vmul.f32 %v7991_v3, %v7991_v3  ;;  %v4343_v39 = vsel %vm3113_vm4, %v4230_v29, 0.0 }
 0x52c   :  { %v8001_v53 = vadd.f32 %v3988_v8, %v7573_v57  ;;  %v4148_v50 = vsel %vm3113_vm4, %v7991_v3, 0.0  ;;  %9401 = vst [vmem:[#allocation115_spill] sm:$0xff] %v8007_v60 }
 0x52d   :  { %v4342_v22 = vadd.f32 %v4341_v41, %v4340_v28  ;;  %v4147_v47 = vadd.f32 %v4146_v13, %v4145_v16  ;;  %v4345_v41 = vsel %vm3113_vm4, %v4231_v56, 0.0 }
 0x52e   :  { %9400 = vst [vmem:[#allocation60_spill] sm:$0xff] %v8001_v53  ;;  %v4232_v16 = vmul.f32 %v8001_v53, %v8001_v53 }
 0x52f   :  { %v4344_v61 = vadd.f32 %v4343_v39, %v4342_v22  ;;  %v4149_v38 = vadd.f32 %v4148_v50, %v4147_v47  ;;  %v4150_v22 = vsel %vm3113_vm4, %v8001_v53, 0.0  ;;  %v4233_v47 = vmul.f32 %v8007_v60, %v8007_v60 }
 0x530   :  { %v4347_v56 = vsel %vm3113_vm4, %v4232_v16, 0.0 }
 0x531   :  { %v4346_v8 = vadd.f32 %v4345_v41, %v4344_v61  ;;  %v4151_v13 = vadd.f32 %v4150_v22, %v4149_v38  ;;  %v4349_v16 = vsel %vm3113_vm4, %v4233_v47, 0.0 }
 0x533   :  { %v4944_v48 = vpop.f32.mrf.mxu1  ;;  %v4348_v50 = vadd.f32 %v4347_v56, %v4346_v8 }
 0x534   :  { %v8024_v61 = vadd.f32 %v4944_v48, %v7573_v57 }
 0x535   :  { %v3998_v54 = vpop.f32.mrf.mxu1  ;;  %v4350_v8 = vadd.f32 %v4349_v16, %v4348_v50 }
 0x536   :  { %v8012_v29 = vadd.f32 %v3998_v54, %v7573_v57  ;;  %v4152_v54 = vsel %vm3113_vm4, %v8007_v60, 0.0  ;;  %9403 = vst [vmem:[#allocation61_spill] sm:$0xff] %v8024_v61  ;;  %v4235_v60 = vmul.f32 %v8024_v61, %v8024_v61 }
 0x537   :  { %v4153_v22 = vadd.f32 %v4152_v54, %v4151_v13 }
 0x538   :  { %9402 = vst [vmem:[#allocation6_spill] sm:$0xff] %v8012_v29  ;;  %v4234_v20 = vmul.f32 %v8012_v29, %v8012_v29  ;;  %v4154_v38 = vsel %vm3113_vm4, %v8012_v29, 0.0  ;;  %v4156_v29 = vsel %vm3113_vm4, %v8024_v61, 0.0  ;;  %v4353_v50 = vsel %vm3113_vm4, %v4235_v60, 0.0 }
 0x539   :  { %v4155_v11 = vadd.f32 %v4154_v38, %v4153_v22 }
 0x53a   :  { %v4351_v53 = vsel %vm3113_vm4, %v4234_v20, 0.0 }
 0x53b   :  { %v4352_v4 = vadd.f32 %v4351_v53, %v4350_v8  ;;  %v4157_v20 = vadd.f32 %v4156_v29, %v4155_v11 }
 0x53d   :  { %v4354_v53 = vadd.f32 %v4353_v50, %v4352_v4 }
 0x547   :  { %v4947_v28 = vpop.f32.mrf.mxu1 }
 0x549   :  { %v4008_v39 = vpop.f32.mrf.mxu1 }
 0x54a   :  { %v8029_v41 = vadd.f32 %v4008_v39, %v7573_v57  ;;  %v8040_v39 = vadd.f32 %v4947_v28, %v7573_v57 }
 0x54c   :  { %9404 = vst [vmem:[#allocation116_spill] sm:$0xff] %v8029_v41  ;;  %v4236_v48 = vmul.f32 %v8029_v41, %v8029_v41  ;;  %9405 = vst [vmem:[#allocation170_spill] sm:$0xff] %v8040_v39  ;;  %v4158_v13 = vsel %vm3113_vm4, %v8029_v41, 0.0  ;;  %v4237_v16 = vmul.f32 %v8040_v39, %v8040_v39 }
 0x54d   :  { %v4159_v22 = vadd.f32 %v4158_v13, %v4157_v20 }
 0x54e   :  { %v4355_v54 = vsel %vm3113_vm4, %v4236_v48, 0.0  ;;  %v4357_v48 = vsel %vm3113_vm4, %v4237_v16, 0.0 }
 0x54f   :  { %v4356_v61 = vadd.f32 %v4355_v54, %v4354_v53 }
 0x551   :  { %v4358_v50 = vadd.f32 %v4357_v48, %v4356_v61 }
 0x55b   :  { %v4950_v3 = vpop.f32.mrf.mxu1 }
 0x55c   :  { %v8056_v11 = vadd.f32 %v4950_v3, %v7573_v57 }
 0x55d   :  { %v4018_v56 = vpop.f32.mrf.mxu1 }
 0x55e   :  { %v8045_v47 = vadd.f32 %v4018_v56, %v7573_v57  ;;  %v4160_v56 = vsel %vm3113_vm4, %v8040_v39, 0.0  ;;  %9407 = vst [vmem:[#allocation62_spill] sm:$0xff] %v8056_v11  ;;  %v4239_v54 = vmul.f32 %v8056_v11, %v8056_v11 }
 0x55f   :  { %v4161_v4 = vadd.f32 %v4160_v56, %v4159_v22 }
 0x560   :  { %9406 = vst [vmem:[#allocation7_spill] sm:$0xff] %v8045_v47  ;;  %v4238_v28 = vmul.f32 %v8045_v47, %v8045_v47  ;;  %v4162_v60 = vsel %vm3113_vm4, %v8045_v47, 0.0  ;;  %v4164_v47 = vsel %vm3113_vm4, %v8056_v11, 0.0 }
 0x561   :  { %v4163_v20 = vadd.f32 %v4162_v60, %v4161_v4 }
 0x562   :  { %v4359_v13 = vsel %vm3113_vm4, %v4238_v28, 0.0  ;;  %v4361_v28 = vsel %vm3113_vm4, %v4239_v54, 0.0 }
 0x563   :  { %v4360_v53 = vadd.f32 %v4359_v13, %v4358_v50  ;;  %v4165_v16 = vadd.f32 %v4164_v47, %v4163_v20 }
 0x565   :  { %v4362_v60 = vadd.f32 %v4361_v28, %v4360_v53 }
 0x56f   :  { %v4953_v38 = vpop.f32.mrf.mxu1 }
 0x571   :  { %v4028_v8 = vpop.f32.mrf.mxu1 }
 0x572   :  { %v8061_v29 = vadd.f32 %v4028_v8, %v7573_v57  ;;  %v8072_v8 = vadd.f32 %v4953_v38, %v7573_v57 }
 0x574   :  { %9408 = vst [vmem:[#allocation117_spill] sm:$0xff] %v8061_v29  ;;  %v4240_v3 = vmul.f32 %v8061_v29, %v8061_v29  ;;  %9409 = vst [vmem:[#allocation171_spill] sm:$0xff] %v8072_v8  ;;  %v4166_v22 = vsel %vm3113_vm4, %v8061_v29, 0.0  ;;  %v4241_v48 = vmul.f32 %v8072_v8, %v8072_v8  ;;  %v4168_v11 = vsel %vm3113_vm4, %v8072_v8, 0.0 }
 0x575   :  { %v4167_v56 = vadd.f32 %v4166_v22, %v4165_v16 }
 0x576   :  { %v4363_v61 = vsel %vm3113_vm4, %v4240_v3, 0.0  ;;  %v4365_v54 = vsel %vm3113_vm4, %v4241_v48, 0.0 }
 0x577   :  { %v4364_v50 = vadd.f32 %v4363_v61, %v4362_v60  ;;  %v4169_v20 = vadd.f32 %v4168_v11, %v4167_v56 }
 0x579   :  { %v4366_v28 = vadd.f32 %v4365_v54, %v4364_v50 }
 0x581   :  { %v4956_v4 = vpop.f32.mrf.mxu1 }
 0x582   :  { %v8081_v13 = vadd.f32 %v4956_v4, %v7573_v57 }
 0x583   :  { %v4038_v38 = vpop.f32.mrf.mxu1 }
 0x584   :  { %v8086_v47 = vadd.f32 %v4038_v38, %v7573_v57  ;;  %v4243_v3 = vmul.f32 %v8081_v13, %v8081_v13  ;;  %v4172_v61 = vsel %vm3113_vm4, %v8081_v13, 0.0 }
 0x586   :  { %9410 = vst [vmem:[#allocation8_spill] sm:$0xff] %v8086_v47  ;;  %v4170_v53 = vsel %vm3113_vm4, %v8086_v47, 0.0  ;;  %v4242_v22 = vmul.f32 %v8086_v47, %v8086_v47  ;;  %v4369_v56 = vsel %vm3113_vm4, %v4243_v3, 0.0 }
 0x587   :  { %v4171_v16 = vadd.f32 %v4170_v53, %v4169_v20 }
 0x588   :  { %v4367_v57 = vsel %vm3113_vm4, %v4242_v22, 0.0 }
 0x589   :  { %v4173_v60 = vadd.f32 %v4172_v61, %v4171_v16  ;;  %v4368_v11 = vadd.f32 %v4367_v57, %v4366_v28 }
 0x58b   :  { %v4174_v4 = vrot.slane %v4173_v60, 4  ;;  %v4370_v48 = vadd.f32 %v4369_v56, %v4368_v11 }
 0x58d   :  { %v4175_v38 = vadd.f32 %v4174_v4, %v4173_v60  ;;  %v4371_v8 = vrot.slane %v4370_v48, 4 }
 0x58f   :  { %v4176_v29 = vrot.slane %v4175_v38, 2  ;;  %v4372_v39 = vadd.f32 %v4371_v8, %v4370_v48 }
 0x591   :  { %v4177_v41 = vadd.f32 %v4176_v29, %v4175_v38  ;;  %v4373_v26 = vrot.slane %v4372_v39, 2  ;;  %v4408_v38 = vld [vmem:[%s8960_s3] sm:$0x1] }
 0x593   :  { %v4178_v47 = vrot.slane %v4177_v41, 1  ;;  %v4374_v20 = vadd.f32 %v4373_v26, %v4372_v39 }
 0x595   :  { %v4179_v50 = vadd.f32 %v4178_v47, %v4177_v41  ;;  %v4375_v54 = vrot.slane %v4374_v20, 1 }
 0x597   :  { %4378 = vrot.lane.b32.xlu1 %v4179_v50, %s5050_s2  ;;  %v4376_v53 = vadd.f32 %v4375_v54, %v4374_v20  ;;  %v4412_v54 = vld [vmem:[%s8961_s4] sm:$0x1] }
 0x599   :  { %4383 = vrot.lane.b32.xlu0 %v4376_v53, %s5050_s2 }
 0x59b   :  { %4387 = vrot.lane.b32.xlu1 %v4179_v50, %s5051_s19 }
 0x59d   :  { %4391 = vrot.lane.b32.xlu0 %v4376_v53, %s5051_s19 }
 0x59f   :  { %4395 = vrot.lane.b32.xlu1 %v4179_v50, %s5052_s20 }
 0x5a1   :  { %4399 = vrot.lane.b32.xlu0 %v4376_v53, %s5052_s20 }
 0x609   :  { %v4379_v3 = vpop.permute.xlu1 %4378 }
 0x60a   :  { %v4381_v8 = vadd.f32 %v4379_v3, %v4179_v50 }
 0x60b   :  { %v4384_v22 = vpop.permute.xlu0 %4383 }
 0x60c   :  { %v4386_v28 = vadd.f32 %v4384_v22, %v4376_v53 }
 0x60d   :  { %v4388_v16 = vpop.permute.xlu1 %4387 }
 0x60e   :  { %v4390_v61 = vadd.f32 %v4388_v16, %v4381_v8 }
 0x60f   :  { %v4392_v29 = vpop.permute.xlu0 %4391 }
 0x610   :  { %v4394_v41 = vadd.f32 %v4392_v29, %v4386_v28 }
 0x611   :  { %v4396_v26 = vpop.permute.xlu1 %4395 }
 0x612   :  { %v4398_v39 = vadd.f32 %v4396_v26, %v4390_v61 }
 0x613   :  { %v4400_v47 = vpop.permute.xlu0 %4399 }
 0x614   :  { %v4404_v57 = vmul.f32 0.00048828125, %v4398_v39  ;;  %v4402_v60 = vadd.f32 %v4400_v47, %v4394_v41 }
 0x616   :  { %v4406_v11 = vmul.f32 %v4404_v57, %v4404_v57  ;;  %v4405_v56 = vmul.f32 0.00048828125, %v4402_v60 }
 0x618   :  { %v4407_v4 = vsub.f32 %v4405_v56, %v4406_v11 }
 0x61a   :  { %v4409_v48 = vadd.f32 1e-05, %v4407_v4 }
 0x61c   :  { %4979 = vrsqrt.f32 %v4409_v48 }
 0x629   :  { %v4980_v20 = vpop.eup %4979 }
 0x62a   :  { %v4411_v50 = vmul.f32 %v4980_v20, %v4408_v38  ;;  %v9411_v38 = vld [vmem:[#allocation57_spill] sm:$0xff]  ;;  %v9412_v20 = vld [vmem:[#allocation112_spill] sm:$0xff] }
 0x62c   :  { %v4419_v53 = vrot.slane %v4411_v50, %v7392_v42  ;;  %v4413_v3 = vmul.f32 %v4411_v50, %v4404_v57 }
 0x62e   :  { %4423 = vrot.lane.b32.xlu0 %v4419_v53, %s5043_s17  ;;  %4420 = vrot.lane.b32.xlu1 %v4419_v53, %s5042_s12  ;;  %v4414_v22 = vsub.f32 %v4412_v54, %v4413_v3  ;;  %v9415_v3 = vld [vmem:[#allocation58_spill] sm:$0xff] }
 0x630   :  { %v4436_v16 = vrot.slane %v4414_v22, %v7392_v42 }
 0x632   :  { %4426 = vrot.lane.b32.xlu1 %v4419_v53, %s5044_s0  ;;  %4437 = vrot.lane.b32.xlu0 %v4436_v16, %s5042_s12  ;;  %v9414_v53 = vld [vmem:[#allocation3_spill] sm:$0xff] }
 0x636   :  { %4440 = vrot.lane.b32.xlu1 %v4436_v16, %s5043_s17  ;;  %4443 = vrot.lane.b32.xlu0 %v4436_v16, %s5044_s0 }
 0x6a0   :  { %v4421_v8 = vpop.permute.xlu1 %4420  ;;  %v4424_v29 = vpop.permute.xlu0 %4423 }
 0x6a1   :  { %v4429_v28 = vsel %vm20_vm0, %v4411_v50, %v4421_v8  ;;  %v9413_v50 = vld [vmem:[#allocation167_spill] sm:$0xff]  ;;  %v9417_v8 = vld [vmem:[#allocation168_spill] sm:$0xff] }
 0x6a2   :  { %v4430_v61 = vsel %vm2983_vm2, %v4429_v28, %v4424_v29 }
 0x6a4   :  { %v4427_v26 = vpop.permute.xlu1 %4426  ;;  %v4438_v47 = vpop.permute.xlu0 %4437 }
 0x6a5   :  { %v4431_v41 = vsel %vm3048_vm3, %v4430_v61, %v4427_v26  ;;  %v4446_v56 = vsel %vm20_vm0, %v4414_v22, %v4438_v47  ;;  %v9416_v22 = vld [vmem:[#allocation113_spill] sm:$0xff]  ;;  %v9418_v61 = vld [vmem:[#allocation4_spill] sm:$0xff] }
 0x6a6   :  { %v8117_v39 = vrot.slane %v4431_v41, %v7392_v42  ;;  %v9420_v41 = vld [vmem:[#allocation59_spill] sm:$0xff] }
 0x6a8   :  { %v8121_v57 = vmul.f32 %v8117_v39, %v7578_v55  ;;  %v8125_v60 = vmul.f32 %v8117_v39, %v7581_v6  ;;  %v8129_v11 = vmul.f32 %v8117_v39, %v7584_v40  ;;  %v8134_v4 = vmul.f32 %v8117_v39, %v7587_v27  ;;  %v4441_v54 = vpop.permute.xlu1 %4440  ;;  %v4444_v28 = vpop.permute.xlu0 %4443 }
 0x6a9   :  { %v8138_v48 = vmul.f32 %v8117_v39, %v7600_v59  ;;  %v8142_v55 = vmul.f32 %v8117_v39, %v7605_v33  ;;  %v8146_v6 = vmul.f32 %v8117_v39, %v7614_v9  ;;  %v8150_v40 = vmul.f32 %v8117_v39, %v7624_v19 }
 0x6aa   :  { %v8154_v27 = vmul.f32 %v8117_v39, %v7632_v15  ;;  %v8158_v59 = vmul.f32 %v8117_v39, %v7640_v37  ;;  %v8162_v33 = vmul.f32 %v8117_v39, %v7650_v25  ;;  %v8166_v9 = vmul.f32 %v8117_v39, %v7658_v12 }
 0x6ab   :  { %v8170_v19 = vmul.f32 %v8117_v39, %v7666_v23  ;;  %v8174_v15 = vmul.f32 %v8117_v39, %v7675_v34  ;;  %v8178_v37 = vmul.f32 %v8117_v39, %v7683_v58  ;;  %v8182_v25 = vmul.f32 %v8117_v39, %v7692_v44 }
 0x6ac   :  { %v8186_v12 = vmul.f32 %v8117_v39, %v7700_v30  ;;  %v8190_v23 = vmul.f32 %v8117_v39, %v7709_v5  ;;  %v8194_v34 = vmul.f32 %v8117_v39, %v7717_v14  ;;  %v8198_v58 = vmul.f32 %v8117_v39, %v7726_v46 }
 0x6ad   :  { %v8202_v44 = vmul.f32 %v8117_v39, %v7734_v0  ;;  %v8206_v30 = vmul.f32 %v8117_v39, %v7742_v2  ;;  %v8210_v5 = vmul.f32 %v8117_v39, %v7750_v35  ;;  %v8214_v14 = vmul.f32 %v8117_v39, %v7758_v52 }
 0x6ae   :  { %v8218_v46 = vmul.f32 %v8117_v39, %v7766_v45  ;;  %v8222_v0 = vmul.f32 %v8117_v39, %v7774_v18  ;;  %v8226_v2 = vmul.f32 %v8117_v39, %v7782_v36  ;;  %v8230_v35 = vmul.f32 %v8117_v39, %v7790_v24 }
 0x6af   :  { %v8234_v52 = vmul.f32 %v8117_v39, %v7798_v7  ;;  %v8238_v45 = vmul.f32 %v8117_v39, %v7806_v10  ;;  %v8242_v18 = vmul.f32 %v8117_v39, %v7814_v21  ;;  %v8246_v36 = vmul.f32 %v8117_v39, %v7822_v17 }
 0x6b0   :  { %v8250_v24 = vmul.f32 %v8117_v39, %v7830_v31  ;;  %v8254_v7 = vmul.f32 %v8117_v39, %v7838_v62  ;;  %v8258_v10 = vmul.f32 %v8117_v39, %v7846_v49  ;;  %v8262_v21 = vmul.f32 %v8117_v39, %v7854_v51 }
 0x6b1   :  { %v8266_v17 = vmul.f32 %v8117_v39, %v7862_v32  ;;  %v8270_v31 = vmul.f32 %v8117_v39, %v7870_v1  ;;  %v8274_v62 = vmul.f32 %v8117_v39, %v7878_v63  ;;  %v8278_v49 = vmul.f32 %v8117_v39, %v7886_v43 }
 0x6b2   :  { %v8282_v51 = vmul.f32 %v8117_v39, %v9411_v38  ;;  %v8286_v32 = vmul.f32 %v8117_v39, %v9412_v20  ;;  %v8290_v1 = vmul.f32 %v8117_v39, %v9413_v50  ;;  %v8294_v63 = vmul.f32 %v8117_v39, %v9414_v53  ;;  %v9422_v38 = vld [vmem:[#allocation114_spill] sm:$0xff]  ;;  %v9424_v50 = vld [vmem:[#allocation169_spill] sm:$0xff] }
 0x6b3   :  { %v8298_v43 = vmul.f32 %v8117_v39, %v9415_v3  ;;  %v8302_v16 = vmul.f32 %v8117_v39, %v9416_v22  ;;  %v8306_v29 = vmul.f32 %v8117_v39, %v9417_v8  ;;  %v8310_v26 = vmul.f32 %v8117_v39, %v9418_v61  ;;  %v9426_v3 = vld [vmem:[#allocation5_spill] sm:$0xff]  ;;  %v9428_v8 = vld [vmem:[#allocation60_spill] sm:$0xff] }
 0x6b4   :  { %v8314_v47 = vmul.f32 %v8117_v39, %v9420_v41  ;;  %v8318_v20 = vmul.f32 %v8117_v39, %v9422_v38  ;;  %v8322_v53 = vmul.f32 %v8117_v39, %v9424_v50  ;;  %v8326_v22 = vmul.f32 %v8117_v39, %v9426_v3  ;;  %v9432_v38 = vld [vmem:[#allocation6_spill] sm:$0xff]  ;;  %v9433_v50 = vld [vmem:[#allocation61_spill] sm:$0xff]  ;;  %v9435_v3 = vld [vmem:[#allocation116_spill] sm:$0xff] }
 0x6b5   :  { %9419 = vst [vmem:[#allocation63_spill] sm:$0xff] %v8310_v26  ;;  %v8330_v61 = vmul.f32 %v8117_v39, %v9428_v8  ;;  %v9430_v26 = vld [vmem:[#allocation115_spill] sm:$0xff] }
 0x6b6   :  { %9421 = vst [vmem:[#allocation118_spill] sm:$0xff] %v8314_v47  ;;  %9423 = vst [vmem:[#allocation9_spill] sm:$0xff] %v8318_v20  ;;  %v8334_v41 = vmul.f32 %v8117_v39, %v9430_v26  ;;  %v4447_v47 = vsel %vm2983_vm2, %v4446_v56, %v4441_v54  ;;  %v8339_v20 = vmul.f32 %v8117_v39, %v9432_v38  ;;  %v9439_v54 = vld [vmem:[#allocation62_spill] sm:$0xff] }
 0x6b7   :  { %9425 = vst [vmem:[#allocation64_spill] sm:$0xff] %v8322_v53  ;;  %9427 = vst [vmem:[#allocation119_spill] sm:$0xff] %v8326_v22  ;;  %v8343_v53 = vmul.f32 %v8117_v39, %v9433_v50  ;;  %v8347_v22 = vmul.f32 %v8117_v39, %v9435_v3  ;;  %v4448_v8 = vsel %vm3048_vm3, %v4447_v47, %v4444_v28  ;;  %v9441_v28 = vld [vmem:[#allocation171_spill] sm:$0xff] }
 0x6b8   :  { %9429 = vst [vmem:[#allocation172_spill] sm:$0xff] %v8330_v61  ;;  %9431 = vst [vmem:[#allocation10_spill] sm:$0xff] %v8334_v41  ;;  %v9436_v61 = vld [vmem:[#allocation170_spill] sm:$0xff]  ;;  %v9438_v41 = vld [vmem:[#allocation7_spill] sm:$0xff]  ;;  %v8360_v38 = vmul.f32 %v8117_v39, %v9439_v54  ;;  %v8363_v50 = vrot.slane %v4448_v8, %v7392_v42  ;;  %v8371_v47 = vmul.f32 %v8117_v39, %v9441_v28 }
 0x6b9   :  { %9434 = vst [vmem:[#allocation65_spill] sm:$0xff] %v8343_v53  ;;  %v8352_v26 = vmul.f32 %v8117_v39, %v9436_v61  ;;  %v8356_v56 = vmul.f32 %v8117_v39, %v9438_v41  ;;  %v9440_v53 = vld [vmem:[#allocation117_spill] sm:$0xff]  ;;  %v9442_v61 = vld [vmem:[#allocation8_spill] sm:$0xff]  ;;  %v8379_v41 = vmul.f32 %v8117_v39, %v8081_v13 }
 0x6ba   :  { %v8367_v3 = vmul.f32 %v8117_v39, %v9440_v53  ;;  %v8383_v42 = vadd.f32 %v8363_v50, %v8121_v57  ;;  %v8387_v53 = vadd.f32 %v8363_v50, %v8125_v60  ;;  %v8391_v8 = vadd.f32 %v8363_v50, %v8129_v11 }
 0x6bb   :  { %9437 = vst [vmem:[#allocation120_spill] sm:$0xff] %v8352_v26  ;;  %v8375_v26 = vmul.f32 %v8117_v39, %v9442_v61  ;;  %v8395_v54 = vadd.f32 %v8363_v50, %v8134_v4  ;;  %v8399_v13 = vadd.f32 %v8363_v50, %v8138_v48  ;;  %v8403_v39 = vadd.f32 %v8363_v50, %v8142_v55 }
 0x6bc   :  { %v8407_v57 = vadd.f32 %v8363_v50, %v8146_v6  ;;  %v8411_v60 = vadd.f32 %v8363_v50, %v8150_v40  ;;  %v8415_v11 = vadd.f32 %v8363_v50, %v8154_v27  ;;  %v8419_v4 = vadd.f32 %v8363_v50, %v8158_v59 }
 0x6bd   :  { %v8423_v48 = vadd.f32 %v8363_v50, %v8162_v33  ;;  %v8427_v55 = vadd.f32 %v8363_v50, %v8166_v9  ;;  %v8431_v6 = vadd.f32 %v8363_v50, %v8170_v19  ;;  %v8435_v40 = vadd.f32 %v8363_v50, %v8174_v15  ;;  %v9448_v28 = vld [vmem:[#allocation118_spill] sm:$0xff]  ;;  %v9449_v61 = vld [vmem:[#allocation9_spill] sm:$0xff] }
 0x6be   :  { %v8439_v27 = vadd.f32 %v8363_v50, %v8178_v37  ;;  %v8443_v59 = vadd.f32 %v8363_v50, %v8182_v25  ;;  %v8447_v33 = vadd.f32 %v8363_v50, %v8186_v12  ;;  %v8451_v9 = vadd.f32 %v8363_v50, %v8190_v23 }
 0x6bf   :  { %v8455_v19 = vadd.f32 %v8363_v50, %v8194_v34  ;;  %v8459_v15 = vadd.f32 %v8363_v50, %v8198_v58  ;;  %v8463_v37 = vadd.f32 %v8363_v50, %v8202_v44  ;;  %v8467_v25 = vadd.f32 %v8363_v50, %v8206_v30 }
 0x6c0   :  { %v8471_v12 = vadd.f32 %v8363_v50, %v8210_v5  ;;  %v8475_v23 = vadd.f32 %v8363_v50, %v8214_v14  ;;  %v8479_v34 = vadd.f32 %v8363_v50, %v8218_v46  ;;  %v8483_v58 = vadd.f32 %v8363_v50, %v8222_v0 }
 0x6c1   :  { %v8487_v44 = vadd.f32 %v8363_v50, %v8226_v2  ;;  %v8491_v30 = vadd.f32 %v8363_v50, %v8230_v35  ;;  %v8495_v5 = vadd.f32 %v8363_v50, %v8234_v52  ;;  %v8499_v14 = vadd.f32 %v8363_v50, %v8238_v45 }
 0x6c2   :  { %v8503_v46 = vadd.f32 %v8363_v50, %v8242_v18  ;;  %v8507_v0 = vadd.f32 %v8363_v50, %v8246_v36  ;;  %v8511_v2 = vadd.f32 %v8363_v50, %v8250_v24  ;;  %v8515_v35 = vadd.f32 %v8363_v50, %v8254_v7 }
 0x6c3   :  { %v8519_v52 = vadd.f32 %v8363_v50, %v8258_v10  ;;  %v8523_v45 = vadd.f32 %v8363_v50, %v8262_v21  ;;  %v8527_v18 = vadd.f32 %v8363_v50, %v8266_v17  ;;  %v8531_v36 = vadd.f32 %v8363_v50, %v8270_v31 }
 0x6c4   :  { %v8535_v24 = vadd.f32 %v8363_v50, %v8274_v62  ;;  %v8539_v7 = vadd.f32 %v8363_v50, %v8278_v49  ;;  %v8543_v10 = vadd.f32 %v8363_v50, %v8282_v51  ;;  %v8547_v21 = vadd.f32 %v8363_v50, %v8286_v32  ;;  %v9446_v32 = vld [vmem:[#allocation63_spill] sm:$0xff] }
 0x6c5   :  { %v8551_v17 = vadd.f32 %v8363_v50, %v8290_v1  ;;  %v8555_v31 = vadd.f32 %v8363_v50, %v8294_v63  ;;  %v8559_v62 = vadd.f32 %v8363_v50, %v8298_v43  ;;  %v8563_v49 = vadd.f32 %v8363_v50, %v8302_v16 }
 0x6c6   :  { %v8567_v51 = vadd.f32 %v8363_v50, %v8306_v29  ;;  %v8571_v1 = vadd.f32 %v8363_v50, %v9446_v32  ;;  %v8575_v63 = vadd.f32 %v8363_v50, %v9448_v28  ;;  %v8579_v43 = vadd.f32 %v8363_v50, %v9449_v61 }
 0x6c7   :  { %9443 = vst [vmem:[#allocation173_spill] sm:$0xff] %v8559_v62  ;;  %9444 = vst [vmem:[#allocation11_spill] sm:$0xff] %v8563_v49  ;;  %v9451_v62 = vld [vmem:[#allocation64_spill] sm:$0xff]  ;;  %v9452_v49 = vld [vmem:[#allocation119_spill] sm:$0xff]  ;;  %v8599_v61 = vadd.f32 %v8363_v50, %v8339_v20  ;;  %v8619_v20 = vadd.f32 %v8363_v50, %v8360_v38  ;;  %v4586_v38 = vmax.f32 %v8387_v53, 0.0  ;;  %v4597_v53 = vmax.f32 %v8431_v6, 0.0 }
 0x6c8   :  { %9445 = vst [vmem:[#allocation66_spill] sm:$0xff] %v8567_v51  ;;  %9447 = vst [vmem:[#allocation121_spill] sm:$0xff] %v8571_v1  ;;  %v8583_v16 = vadd.f32 %v8363_v50, %v9451_v62  ;;  %v8587_v29 = vadd.f32 %v8363_v50, %v9452_v49  ;;  %v9454_v51 = vld [vmem:[#allocation172_spill] sm:$0xff]  ;;  %v9455_v1 = vld [vmem:[#allocation10_spill] sm:$0xff]  ;;  %v8607_v49 = vadd.f32 %v8363_v50, %v8347_v22  ;;  %v4608_v6 = vmax.f32 %v8475_v23, 0.0 }
 0x6c9   :  { %9450 = vst [vmem:[#allocation174_spill] sm:$0xff] %v8579_v43  ;;  %v8591_v32 = vadd.f32 %v8363_v50, %v9454_v51  ;;  %v8595_v28 = vadd.f32 %v8363_v50, %v9455_v1  ;;  %v9456_v43 = vld [vmem:[#allocation65_spill] sm:$0xff]  ;;  %v8615_v1 = vadd.f32 %v8363_v50, %v8356_v56  ;;  %9459 = vst [vmem:[#allocation122_spill] sm:$0xff] %v8619_v20  ;;  %v4587_v20 = vmax.f32 %v8391_v8, 0.0 }
 0x6ca   :  { %9453 = vst [vmem:[#allocation12_spill] sm:$0xff] %v8587_v29  ;;  %v8603_v62 = vadd.f32 %v8363_v50, %v9456_v43  ;;  %v9457_v29 = vld [vmem:[#allocation120_spill] sm:$0xff]  ;;  %v8623_v43 = vadd.f32 %v8363_v50, %v8367_v3  ;;  %v8627_v22 = vadd.f32 %v8363_v50, %v8371_v47  ;;  %v8635_v56 = vadd.f32 %v8363_v50, %v8379_v41 }
 0x6cb   :  { %v8611_v51 = vadd.f32 %v8363_v50, %v9457_v29  ;;  %9458 = vst [vmem:[#allocation67_spill] sm:$0xff] %v8615_v1  ;;  %v8631_v29 = vadd.f32 %v8363_v50, %v8375_v26  ;;  %v4585_v1 = vmax.f32 %v8383_v42, 0.0  ;;  %v4588_v3 = vmax.f32 %v8395_v54, 0.0  ;;  %4650 = vst.msk [vmem:[%s8962_s5 + $0x8] sm:$0xff] %vm3113_vm4, %v4586_v38 }
 0x6cc   :  { %9460 = vst [vmem:[#allocation175_spill] sm:$0xff] %v8623_v43  ;;  %9461 = vst [vmem:[#allocation13_spill] sm:$0xff] %v8627_v22  ;;  %v4589_v43 = vmax.f32 %v8399_v13, 0.0  ;;  %v4590_v47 = vmax.f32 %v8403_v39, 0.0  ;;  %v4591_v22 = vmax.f32 %v8407_v57, 0.0  ;;  %v4592_v26 = vmax.f32 %v8411_v60, 0.0 }
 0x6cd   :  { %9462 = vst [vmem:[#allocation68_spill] sm:$0xff] %v8631_v29  ;;  %v4593_v29 = vmax.f32 %v8415_v11, 0.0  ;;  %v4594_v50 = vmax.f32 %v8419_v4, 0.0  ;;  %v4595_v41 = vmax.f32 %v8423_v48, 0.0  ;;  %v4596_v42 = vmax.f32 %v8427_v55, 0.0  ;;  %4649 = vst.msk [vmem:[%s8962_s5] sm:$0xff] %vm3113_vm4, %v4585_v1 }
 0x6ce   :  { %4651 = vst.msk [vmem:[%s8962_s5 + $0x10] sm:$0xff] %vm3113_vm4, %v4587_v20  ;;  %4652 = vst.msk [vmem:[%s8962_s5 + $0x18] sm:$0xff] %vm3113_vm4, %v4588_v3  ;;  %v4598_v8 = vmax.f32 %v8435_v40, 0.0  ;;  %v4599_v54 = vmax.f32 %v8439_v27, 0.0  ;;  %v4600_v13 = vmax.f32 %v8443_v59, 0.0  ;;  %v4601_v39 = vmax.f32 %v8447_v33, 0.0 }
 0x6cf   :  { %4653 = vst.msk [vmem:[%s8962_s5 + $0x20] sm:$0xff] %vm3113_vm4, %v4589_v43  ;;  %4654 = vst.msk [vmem:[%s8962_s5 + $0x28] sm:$0xff] %vm3113_vm4, %v4590_v47  ;;  %v4602_v57 = vmax.f32 %v8451_v9, 0.0  ;;  %v4603_v60 = vmax.f32 %v8455_v19, 0.0  ;;  %v4604_v11 = vmax.f32 %v8459_v15, 0.0  ;;  %v4605_v4 = vmax.f32 %v8463_v37, 0.0 }
 0x6d0   :  { %4655 = vst.msk [vmem:[%s8962_s5 + $0x30] sm:$0xff] %vm3113_vm4, %v4591_v22  ;;  %4656 = vst.msk [vmem:[%s8962_s5 + $0x38] sm:$0xff] %vm3113_vm4, %v4592_v26  ;;  %v4606_v48 = vmax.f32 %v8467_v25, 0.0  ;;  %v4607_v55 = vmax.f32 %v8471_v12, 0.0  ;;  %v4609_v40 = vmax.f32 %v8479_v34, 0.0  ;;  %v4610_v27 = vmax.f32 %v8483_v58, 0.0 }
 0x6d1   :  { %4657 = vst.msk [vmem:[%s8962_s5 + $0x40] sm:$0xff] %vm3113_vm4, %v4593_v29  ;;  %4658 = vst.msk [vmem:[%s8962_s5 + $0x48] sm:$0xff] %vm3113_vm4, %v4594_v50  ;;  %v4611_v59 = vmax.f32 %v8487_v44, 0.0  ;;  %v4612_v33 = vmax.f32 %v8491_v30, 0.0  ;;  %v4613_v9 = vmax.f32 %v8495_v5, 0.0  ;;  %v4614_v19 = vmax.f32 %v8499_v14, 0.0 }
 0x6d2   :  { %4659 = vst.msk [vmem:[%s8962_s5 + $0x50] sm:$0xff] %vm3113_vm4, %v4595_v41  ;;  %4660 = vst.msk [vmem:[%s8962_s5 + $0x58] sm:$0xff] %vm3113_vm4, %v4596_v42  ;;  %v4615_v15 = vmax.f32 %v8503_v46, 0.0  ;;  %v4616_v37 = vmax.f32 %v8507_v0, 0.0  ;;  %v4617_v25 = vmax.f32 %v8511_v2, 0.0  ;;  %v4618_v12 = vmax.f32 %v8515_v35, 0.0 }
 0x6d3   :  { %4661 = vst.msk [vmem:[%s8962_s5 + $0x60] sm:$0xff] %vm3113_vm4, %v4597_v53  ;;  %4662 = vst.msk [vmem:[%s8962_s5 + $0x68] sm:$0xff] %vm3113_vm4, %v4598_v8  ;;  %v4619_v23 = vmax.f32 %v8519_v52, 0.0  ;;  %v4620_v34 = vmax.f32 %v8523_v45, 0.0  ;;  %v4621_v58 = vmax.f32 %v8527_v18, 0.0  ;;  %v4622_v44 = vmax.f32 %v8531_v36, 0.0 }
 0x6d4   :  { %4663 = vst.msk [vmem:[%s8962_s5 + $0x70] sm:$0xff] %vm3113_vm4, %v4599_v54  ;;  %4664 = vst.msk [vmem:[%s8962_s5 + $0x78] sm:$0xff] %vm3113_vm4, %v4600_v13  ;;  %v4623_v30 = vmax.f32 %v8535_v24, 0.0  ;;  %v4624_v5 = vmax.f32 %v8539_v7, 0.0  ;;  %v4625_v14 = vmax.f32 %v8543_v10, 0.0  ;;  %v4626_v46 = vmax.f32 %v8547_v21, 0.0 }
 0x6d5   :  { %4665 = vst.msk [vmem:[%s8962_s5 + $0x80] sm:$0xff] %vm3113_vm4, %v4601_v39  ;;  %4666 = vst.msk [vmem:[%s8962_s5 + $0x88] sm:$0xff] %vm3113_vm4, %v4602_v57  ;;  %v4627_v0 = vmax.f32 %v8551_v17, 0.0  ;;  %v4628_v2 = vmax.f32 %v8555_v31, 0.0  ;;  %v9463_v35 = vld [vmem:[#allocation173_spill] sm:$0xff]  ;;  %v9464_v45 = vld [vmem:[#allocation11_spill] sm:$0xff] }
 0x6d6   :  { %4667 = vst.msk [vmem:[%s8962_s5 + $0x90] sm:$0xff] %vm3113_vm4, %v4603_v60  ;;  %4668 = vst.msk [vmem:[%s8962_s5 + $0x98] sm:$0xff] %vm3113_vm4, %v4604_v11  ;;  %v4629_v52 = vmax.f32 %v9463_v35, 0.0  ;;  %v4630_v18 = vmax.f32 %v9464_v45, 0.0  ;;  %v9465_v36 = vld [vmem:[#allocation66_spill] sm:$0xff]  ;;  %v9466_v7 = vld [vmem:[#allocation121_spill] sm:$0xff] }
 0x6d7   :  { %4669 = vst.msk [vmem:[%s8962_s5 + $0xa0] sm:$0xff] %vm3113_vm4, %v4605_v4  ;;  %4670 = vst.msk [vmem:[%s8962_s5 + $0xa8] sm:$0xff] %vm3113_vm4, %v4606_v48  ;;  %v4631_v24 = vmax.f32 %v9465_v36, 0.0  ;;  %v4632_v10 = vmax.f32 %v9466_v7, 0.0  ;;  %v4633_v21 = vmax.f32 %v8575_v63, 0.0  ;;  %v9467_v17 = vld [vmem:[#allocation174_spill] sm:$0xff] }
 0x6d8   :  { %4671 = vst.msk [vmem:[%s8962_s5 + $0xb0] sm:$0xff] %vm3113_vm4, %v4607_v55  ;;  %4672 = vst.msk [vmem:[%s8962_s5 + $0xb8] sm:$0xff] %vm3113_vm4, %v4608_v6  ;;  %v4634_v31 = vmax.f32 %v9467_v17, 0.0  ;;  %v4635_v1 = vmax.f32 %v8583_v16, 0.0  ;;  %v9468_v20 = vld [vmem:[#allocation12_spill] sm:$0xff]  ;;  %v4637_v63 = vmax.f32 %v8591_v32, 0.0 }
 0x6d9   :  { %4673 = vst.msk [vmem:[%s8962_s5 + $0xc0] sm:$0xff] %vm3113_vm4, %v4609_v40  ;;  %4674 = vst.msk [vmem:[%s8962_s5 + $0xc8] sm:$0xff] %vm3113_vm4, %v4610_v27  ;;  %v4636_v43 = vmax.f32 %v9468_v20, 0.0  ;;  %v4638_v16 = vmax.f32 %v8595_v28, 0.0  ;;  %v4639_v22 = vmax.f32 %v8599_v61, 0.0  ;;  %v4640_v29 = vmax.f32 %v8603_v62, 0.0 }
 0x6da   :  { %4675 = vst.msk [vmem:[%s8962_s5 + $0xd0] sm:$0xff] %vm3113_vm4, %v4611_v59  ;;  %4676 = vst.msk [vmem:[%s8962_s5 + $0xd8] sm:$0xff] %vm3113_vm4, %v4612_v33  ;;  %v4641_v32 = vmax.f32 %v8607_v49, 0.0  ;;  %v4642_v28 = vmax.f32 %v8611_v51, 0.0  ;;  %v9469_v61 = vld [vmem:[#allocation67_spill] sm:$0xff]  ;;  %v9470_v38 = vld [vmem:[#allocation122_spill] sm:$0xff] }
 0x6db   :  { %4677 = vst.msk [vmem:[%s8962_s5 + $0xe0] sm:$0xff] %vm3113_vm4, %v4613_v9  ;;  %4678 = vst.msk [vmem:[%s8962_s5 + $0xe8] sm:$0xff] %vm3113_vm4, %v4614_v19  ;;  %v4643_v62 = vmax.f32 %v9469_v61, 0.0  ;;  %v4644_v3 = vmax.f32 %v9470_v38, 0.0  ;;  %v9471_v49 = vld [vmem:[#allocation175_spill] sm:$0xff]  ;;  %v9472_v47 = vld [vmem:[#allocation13_spill] sm:$0xff] }
 0x6dc   :  { %4679 = vst.msk [vmem:[%s8962_s5 + $0xf0] sm:$0xff] %vm3113_vm4, %v4615_v15  ;;  %4680 = vst.msk [vmem:[%s8962_s5 + $0xf8] sm:$0xff] %vm3113_vm4, %v4616_v37  ;;  %v4645_v51 = vmax.f32 %v9471_v49, 0.0  ;;  %v4646_v26 = vmax.f32 %v9472_v47, 0.0  ;;  %v9473_v50 = vld [vmem:[#allocation68_spill] sm:$0xff]  ;;  %v4648_v42 = vmax.f32 %v8635_v56, 0.0 }
 0x6dd   :  { %4681 = vst.msk [vmem:[%s8962_s5 + $0x100] sm:$0xff] %vm3113_vm4, %v4617_v25  ;;  %4682 = vst.msk [vmem:[%s8962_s5 + $0x108] sm:$0xff] %vm3113_vm4, %v4618_v12  ;;  %v4647_v41 = vmax.f32 %v9473_v50, 0.0 }
 0x6de   :  { %4683 = vst.msk [vmem:[%s8962_s5 + $0x110] sm:$0xff] %vm3113_vm4, %v4619_v23  ;;  %4684 = vst.msk [vmem:[%s8962_s5 + $0x118] sm:$0xff] %vm3113_vm4, %v4620_v34 }
 0x6df   :  { %4685 = vst.msk [vmem:[%s8962_s5 + $0x120] sm:$0xff] %vm3113_vm4, %v4621_v58  ;;  %4686 = vst.msk [vmem:[%s8962_s5 + $0x128] sm:$0xff] %vm3113_vm4, %v4622_v44 }
 0x6e0   :  { %4687 = vst.msk [vmem:[%s8962_s5 + $0x130] sm:$0xff] %vm3113_vm4, %v4623_v30  ;;  %4688 = vst.msk [vmem:[%s8962_s5 + $0x138] sm:$0xff] %vm3113_vm4, %v4624_v5 }
 0x6e1   :  { %4689 = vst.msk [vmem:[%s8962_s5 + $0x140] sm:$0xff] %vm3113_vm4, %v4625_v14  ;;  %4690 = vst.msk [vmem:[%s8962_s5 + $0x148] sm:$0xff] %vm3113_vm4, %v4626_v46 }
 0x6e2   :  { %4691 = vst.msk [vmem:[%s8962_s5 + $0x150] sm:$0xff] %vm3113_vm4, %v4627_v0  ;;  %4692 = vst.msk [vmem:[%s8962_s5 + $0x158] sm:$0xff] %vm3113_vm4, %v4628_v2 }
 0x6e3   :  { %4693 = vst.msk [vmem:[%s8962_s5 + $0x160] sm:$0xff] %vm3113_vm4, %v4629_v52  ;;  %4694 = vst.msk [vmem:[%s8962_s5 + $0x168] sm:$0xff] %vm3113_vm4, %v4630_v18 }
 0x6e4   :  { %4695 = vst.msk [vmem:[%s8962_s5 + $0x170] sm:$0xff] %vm3113_vm4, %v4631_v24  ;;  %4696 = vst.msk [vmem:[%s8962_s5 + $0x178] sm:$0xff] %vm3113_vm4, %v4632_v10 }
 0x6e5   :  { %4697 = vst.msk [vmem:[%s8962_s5 + $0x180] sm:$0xff] %vm3113_vm4, %v4633_v21  ;;  %4698 = vst.msk [vmem:[%s8962_s5 + $0x188] sm:$0xff] %vm3113_vm4, %v4634_v31 }
 0x6e6   :  { %4699 = vst.msk [vmem:[%s8962_s5 + $0x190] sm:$0xff] %vm3113_vm4, %v4635_v1  ;;  %4700 = vst.msk [vmem:[%s8962_s5 + $0x198] sm:$0xff] %vm3113_vm4, %v4636_v43 }
 0x6e7   :  { %4701 = vst.msk [vmem:[%s8962_s5 + $0x1a0] sm:$0xff] %vm3113_vm4, %v4637_v63  ;;  %4702 = vst.msk [vmem:[%s8962_s5 + $0x1a8] sm:$0xff] %vm3113_vm4, %v4638_v16 }
 0x6e8   :  { %4703 = vst.msk [vmem:[%s8962_s5 + $0x1b0] sm:$0xff] %vm3113_vm4, %v4639_v22  ;;  %4704 = vst.msk [vmem:[%s8962_s5 + $0x1b8] sm:$0xff] %vm3113_vm4, %v4640_v29 }
 0x6e9   :  { %4705 = vst.msk [vmem:[%s8962_s5 + $0x1c0] sm:$0xff] %vm3113_vm4, %v4641_v32  ;;  %4706 = vst.msk [vmem:[%s8962_s5 + $0x1c8] sm:$0xff] %vm3113_vm4, %v4642_v28 }
 0x6ea   :  { %4707 = vst.msk [vmem:[%s8962_s5 + $0x1d0] sm:$0xff] %vm3113_vm4, %v4643_v62  ;;  %4708 = vst.msk [vmem:[%s8962_s5 + $0x1d8] sm:$0xff] %vm3113_vm4, %v4644_v3 }
 0x6eb   :  { %4709 = vst.msk [vmem:[%s8962_s5 + $0x1e0] sm:$0xff] %vm3113_vm4, %v4645_v51  ;;  %4710 = vst.msk [vmem:[%s8962_s5 + $0x1e8] sm:$0xff] %vm3113_vm4, %v4646_v26 }
 0x6ec   :  { %4711 = vst.msk [vmem:[%s8962_s5 + $0x1f0] sm:$0xff] %vm3113_vm4, %v4647_v41  ;;  %4712 = vst.msk [vmem:[%s8962_s5 + $0x1f8] sm:$0xff] %vm3113_vm4, %v4648_v42 }

</bundles_post_ra>
